<compile_context>
chip_gen: v5e
topology: v5e:2x2
jax: 0.10.0
libtpu: 0.0.40
codegen_flags: <defaults>
</compile_context>

<pallas_src>
import functools

import jax
import jax.numpy as jnp
from jax import lax
from jax.experimental import pallas as pl
from jax.experimental.pallas import tpu as pltpu


def _model_kernel(x_ref,                         # (T*Bt, E) embedded tokens, t-major rows (row = t*Bt + j)
                  wih_ref, b_ref,                # fused input proj: (E, 8H), (1, 8H)  [fwd | bwd, gates (i,f,o,g)]
                  whh_f_ref, whh_b_ref,          # recurrent weights: (H, 4H) each, gates (i,f,o,g)
                  w1_ref,                        # (2H, d_a)   linear1 (no bias)
                  w2_ref, b2_ref,                # (d_a, R), (1, R)
                  w3_ref, b3_ref,                # (R*2H, C), (1, C)
                  logp_ref,                      # out: (Bt, C) log-probs
                  a_ref,                         # out: (T*Bt, R) attention, t-major rows
                  gx_s,                          # scratch: (T*Bt, 8H) hoisted input-projection gates
                  out_s,                         # scratch: (T*Bt, 2H) BiLSTM outputs, t-major
                  mflat_s,                       # scratch: (Bt, R*2H) flattened attention pooling
                  *, seq_len, batch_tile, hidden, n_attn, unrolled):
    T, Bt, H, R = seq_len, batch_tile, hidden, n_attn
    H2, H3, H4 = 2 * H, 3 * H, 4 * H
    f32 = jnp.float32

    # ---- 1. fused, hoisted input projection: one (T*Bt, E) @ (E, 8H) matmul ----
    gx_s[...] = jnp.dot(x_ref[...], wih_ref[...], preferred_element_type=f32) + b_ref[...]

    whh_f = whh_f_ref[...]
    whh_b = whh_b_ref[...]

    def cell(gates, c_prev):
        # Gate columns pre-permuted to (i, f, o, g): one sigmoid pass over 3H and
        # one tanh pass over H instead of full-width sigmoid AND tanh over 4H.
        sg = 1.0 / (1.0 + jnp.exp(-gates[:, 0:H3]))
        g_g = jnp.tanh(gates[:, H3:H4])
        i_g = sg[:, 0:H]
        f_g = sg[:, H:H2]
        o_g = sg[:, H2:H3]
        c_new = f_g * c_prev + i_g * g_g
        h_new = o_g * jnp.tanh(c_new)
        return h_new, c_new

    def step(s, h_f, c_f, h_b, c_b):
        # Forward timestep tf and backward timestep tb are independent -> interleave
        # them so each VLIW bundle carries 2x work on the serial recurrence chain.
        tf = s
        tb = T - 1 - s
        of = tf * Bt if isinstance(tf, int) else pl.multiple_of(tf * Bt, Bt)
        ob = tb * Bt if isinstance(tb, int) else pl.multiple_of(tb * Bt, Bt)
        g_f = gx_s[pl.ds(of, Bt), 0:H4] + jnp.dot(h_f, whh_f, preferred_element_type=f32)
        h_f, c_f = cell(g_f, c_f)
        g_b = gx_s[pl.ds(ob, Bt), H4:2 * H4] + jnp.dot(h_b, whh_b, preferred_element_type=f32)
        h_b, c_b = cell(g_b, c_b)
        # One contiguous (Bt, H) block store per direction per step (no per-row scatter).
        out_s[pl.ds(of, Bt), 0:H] = h_f
        out_s[pl.ds(ob, Bt), H:H2] = h_b
        return h_f, c_f, h_b, c_b

    z = jnp.zeros((Bt, H), f32)
    if unrolled:                                   # small T: full static unroll
        st = (z, z, z, z)
        for s in range(T):
            st = step(s, *st)
    else:                                          # long T: bounded vreg pressure
        lax.fori_loop(0, T, lambda s, c: step(s, *c), (z, z, z, z), unroll=2)

    # ---- 2. attention projections on the whole (T*Bt, .) slab ----
    out_all = out_s[...]                                                       # (T*Bt, 2H)
    x1 = jnp.tanh(jnp.dot(out_all, w1_ref[...], preferred_element_type=f32))   # (T*Bt, d_a)
    wsc = jnp.dot(x1, w2_ref[...], preferred_element_type=f32) + b2_ref[...]    # (T*Bt, R)

    # ---- 3. softmax over the sequence dim, batched over the whole tile ----
    w3d = wsc.reshape(T, Bt, R)                      # layout-preserving split (Bt % 8 == 0)
    w_max = jnp.max(w3d, axis=0, keepdims=True)
    e = jnp.exp(w3d - w_max)
    denom = jnp.sum(e, axis=0, keepdims=True)
    attn = e * pl.reciprocal(denom, approx=True)     # (T, Bt, R)
    a_ref[...] = attn.reshape(T * Bt, R)
    # TODO(synk): at production T, emit A with T as the minor (lane) dim for dense stores.

    # ---- 4. attention pooling: batched weighted reductions over T (no per-batch loop) ----
    out3 = out_all.reshape(T, Bt, H2)                # (T, Bt, 2H)
    for r in range(R):                               # R is a small feature dim, not batch
        m_r = jnp.sum(attn[:, :, r:r + 1] * out3, axis=0)          # (Bt, 2H)
        mflat_s[:, r * H2:(r + 1) * H2] = m_r        # one wide block store per attention head

    # ---- 5. classifier: one (Bt, R*2H) @ (R*2H, C) matmul + log-softmax ----
    logits = jnp.dot(mflat_s[...], w3_ref[...], preferred_element_type=f32) + b3_ref[...]
    mx = jnp.max(logits, axis=-1, keepdims=True)
    lse = jnp.log(jnp.sum(jnp.exp(logits - mx), axis=-1, keepdims=True)) + mx
    logp_ref[...] = logits - lse


def _choose_batch_tile(B):
    """Batch tile: multiple of 8 (sublane height), up to 128 (MXU M rows); pad B up."""
    best = None
    for bt in range(8, 129, 8):
        g = -(-B // bt)
        key = (g * bt - B, -bt)        # minimize padding, then prefer the larger tile
        if best is None or key < best[0]:
            best = (key, bt, g)
    bt, g = best[1], best[2]
    if g == 1 and bt >= 16:            # v7x megacore: give both TensorCores a tile
        bt //= 2
        g = 2
    return bt, g


def _vmem_bytes_estimate(T, Bt, E, H, d_a, R, C):
    f = 4
    x_blk = 2 * T * Bt * E * f                                 # double-buffered input block
    outs = 2 * (Bt * C + T * Bt * R) * f                       # double-buffered output blocks
    wts = 2 * (E * 8 * H + 8 * H + 2 * H * 4 * H + 2 * H * d_a
               + d_a * R + R + R * 2 * H * C + C) * f          # weights (worst case: double-buffered)
    scr = (T * Bt * 8 * H + T * Bt * 2 * H + Bt * R * 2 * H) * f
    return x_blk + outs + wts + scr


def structured_self_attention_forward(input_ids, params, *, hidden, d_a, n_attn, n_classes):
    """input_ids: (T, B) int32 tokens.  Returns (log_probs (B, C), A (B, R, T))."""
    emb = params["embedding"]
    T, B = input_ids.shape
    E = emb.shape[1]
    H, R, C = hidden, n_attn, n_classes

    Bt, G = _choose_batch_tile(B)
    B_pad = Bt * G

    # glue: gate-column permutation (i,f,g,o)->(i,f,o,g) + fused fwd|bwd input projection
    def perm(w):
        return jnp.concatenate([w[..., 0:2 * H], w[..., 3 * H:4 * H], w[..., 2 * H:3 * H]], axis=-1)

    wih = jnp.concatenate([perm(params["wih_f"]), perm(params["wih_b"])], axis=1)   # (E, 8H)
    b_cat = jnp.concatenate([perm(params["b_f"]), perm(params["b_b"])], axis=1)     # (1, 8H)
    whh_f = perm(params["whh_f"])
    whh_b = perm(params["whh_b"])

    # glue: embedding gather + batch pad + per-tile, t-major 2D slabs (G, T*Bt, E)
    ids = jnp.pad(input_ids, ((0, 0), (0, B_pad - B)))
    x = emb[ids].astype(jnp.float32)                                                 # (T, B_pad, E)
    x = x.reshape(T, G, Bt, E).transpose(1, 0, 2, 3).reshape(G, T * Bt, E)

    unrolled = T <= 16
    kernel = functools.partial(_model_kernel, seq_len=T, batch_tile=Bt,
                               hidden=H, n_attn=R, unrolled=unrolled)

    est = _vmem_bytes_estimate(T, Bt, E, H, d_a, R, C)
    cparams = pltpu.CompilerParams(
        dimension_semantics=("parallel",),
        vmem_limit_bytes=int(min(64 << 20, max(2 * est, 8 << 20))),
    )

    def wspec(shape, single_buffer):
        if single_buffer:  # grid-invariant weights: no double buffer -> half the VMEM
            return pl.BlockSpec(shape, lambda g: (0, 0),
                                pipeline_mode=pl.Buffered(buffer_count=1))
        return pl.BlockSpec(shape, lambda g: (0, 0))

    def run(single_buffer_weights):
        in_specs = [
            pl.BlockSpec((None, T * Bt, E), lambda g: (g, 0, 0)),
            wspec((E, 8 * H), single_buffer_weights),
            wspec((1, 8 * H), single_buffer_weights),
            wspec((H, 4 * H), single_buffer_weights),
            wspec((H, 4 * H), single_buffer_weights),
            wspec((2 * H, d_a), single_buffer_weights),
            wspec((d_a, R), single_buffer_weights),
            wspec((1, R), single_buffer_weights),
            wspec((R * 2 * H, C), single_buffer_weights),
            wspec((1, C), single_buffer_weights),
        ]
        out_specs = [
            pl.BlockSpec((None, Bt, C), lambda g: (g, 0, 0)),
            pl.BlockSpec((None, T * Bt, R), lambda g: (g, 0, 0)),
        ]
        out_shapes = [
            jax.ShapeDtypeStruct((G, Bt, C), jnp.float32),
            jax.ShapeDtypeStruct((G, T * Bt, R), jnp.float32),
        ]
        return pl.pallas_call(
            kernel,
            out_shape=out_shapes,
            grid_spec=pltpu.PrefetchScalarGridSpec(
                num_scalar_prefetch=0,
                grid=(G,),
                in_specs=in_specs,
                out_specs=out_specs,
                scratch_shapes=[pltpu.VMEM((T * Bt, 8 * H), jnp.float32),
                                pltpu.VMEM((T * Bt, 2 * H), jnp.float32),
                                pltpu.VMEM((Bt, R * 2 * H), jnp.float32)],
            ),
            compiler_params=cparams,
        )(x, wih, b_cat, whh_f, whh_b,
          params["w1"], params["w2"], params["b2"], params["w3"], params["b3"])

    try:
        logp, A = run(True)
    except Exception:   # pl.Buffered(1) not supported by this runtime -> default buffering
        logp, A = run(False)

    # glue: un-tile / un-pad / permute outputs back to the module's layout
    logp = logp.reshape(B_pad, C)[:B]                                                # (B, C)
    A_out = A.reshape(G, T, Bt, R).transpose(0, 2, 3, 1).reshape(B_pad, R, T)[:B]    # == A.permute(1,2,0)
    return logp, A_out


# ------------------------- pure-JAX reference (for verification) -------------------------
def reference_forward(input_ids, params, *, hidden, d_a, n_attn, n_classes):
    emb = params["embedding"]
    T, B = input_ids.shape
    x = emb[input_ids].astype(jnp.float32)     # (T, B, E)
    H = hidden

    def lstm_dir(xs, wih, whh, b):
        def step(carry, xt):
            h, c = carry
            gates = xt @ wih + h @ whh + b
            i_g = jax.nn.sigmoid(gates[:, 0:H])
            f_g = jax.nn.sigmoid(gates[:, H:2 * H])
            g_g = jnp.tanh(gates[:, 2 * H:3 * H])
            o_g = jax.nn.sigmoid(gates[:, 3 * H:4 * H])
            c_new = f_g * c + i_g * g_g
            h_new = o_g * jnp.tanh(c_new)
            return (h_new, c_new), h_new
        init = (jnp.zeros((B, H)), jnp.zeros((B, H)))
        _, hs = lax.scan(step, init, xs)
        return hs                               # (T, B, H)

    out_f = lstm_dir(x, params["wih_f"], params["whh_f"], params["b_f"][0])
    out_b = lstm_dir(x[::-1], params["wih_b"], params["whh_b"], params["b_b"][0])[::-1]
    out = jnp.concatenate([out_f, out_b], axis=-1)        # (T, B, 2H)

    x1 = jnp.tanh(out @ params["w1"])                     # (T, B, d_a)
    w = x1 @ params["w2"] + params["b2"][0]               # (T, B, R)
    A = jax.nn.softmax(w, axis=0)
    A_p = jnp.transpose(A, (1, 2, 0))                     # (B, R, T)
    out_p = jnp.transpose(out, (1, 0, 2))                 # (B, T, 2H)
    M = jnp.einsum("brt,btd->brd", A_p, out_p).reshape(B, -1)
    logits = M @ params["w3"] + params["b3"][0]
    return jax.nn.log_softmax(logits, axis=-1), A_p


def init_params(key, *, vocab, E, H, d_a, R, C):
    ks = jax.random.split(key, 12)
    u = lambda k, shape: jax.random.uniform(k, shape, jnp.float32, -0.1, 0.1)
    return {
        "embedding": u(ks[0], (vocab, E)),
        "wih_f": u(ks[1], (E, 4 * H)), "whh_f": u(ks[2], (H, 4 * H)), "b_f": u(ks[3], (1, 4 * H)),
        "wih_b": u(ks[4], (E, 4 * H)), "whh_b": u(ks[5], (H, 4 * H)), "b_b": u(ks[6], (1, 4 * H)),
        "w1": u(ks[7], (2 * H, d_a)),
        "w2": u(ks[8], (d_a, R)), "b2": u(ks[9], (1, R)),
        "w3": u(ks[10], (R * 2 * H, C)), "b3": u(ks[11], (1, C)),
    }


if __name__ == "__main__":
    def check(*, T, B, E, H, d_a, R, vocab, C):
        key = jax.random.PRNGKey(0)
        k_ids, k_par = jax.random.split(key)
        input_ids = jax.random.randint(k_ids, (T, B), 0, vocab, dtype=jnp.int32)
        params = init_params(k_par, vocab=vocab, E=E, H=H, d_a=d_a, R=R, C=C)

        logp, A = structured_self_attention_forward(
            input_ids, params, hidden=H, d_a=d_a, n_attn=R, n_classes=C)
        logp, A = jax.block_until_ready((logp, A))

        ref_logp, ref_A = reference_forward(
            input_ids, params, hidden=H, d_a=d_a, n_attn=R, n_classes=C)

        assert logp.shape == (B, C) and A.shape == (B, R, T)
        assert jnp.allclose(logp, ref_logp, atol=2e-3, rtol=2e-3)
        assert jnp.allclose(A, ref_A, atol=2e-3, rtol=2e-3)

    # small config matching the module's test scale (fully-unrolled recurrence path)
    check(T=8, B=2, E=32, H=32, d_a=16, R=4, vocab=50, C=5)
    # longer sequence + non-tile-multiple batch (fori_loop recurrence path + batch padding)
    check(T=24, B=5, E=32, H=32, d_a=16, R=4, vocab=50, C=5)
    print("KERNEL_OK")
</pallas_src>

<mosaic_0001>
module attributes {stable_mosaic.version = 11 : i64} {
  func.func @_model_kernel(%arg0: i32, %arg1: memref<1x64x32xf32, #tpu.memory_space<vmem>>, %arg2: memref<32x256xf32, #tpu.memory_space<vmem>>, %arg3: memref<1x256xf32, #tpu.memory_space<vmem>>, %arg4: memref<32x128xf32, #tpu.memory_space<vmem>>, %arg5: memref<32x128xf32, #tpu.memory_space<vmem>>, %arg6: memref<64x16xf32, #tpu.memory_space<vmem>>, %arg7: memref<16x4xf32, #tpu.memory_space<vmem>>, %arg8: memref<1x4xf32, #tpu.memory_space<vmem>>, %arg9: memref<256x5xf32, #tpu.memory_space<vmem>>, %arg10: memref<1x5xf32, #tpu.memory_space<vmem>>, %arg11: memref<1x8x5xf32, #tpu.memory_space<vmem>>, %arg12: memref<1x64x4xf32, #tpu.memory_space<vmem>>, %arg13: memref<64x256xf32, #tpu.memory_space<vmem>>, %arg14: memref<64x64xf32, #tpu.memory_space<vmem>>, %arg15: memref<8x256xf32, #tpu.memory_space<vmem>>) attributes {dimension_semantics = [#tpu.dimension_semantics<parallel>], iteration_bounds = array<i64: 1>, scalar_prefetch = 0 : i64, scratch_operands = 3 : i64, tpu.core_type = #tpu.core_type<tc>, window_params = [{transform_indices = @transform_0, window_bounds = array<i64: 1, 64, 32>}, {pipeline_mode = #tpu.pipeline_mode<synchronous>, transform_indices = @transform_1, window_bounds = array<i64: 32, 256>}, {pipeline_mode = #tpu.pipeline_mode<synchronous>, transform_indices = @transform_2, window_bounds = array<i64: 1, 256>}, {pipeline_mode = #tpu.pipeline_mode<synchronous>, transform_indices = @transform_3, window_bounds = array<i64: 32, 128>}, {pipeline_mode = #tpu.pipeline_mode<synchronous>, transform_indices = @transform_4, window_bounds = array<i64: 32, 128>}, {pipeline_mode = #tpu.pipeline_mode<synchronous>, transform_indices = @transform_5, window_bounds = array<i64: 64, 16>}, {pipeline_mode = #tpu.pipeline_mode<synchronous>, transform_indices = @transform_6, window_bounds = array<i64: 16, 4>}, {pipeline_mode = #tpu.pipeline_mode<synchronous>, transform_indices = @transform_7, window_bounds = array<i64: 1, 4>}, {pipeline_mode = #tpu.pipeline_mode<synchronous>, transform_indices = @transform_8, window_bounds = array<i64: 256, 5>}, {pipeline_mode = #tpu.pipeline_mode<synchronous>, transform_indices = @transform_9, window_bounds = array<i64: 1, 5>}, {transform_indices = @transform_10, window_bounds = array<i64: 1, 8, 5>}, {transform_indices = @transform_11, window_bounds = array<i64: 1, 64, 4>}]} {
    %c0 = arith.constant 0 : index
    %c0_0 = arith.constant 0 : index
    %c0_1 = arith.constant 0 : index
    %0 = vector.load %arg1[%c0, %c0_0, %c0_1] : memref<1x64x32xf32, #tpu.memory_space<vmem>>, vector<1x64x32xf32>
    %1 = vector.shape_cast %0 : vector<1x64x32xf32> to vector<64x32xf32>
    %c0_2 = arith.constant 0 : index
    %c0_3 = arith.constant 0 : index
    %2 = vector.load %arg2[%c0_2, %c0_3] : memref<32x256xf32, #tpu.memory_space<vmem>>, vector<32x256xf32>
    %cst = arith.constant dense<0.000000e+00> : vector<64x256xf32>
    %3 = tpu.matmul %1, %2, %cst {dimension_numbers = #tpu.dot_dimension_numbers<[1], [0], [0], [1], [0, 0, 1, 1], [], []>} : vector<64x32xf32>, vector<32x256xf32>, vector<64x256xf32> -> vector<64x256xf32>
    %c0_4 = arith.constant 0 : index
    %c0_5 = arith.constant 0 : index
    %4 = vector.load %arg3[%c0_4, %c0_5] : memref<1x256xf32, #tpu.memory_space<vmem>>, vector<1x256xf32>
    %5 = vector.broadcast %4 : vector<1x256xf32> to vector<64x256xf32>
    %6 = arith.addf %3, %5 : vector<64x256xf32>
    %c0_6 = arith.constant 0 : index
    %c0_7 = arith.constant 0 : index
    %7 = vector.load %arg13[%c0_6, %c0_7] : memref<64x256xf32, #tpu.memory_space<vmem>>, vector<64x256xf32>
    tpu.vector_store %arg13[%c0_6, %c0_7], %6 {strides = array<i32>} : memref<64x256xf32, #tpu.memory_space<vmem>>, vector<64x256xf32>,
    %c0_8 = arith.constant 0 : index
    %c0_9 = arith.constant 0 : index
    %8 = vector.load %arg4[%c0_8, %c0_9] : memref<32x128xf32, #tpu.memory_space<vmem>>, vector<32x128xf32>
    %c0_10 = arith.constant 0 : index
    %c0_11 = arith.constant 0 : index
    %9 = vector.load %arg5[%c0_10, %c0_11] : memref<32x128xf32, #tpu.memory_space<vmem>>, vector<32x128xf32>
    %cst_12 = arith.constant 0.000000e+00 : f32
    %10 = vector.broadcast %cst_12 : f32 to vector<8x32xf32>
    %c0_13 = arith.constant 0 : index
    %c0_14 = arith.constant 0 : index
    %11 = vector.load %arg13[%c0_13, %c0_14] : memref<64x256xf32, #tpu.memory_space<vmem>>, vector<8x128xf32>
    %cst_15 = arith.constant dense<0.000000e+00> : vector<8x128xf32>
    %12 = tpu.matmul %10, %8, %cst_15 {dimension_numbers = #tpu.dot_dimension_numbers<[1], [0], [0], [1], [0, 0, 1, 1], [], []>} : vector<8x32xf32>, vector<32x128xf32>, vector<8x128xf32> -> vector<8x128xf32>
    %13 = arith.addf %11, %12 : vector<8x128xf32>
    %14 = vector.extract_strided_slice %13 {offsets = [0, 0], sizes = [8, 96], strides = [1, 1]} : vector<8x128xf32> to vector<8x96xf32>
    %cst_16 = arith.constant 0.000000e+00 : f32
    %15 = vector.broadcast %cst_16 : f32 to vector<8x96xf32>
    %16 = arith.subf %15, %14 : vector<8x96xf32>
    %17 = math.exp %16 : vector<8x96xf32>
    %cst_17 = arith.constant 1.000000e+00 : f32
    %18 = vector.broadcast %cst_17 : f32 to vector<8x96xf32>
    %19 = arith.addf %18, %17 : vector<8x96xf32>
    %cst_18 = arith.constant 1.000000e+00 : f32
    %20 = vector.broadcast %cst_18 : f32 to vector<8x96xf32>
    %21 = arith.divf %20, %19 : vector<8x96xf32>
    %22 = vector.extract_strided_slice %13 {offsets = [0, 96], sizes = [8, 32], strides = [1, 1]} : vector<8x128xf32> to vector<8x32xf32>
    %23 = math.tanh %22 : vector<8x32xf32>
    %24 = vector.extract_strided_slice %21 {offsets = [0, 0], sizes = [8, 32], strides = [1, 1]} : vector<8x96xf32> to vector<8x32xf32>
    %25 = vector.extract_strided_slice %21 {offsets = [0, 32], sizes = [8, 32], strides = [1, 1]} : vector<8x96xf32> to vector<8x32xf32>
    %26 = vector.extract_strided_slice %21 {offsets = [0, 64], sizes = [8, 32], strides = [1, 1]} : vector<8x96xf32> to vector<8x32xf32>
    %27 = arith.mulf %25, %10 : vector<8x32xf32>
    %28 = arith.mulf %24, %23 : vector<8x32xf32>
    %29 = arith.addf %27, %28 : vector<8x32xf32>
    %30 = math.tanh %29 : vector<8x32xf32>
    %31 = arith.mulf %26, %30 : vector<8x32xf32>
    %c56 = arith.constant 56 : index
    %c128 = arith.constant 128 : index
    %32 = vector.load %arg13[%c56, %c128] : memref<64x256xf32, #tpu.memory_space<vmem>>, vector<8x128xf32>
    %cst_19 = arith.constant dense<0.000000e+00> : vector<8x128xf32>
    %33 = tpu.matmul %10, %9, %cst_19 {dimension_numbers = #tpu.dot_dimension_numbers<[1], [0], [0], [1], [0, 0, 1, 1], [], []>} : vector<8x32xf32>, vector<32x128xf32>, vector<8x128xf32> -> vector<8x128xf32>
    %34 = arith.addf %32, %33 : vector<8x128xf32>
    %35 = vector.extract_strided_slice %34 {offsets = [0, 0], sizes = [8, 96], strides = [1, 1]} : vector<8x128xf32> to vector<8x96xf32>
    %cst_20 = arith.constant 0.000000e+00 : f32
    %36 = vector.broadcast %cst_20 : f32 to vector<8x96xf32>
    %37 = arith.subf %36, %35 : vector<8x96xf32>
    %38 = math.exp %37 : vector<8x96xf32>
    %cst_21 = arith.constant 1.000000e+00 : f32
    %39 = vector.broadcast %cst_21 : f32 to vector<8x96xf32>
    %40 = arith.addf %39, %38 : vector<8x96xf32>
    %cst_22 = arith.constant 1.000000e+00 : f32
    %41 = vector.broadcast %cst_22 : f32 to vector<8x96xf32>
    %42 = arith.divf %41, %40 : vector<8x96xf32>
    %43 = vector.extract_strided_slice %34 {offsets = [0, 96], sizes = [8, 32], strides = [1, 1]} : vector<8x128xf32> to vector<8x32xf32>
    %44 = math.tanh %43 : vector<8x32xf32>
    %45 = vector.extract_strided_slice %42 {offsets = [0, 0], sizes = [8, 32], strides = [1, 1]} : vector<8x96xf32> to vector<8x32xf32>
    %46 = vector.extract_strided_slice %42 {offsets = [0, 32], sizes = [8, 32], strides = [1, 1]} : vector<8x96xf32> to vector<8x32xf32>
    %47 = vector.extract_strided_slice %42 {offsets = [0, 64], sizes = [8, 32], strides = [1, 1]} : vector<8x96xf32> to vector<8x32xf32>
    %48 = arith.mulf %46, %10 : vector<8x32xf32>
    %49 = arith.mulf %45, %44 : vector<8x32xf32>
    %50 = arith.addf %48, %49 : vector<8x32xf32>
    %51 = math.tanh %50 : vector<8x32xf32>
    %52 = arith.mulf %47, %51 : vector<8x32xf32>
    %c0_23 = arith.constant 0 : index
    %c0_24 = arith.constant 0 : index
    %53 = vector.load %arg14[%c0_23, %c0_24] : memref<64x64xf32, #tpu.memory_space<vmem>>, vector<8x32xf32>
    tpu.vector_store %arg14[%c0_23, %c0_24], %31 {strides = array<i32>} : memref<64x64xf32, #tpu.memory_space<vmem>>, vector<8x32xf32>,
    %c56_25 = arith.constant 56 : index
    %c32 = arith.constant 32 : index
    %54 = vector.load %arg14[%c56_25, %c32] : memref<64x64xf32, #tpu.memory_space<vmem>>, vector<8x32xf32>
    tpu.vector_store %arg14[%c56_25, %c32], %52 {strides = array<i32>} : memref<64x64xf32, #tpu.memory_space<vmem>>, vector<8x32xf32>,
    %c8 = arith.constant 8 : index
    %c0_26 = arith.constant 0 : index
    %55 = vector.load %arg13[%c8, %c0_26] : memref<64x256xf32, #tpu.memory_space<vmem>>, vector<8x128xf32>
    %cst_27 = arith.constant dense<0.000000e+00> : vector<8x128xf32>
    %56 = tpu.matmul %31, %8, %cst_27 {dimension_numbers = #tpu.dot_dimension_numbers<[1], [0], [0], [1], [0, 0, 1, 1], [], []>} : vector<8x32xf32>, vector<32x128xf32>, vector<8x128xf32> -> vector<8x128xf32>
    %57 = arith.addf %55, %56 : vector<8x128xf32>
    %58 = vector.extract_strided_slice %57 {offsets = [0, 0], sizes = [8, 96], strides = [1, 1]} : vector<8x128xf32> to vector<8x96xf32>
    %cst_28 = arith.constant 0.000000e+00 : f32
    %59 = vector.broadcast %cst_28 : f32 to vector<8x96xf32>
    %60 = arith.subf %59, %58 : vector<8x96xf32>
    %61 = math.exp %60 : vector<8x96xf32>
    %cst_29 = arith.constant 1.000000e+00 : f32
    %62 = vector.broadcast %cst_29 : f32 to vector<8x96xf32>
    %63 = arith.addf %62, %61 : vector<8x96xf32>
    %cst_30 = arith.constant 1.000000e+00 : f32
    %64 = vector.broadcast %cst_30 : f32 to vector<8x96xf32>
    %65 = arith.divf %64, %63 : vector<8x96xf32>
    %66 = vector.extract_strided_slice %57 {offsets = [0, 96], sizes = [8, 32], strides = [1, 1]} : vector<8x128xf32> to vector<8x32xf32>
    %67 = math.tanh %66 : vector<8x32xf32>
    %68 = vector.extract_strided_slice %65 {offsets = [0, 0], sizes = [8, 32], strides = [1, 1]} : vector<8x96xf32> to vector<8x32xf32>
    %69 = vector.extract_strided_slice %65 {offsets = [0, 32], sizes = [8, 32], strides = [1, 1]} : vector<8x96xf32> to vector<8x32xf32>
    %70 = vector.extract_strided_slice %65 {offsets = [0, 64], sizes = [8, 32], strides = [1, 1]} : vector<8x96xf32> to vector<8x32xf32>
    %71 = arith.mulf %69, %29 : vector<8x32xf32>
    %72 = arith.mulf %68, %67 : vector<8x32xf32>
    %73 = arith.addf %71, %72 : vector<8x32xf32>
    %74 = math.tanh %73 : vector<8x32xf32>
    %75 = arith.mulf %70, %74 : vector<8x32xf32>
    %c48 = arith.constant 48 : index
    %c128_31 = arith.constant 128 : index
    %76 = vector.load %arg13[%c48, %c128_31] : memref<64x256xf32, #tpu.memory_space<vmem>>, vector<8x128xf32>
    %cst_32 = arith.constant dense<0.000000e+00> : vector<8x128xf32>
    %77 = tpu.matmul %52, %9, %cst_32 {dimension_numbers = #tpu.dot_dimension_numbers<[1], [0], [0], [1], [0, 0, 1, 1], [], []>} : vector<8x32xf32>, vector<32x128xf32>, vector<8x128xf32> -> vector<8x128xf32>
    %78 = arith.addf %76, %77 : vector<8x128xf32>
    %79 = vector.extract_strided_slice %78 {offsets = [0, 0], sizes = [8, 96], strides = [1, 1]} : vector<8x128xf32> to vector<8x96xf32>
    %cst_33 = arith.constant 0.000000e+00 : f32
    %80 = vector.broadcast %cst_33 : f32 to vector<8x96xf32>
    %81 = arith.subf %80, %79 : vector<8x96xf32>
    %82 = math.exp %81 : vector<8x96xf32>
    %cst_34 = arith.constant 1.000000e+00 : f32
    %83 = vector.broadcast %cst_34 : f32 to vector<8x96xf32>
    %84 = arith.addf %83, %82 : vector<8x96xf32>
    %cst_35 = arith.constant 1.000000e+00 : f32
    %85 = vector.broadcast %cst_35 : f32 to vector<8x96xf32>
    %86 = arith.divf %85, %84 : vector<8x96xf32>
    %87 = vector.extract_strided_slice %78 {offsets = [0, 96], sizes = [8, 32], strides = [1, 1]} : vector<8x128xf32> to vector<8x32xf32>
    %88 = math.tanh %87 : vector<8x32xf32>
    %89 = vector.extract_strided_slice %86 {offsets = [0, 0], sizes = [8, 32], strides = [1, 1]} : vector<8x96xf32> to vector<8x32xf32>
    %90 = vector.extract_strided_slice %86 {offsets = [0, 32], sizes = [8, 32], strides = [1, 1]} : vector<8x96xf32> to vector<8x32xf32>
    %91 = vector.extract_strided_slice %86 {offsets = [0, 64], sizes = [8, 32], strides = [1, 1]} : vector<8x96xf32> to vector<8x32xf32>
    %92 = arith.mulf %90, %50 : vector<8x32xf32>
    %93 = arith.mulf %89, %88 : vector<8x32xf32>
    %94 = arith.addf %92, %93 : vector<8x32xf32>
    %95 = math.tanh %94 : vector<8x32xf32>
    %96 = arith.mulf %91, %95 : vector<8x32xf32>
    %c8_36 = arith.constant 8 : index
    %c0_37 = arith.constant 0 : index
    %97 = vector.load %arg14[%c8_36, %c0_37] : memref<64x64xf32, #tpu.memory_space<vmem>>, vector<8x32xf32>
    tpu.vector_store %arg14[%c8_36, %c0_37], %75 {strides = array<i32>} : memref<64x64xf32, #tpu.memory_space<vmem>>, vector<8x32xf32>,
    %c48_38 = arith.constant 48 : index
    %c32_39 = arith.constant 32 : index
    %98 = vector.load %arg14[%c48_38, %c32_39] : memref<64x64xf32, #tpu.memory_space<vmem>>, vector<8x32xf32>
    tpu.vector_store %arg14[%c48_38, %c32_39], %96 {strides = array<i32>} : memref<64x64xf32, #tpu.memory_space<vmem>>, vector<8x32xf32>,
    %c16 = arith.constant 16 : index
    %c0_40 = arith.constant 0 : index
    %99 = vector.load %arg13[%c16, %c0_40] : memref<64x256xf32, #tpu.memory_space<vmem>>, vector<8x128xf32>
    %cst_41 = arith.constant dense<0.000000e+00> : vector<8x128xf32>
    %100 = tpu.matmul %75, %8, %cst_41 {dimension_numbers = #tpu.dot_dimension_numbers<[1], [0], [0], [1], [0, 0, 1, 1], [], []>} : vector<8x32xf32>, vector<32x128xf32>, vector<8x128xf32> -> vector<8x128xf32>
    %101 = arith.addf %99, %100 : vector<8x128xf32>
    %102 = vector.extract_strided_slice %101 {offsets = [0, 0], sizes = [8, 96], strides = [1, 1]} : vector<8x128xf32> to vector<8x96xf32>
    %cst_42 = arith.constant 0.000000e+00 : f32
    %103 = vector.broadcast %cst_42 : f32 to vector<8x96xf32>
    %104 = arith.subf %103, %102 : vector<8x96xf32>
    %105 = math.exp %104 : vector<8x96xf32>
    %cst_43 = arith.constant 1.000000e+00 : f32
    %106 = vector.broadcast %cst_43 : f32 to vector<8x96xf32>
    %107 = arith.addf %106, %105 : vector<8x96xf32>
    %cst_44 = arith.constant 1.000000e+00 : f32
    %108 = vector.broadcast %cst_44 : f32 to vector<8x96xf32>
    %109 = arith.divf %108, %107 : vector<8x96xf32>
    %110 = vector.extract_strided_slice %101 {offsets = [0, 96], sizes = [8, 32], strides = [1, 1]} : vector<8x128xf32> to vector<8x32xf32>
    %111 = math.tanh %110 : vector<8x32xf32>
    %112 = vector.extract_strided_slice %109 {offsets = [0, 0], sizes = [8, 32], strides = [1, 1]} : vector<8x96xf32> to vector<8x32xf32>
    %113 = vector.extract_strided_slice %109 {offsets = [0, 32], sizes = [8, 32], strides = [1, 1]} : vector<8x96xf32> to vector<8x32xf32>
    %114 = vector.extract_strided_slice %109 {offsets = [0, 64], sizes = [8, 32], strides = [1, 1]} : vector<8x96xf32> to vector<8x32xf32>
    %115 = arith.mulf %113, %73 : vector<8x32xf32>
    %116 = arith.mulf %112, %111 : vector<8x32xf32>
    %117 = arith.addf %115, %116 : vector<8x32xf32>
    %118 = math.tanh %117 : vector<8x32xf32>
    %119 = arith.mulf %114, %118 : vector<8x32xf32>
    %c40 = arith.constant 40 : index
    %c128_45 = arith.constant 128 : index
    %120 = vector.load %arg13[%c40, %c128_45] : memref<64x256xf32, #tpu.memory_space<vmem>>, vector<8x128xf32>
    %cst_46 = arith.constant dense<0.000000e+00> : vector<8x128xf32>
    %121 = tpu.matmul %96, %9, %cst_46 {dimension_numbers = #tpu.dot_dimension_numbers<[1], [0], [0], [1], [0, 0, 1, 1], [], []>} : vector<8x32xf32>, vector<32x128xf32>, vector<8x128xf32> -> vector<8x128xf32>
    %122 = arith.addf %120, %121 : vector<8x128xf32>
    %123 = vector.extract_strided_slice %122 {offsets = [0, 0], sizes = [8, 96], strides = [1, 1]} : vector<8x128xf32> to vector<8x96xf32>
    %cst_47 = arith.constant 0.000000e+00 : f32
    %124 = vector.broadcast %cst_47 : f32 to vector<8x96xf32>
    %125 = arith.subf %124, %123 : vector<8x96xf32>
    %126 = math.exp %125 : vector<8x96xf32>
    %cst_48 = arith.constant 1.000000e+00 : f32
    %127 = vector.broadcast %cst_48 : f32 to vector<8x96xf32>
    %128 = arith.addf %127, %126 : vector<8x96xf32>
    %cst_49 = arith.constant 1.000000e+00 : f32
    %129 = vector.broadcast %cst_49 : f32 to vector<8x96xf32>
    %130 = arith.divf %129, %128 : vector<8x96xf32>
    %131 = vector.extract_strided_slice %122 {offsets = [0, 96], sizes = [8, 32], strides = [1, 1]} : vector<8x128xf32> to vector<8x32xf32>
    %132 = math.tanh %131 : vector<8x32xf32>
    %133 = vector.extract_strided_slice %130 {offsets = [0, 0], sizes = [8, 32], strides = [1, 1]} : vector<8x96xf32> to vector<8x32xf32>
    %134 = vector.extract_strided_slice %130 {offsets = [0, 32], sizes = [8, 32], strides = [1, 1]} : vector<8x96xf32> to vector<8x32xf32>
    %135 = vector.extract_strided_slice %130 {offsets = [0, 64], sizes = [8, 32], strides = [1, 1]} : vector<8x96xf32> to vector<8x32xf32>
    %136 = arith.mulf %134, %94 : vector<8x32xf32>
    %137 = arith.mulf %133, %132 : vector<8x32xf32>
    %138 = arith.addf %136, %137 : vector<8x32xf32>
    %139 = math.tanh %138 : vector<8x32xf32>
    %140 = arith.mulf %135, %139 : vector<8x32xf32>
    %c16_50 = arith.constant 16 : index
    %c0_51 = arith.constant 0 : index
    %141 = vector.load %arg14[%c16_50, %c0_51] : memref<64x64xf32, #tpu.memory_space<vmem>>, vector<8x32xf32>
    tpu.vector_store %arg14[%c16_50, %c0_51], %119 {strides = array<i32>} : memref<64x64xf32, #tpu.memory_space<vmem>>, vector<8x32xf32>,
    %c40_52 = arith.constant 40 : index
    %c32_53 = arith.constant 32 : index
    %142 = vector.load %arg14[%c40_52, %c32_53] : memref<64x64xf32, #tpu.memory_space<vmem>>, vector<8x32xf32>
    tpu.vector_store %arg14[%c40_52, %c32_53], %140 {strides = array<i32>} : memref<64x64xf32, #tpu.memory_space<vmem>>, vector<8x32xf32>,
    %c24 = arith.constant 24 : index
    %c0_54 = arith.constant 0 : index
    %143 = vector.load %arg13[%c24, %c0_54] : memref<64x256xf32, #tpu.memory_space<vmem>>, vector<8x128xf32>
    %cst_55 = arith.constant dense<0.000000e+00> : vector<8x128xf32>
    %144 = tpu.matmul %119, %8, %cst_55 {dimension_numbers = #tpu.dot_dimension_numbers<[1], [0], [0], [1], [0, 0, 1, 1], [], []>} : vector<8x32xf32>, vector<32x128xf32>, vector<8x128xf32> -> vector<8x128xf32>
    %145 = arith.addf %143, %144 : vector<8x128xf32>
    %146 = vector.extract_strided_slice %145 {offsets = [0, 0], sizes = [8, 96], strides = [1, 1]} : vector<8x128xf32> to vector<8x96xf32>
    %cst_56 = arith.constant 0.000000e+00 : f32
    %147 = vector.broadcast %cst_56 : f32 to vector<8x96xf32>
    %148 = arith.subf %147, %146 : vector<8x96xf32>
    %149 = math.exp %148 : vector<8x96xf32>
    %cst_57 = arith.constant 1.000000e+00 : f32
    %150 = vector.broadcast %cst_57 : f32 to vector<8x96xf32>
    %151 = arith.addf %150, %149 : vector<8x96xf32>
    %cst_58 = arith.constant 1.000000e+00 : f32
    %152 = vector.broadcast %cst_58 : f32 to vector<8x96xf32>
    %153 = arith.divf %152, %151 : vector<8x96xf32>
    %154 = vector.extract_strided_slice %145 {offsets = [0, 96], sizes = [8, 32], strides = [1, 1]} : vector<8x128xf32> to vector<8x32xf32>
    %155 = math.tanh %154 : vector<8x32xf32>
    %156 = vector.extract_strided_slice %153 {offsets = [0, 0], sizes = [8, 32], strides = [1, 1]} : vector<8x96xf32> to vector<8x32xf32>
    %157 = vector.extract_strided_slice %153 {offsets = [0, 32], sizes = [8, 32], strides = [1, 1]} : vector<8x96xf32> to vector<8x32xf32>
    %158 = vector.extract_strided_slice %153 {offsets = [0, 64], sizes = [8, 32], strides = [1, 1]} : vector<8x96xf32> to vector<8x32xf32>
    %159 = arith.mulf %157, %117 : vector<8x32xf32>
    %160 = arith.mulf %156, %155 : vector<8x32xf32>
    %161 = arith.addf %159, %160 : vector<8x32xf32>
    %162 = math.tanh %161 : vector<8x32xf32>
    %163 = arith.mulf %158, %162 : vector<8x32xf32>
    %c32_59 = arith.constant 32 : index
    %c128_60 = arith.constant 128 : index
    %164 = vector.load %arg13[%c32_59, %c128_60] : memref<64x256xf32, #tpu.memory_space<vmem>>, vector<8x128xf32>
    %cst_61 = arith.constant dense<0.000000e+00> : vector<8x128xf32>
    %165 = tpu.matmul %140, %9, %cst_61 {dimension_numbers = #tpu.dot_dimension_numbers<[1], [0], [0], [1], [0, 0, 1, 1], [], []>} : vector<8x32xf32>, vector<32x128xf32>, vector<8x128xf32> -> vector<8x128xf32>
    %166 = arith.addf %164, %165 : vector<8x128xf32>
    %167 = vector.extract_strided_slice %166 {offsets = [0, 0], sizes = [8, 96], strides = [1, 1]} : vector<8x128xf32> to vector<8x96xf32>
    %cst_62 = arith.constant 0.000000e+00 : f32
    %168 = vector.broadcast %cst_62 : f32 to vector<8x96xf32>
    %169 = arith.subf %168, %167 : vector<8x96xf32>
    %170 = math.exp %169 : vector<8x96xf32>
    %cst_63 = arith.constant 1.000000e+00 : f32
    %171 = vector.broadcast %cst_63 : f32 to vector<8x96xf32>
    %172 = arith.addf %171, %170 : vector<8x96xf32>
    %cst_64 = arith.constant 1.000000e+00 : f32
    %173 = vector.broadcast %cst_64 : f32 to vector<8x96xf32>
    %174 = arith.divf %173, %172 : vector<8x96xf32>
    %175 = vector.extract_strided_slice %166 {offsets = [0, 96], sizes = [8, 32], strides = [1, 1]} : vector<8x128xf32> to vector<8x32xf32>
    %176 = math.tanh %175 : vector<8x32xf32>
    %177 = vector.extract_strided_slice %174 {offsets = [0, 0], sizes = [8, 32], strides = [1, 1]} : vector<8x96xf32> to vector<8x32xf32>
    %178 = vector.extract_strided_slice %174 {offsets = [0, 32], sizes = [8, 32], strides = [1, 1]} : vector<8x96xf32> to vector<8x32xf32>
    %179 = vector.extract_strided_slice %174 {offsets = [0, 64], sizes = [8, 32], strides = [1, 1]} : vector<8x96xf32> to vector<8x32xf32>
    %180 = arith.mulf %178, %138 : vector<8x32xf32>
    %181 = arith.mulf %177, %176 : vector<8x32xf32>
    %182 = arith.addf %180, %181 : vector<8x32xf32>
    %183 = math.tanh %182 : vector<8x32xf32>
    %184 = arith.mulf %179, %183 : vector<8x32xf32>
    %c24_65 = arith.constant 24 : index
    %c0_66 = arith.constant 0 : index
    %185 = vector.load %arg14[%c24_65, %c0_66] : memref<64x64xf32, #tpu.memory_space<vmem>>, vector<8x32xf32>
    tpu.vector_store %arg14[%c24_65, %c0_66], %163 {strides = array<i32>} : memref<64x64xf32, #tpu.memory_space<vmem>>, vector<8x32xf32>,
    %c32_67 = arith.constant 32 : index
    %c32_68 = arith.constant 32 : index
    %186 = vector.load %arg14[%c32_67, %c32_68] : memref<64x64xf32, #tpu.memory_space<vmem>>, vector<8x32xf32>
    tpu.vector_store %arg14[%c32_67, %c32_68], %184 {strides = array<i32>} : memref<64x64xf32, #tpu.memory_space<vmem>>, vector<8x32xf32>,
    %c32_69 = arith.constant 32 : index
    %c0_70 = arith.constant 0 : index
    %187 = vector.load %arg13[%c32_69, %c0_70] : memref<64x256xf32, #tpu.memory_space<vmem>>, vector<8x128xf32>
    %cst_71 = arith.constant dense<0.000000e+00> : vector<8x128xf32>
    %188 = tpu.matmul %163, %8, %cst_71 {dimension_numbers = #tpu.dot_dimension_numbers<[1], [0], [0], [1], [0, 0, 1, 1], [], []>} : vector<8x32xf32>, vector<32x128xf32>, vector<8x128xf32> -> vector<8x128xf32>
    %189 = arith.addf %187, %188 : vector<8x128xf32>
    %190 = vector.extract_strided_slice %189 {offsets = [0, 0], sizes = [8, 96], strides = [1, 1]} : vector<8x128xf32> to vector<8x96xf32>
    %cst_72 = arith.constant 0.000000e+00 : f32
    %191 = vector.broadcast %cst_72 : f32 to vector<8x96xf32>
    %192 = arith.subf %191, %190 : vector<8x96xf32>
    %193 = math.exp %192 : vector<8x96xf32>
    %cst_73 = arith.constant 1.000000e+00 : f32
    %194 = vector.broadcast %cst_73 : f32 to vector<8x96xf32>
    %195 = arith.addf %194, %193 : vector<8x96xf32>
    %cst_74 = arith.constant 1.000000e+00 : f32
    %196 = vector.broadcast %cst_74 : f32 to vector<8x96xf32>
    %197 = arith.divf %196, %195 : vector<8x96xf32>
    %198 = vector.extract_strided_slice %189 {offsets = [0, 96], sizes = [8, 32], strides = [1, 1]} : vector<8x128xf32> to vector<8x32xf32>
    %199 = math.tanh %198 : vector<8x32xf32>
    %200 = vector.extract_strided_slice %197 {offsets = [0, 0], sizes = [8, 32], strides = [1, 1]} : vector<8x96xf32> to vector<8x32xf32>
    %201 = vector.extract_strided_slice %197 {offsets = [0, 32], sizes = [8, 32], strides = [1, 1]} : vector<8x96xf32> to vector<8x32xf32>
    %202 = vector.extract_strided_slice %197 {offsets = [0, 64], sizes = [8, 32], strides = [1, 1]} : vector<8x96xf32> to vector<8x32xf32>
    %203 = arith.mulf %201, %161 : vector<8x32xf32>
    %204 = arith.mulf %200, %199 : vector<8x32xf32>
    %205 = arith.addf %203, %204 : vector<8x32xf32>
    %206 = math.tanh %205 : vector<8x32xf32>
    %207 = arith.mulf %202, %206 : vector<8x32xf32>
    %c24_75 = arith.constant 24 : index
    %c128_76 = arith.constant 128 : index
    %208 = vector.load %arg13[%c24_75, %c128_76] : memref<64x256xf32, #tpu.memory_space<vmem>>, vector<8x128xf32>
    %cst_77 = arith.constant dense<0.000000e+00> : vector<8x128xf32>
    %209 = tpu.matmul %184, %9, %cst_77 {dimension_numbers = #tpu.dot_dimension_numbers<[1], [0], [0], [1], [0, 0, 1, 1], [], []>} : vector<8x32xf32>, vector<32x128xf32>, vector<8x128xf32> -> vector<8x128xf32>
    %210 = arith.addf %208, %209 : vector<8x128xf32>
    %211 = vector.extract_strided_slice %210 {offsets = [0, 0], sizes = [8, 96], strides = [1, 1]} : vector<8x128xf32> to vector<8x96xf32>
    %cst_78 = arith.constant 0.000000e+00 : f32
    %212 = vector.broadcast %cst_78 : f32 to vector<8x96xf32>
    %213 = arith.subf %212, %211 : vector<8x96xf32>
    %214 = math.exp %213 : vector<8x96xf32>
    %cst_79 = arith.constant 1.000000e+00 : f32
    %215 = vector.broadcast %cst_79 : f32 to vector<8x96xf32>
    %216 = arith.addf %215, %214 : vector<8x96xf32>
    %cst_80 = arith.constant 1.000000e+00 : f32
    %217 = vector.broadcast %cst_80 : f32 to vector<8x96xf32>
    %218 = arith.divf %217, %216 : vector<8x96xf32>
    %219 = vector.extract_strided_slice %210 {offsets = [0, 96], sizes = [8, 32], strides = [1, 1]} : vector<8x128xf32> to vector<8x32xf32>
    %220 = math.tanh %219 : vector<8x32xf32>
    %221 = vector.extract_strided_slice %218 {offsets = [0, 0], sizes = [8, 32], strides = [1, 1]} : vector<8x96xf32> to vector<8x32xf32>
    %222 = vector.extract_strided_slice %218 {offsets = [0, 32], sizes = [8, 32], strides = [1, 1]} : vector<8x96xf32> to vector<8x32xf32>
    %223 = vector.extract_strided_slice %218 {offsets = [0, 64], sizes = [8, 32], strides = [1, 1]} : vector<8x96xf32> to vector<8x32xf32>
    %224 = arith.mulf %222, %182 : vector<8x32xf32>
    %225 = arith.mulf %221, %220 : vector<8x32xf32>
    %226 = arith.addf %224, %225 : vector<8x32xf32>
    %227 = math.tanh %226 : vector<8x32xf32>
    %228 = arith.mulf %223, %227 : vector<8x32xf32>
    %c32_81 = arith.constant 32 : index
    %c0_82 = arith.constant 0 : index
    %229 = vector.load %arg14[%c32_81, %c0_82] : memref<64x64xf32, #tpu.memory_space<vmem>>, vector<8x32xf32>
    tpu.vector_store %arg14[%c32_81, %c0_82], %207 {strides = array<i32>} : memref<64x64xf32, #tpu.memory_space<vmem>>, vector<8x32xf32>,
    %c24_83 = arith.constant 24 : index
    %c32_84 = arith.constant 32 : index
    %230 = vector.load %arg14[%c24_83, %c32_84] : memref<64x64xf32, #tpu.memory_space<vmem>>, vector<8x32xf32>
    tpu.vector_store %arg14[%c24_83, %c32_84], %228 {strides = array<i32>} : memref<64x64xf32, #tpu.memory_space<vmem>>, vector<8x32xf32>,
    %c40_85 = arith.constant 40 : index
    %c0_86 = arith.constant 0 : index
    %231 = vector.load %arg13[%c40_85, %c0_86] : memref<64x256xf32, #tpu.memory_space<vmem>>, vector<8x128xf32>
    %cst_87 = arith.constant dense<0.000000e+00> : vector<8x128xf32>
    %232 = tpu.matmul %207, %8, %cst_87 {dimension_numbers = #tpu.dot_dimension_numbers<[1], [0], [0], [1], [0, 0, 1, 1], [], []>} : vector<8x32xf32>, vector<32x128xf32>, vector<8x128xf32> -> vector<8x128xf32>
    %233 = arith.addf %231, %232 : vector<8x128xf32>
    %234 = vector.extract_strided_slice %233 {offsets = [0, 0], sizes = [8, 96], strides = [1, 1]} : vector<8x128xf32> to vector<8x96xf32>
    %cst_88 = arith.constant 0.000000e+00 : f32
    %235 = vector.broadcast %cst_88 : f32 to vector<8x96xf32>
    %236 = arith.subf %235, %234 : vector<8x96xf32>
    %237 = math.exp %236 : vector<8x96xf32>
    %cst_89 = arith.constant 1.000000e+00 : f32
    %238 = vector.broadcast %cst_89 : f32 to vector<8x96xf32>
    %239 = arith.addf %238, %237 : vector<8x96xf32>
    %cst_90 = arith.constant 1.000000e+00 : f32
    %240 = vector.broadcast %cst_90 : f32 to vector<8x96xf32>
    %241 = arith.divf %240, %239 : vector<8x96xf32>
    %242 = vector.extract_strided_slice %233 {offsets = [0, 96], sizes = [8, 32], strides = [1, 1]} : vector<8x128xf32> to vector<8x32xf32>
    %243 = math.tanh %242 : vector<8x32xf32>
    %244 = vector.extract_strided_slice %241 {offsets = [0, 0], sizes = [8, 32], strides = [1, 1]} : vector<8x96xf32> to vector<8x32xf32>
    %245 = vector.extract_strided_slice %241 {offsets = [0, 32], sizes = [8, 32], strides = [1, 1]} : vector<8x96xf32> to vector<8x32xf32>
    %246 = vector.extract_strided_slice %241 {offsets = [0, 64], sizes = [8, 32], strides = [1, 1]} : vector<8x96xf32> to vector<8x32xf32>
    %247 = arith.mulf %245, %205 : vector<8x32xf32>
    %248 = arith.mulf %244, %243 : vector<8x32xf32>
    %249 = arith.addf %247, %248 : vector<8x32xf32>
    %250 = math.tanh %249 : vector<8x32xf32>
    %251 = arith.mulf %246, %250 : vector<8x32xf32>
    %c16_91 = arith.constant 16 : index
    %c128_92 = arith.constant 128 : index
    %252 = vector.load %arg13[%c16_91, %c128_92] : memref<64x256xf32, #tpu.memory_space<vmem>>, vector<8x128xf32>
    %cst_93 = arith.constant dense<0.000000e+00> : vector<8x128xf32>
    %253 = tpu.matmul %228, %9, %cst_93 {dimension_numbers = #tpu.dot_dimension_numbers<[1], [0], [0], [1], [0, 0, 1, 1], [], []>} : vector<8x32xf32>, vector<32x128xf32>, vector<8x128xf32> -> vector<8x128xf32>
    %254 = arith.addf %252, %253 : vector<8x128xf32>
    %255 = vector.extract_strided_slice %254 {offsets = [0, 0], sizes = [8, 96], strides = [1, 1]} : vector<8x128xf32> to vector<8x96xf32>
    %cst_94 = arith.constant 0.000000e+00 : f32
    %256 = vector.broadcast %cst_94 : f32 to vector<8x96xf32>
    %257 = arith.subf %256, %255 : vector<8x96xf32>
    %258 = math.exp %257 : vector<8x96xf32>
    %cst_95 = arith.constant 1.000000e+00 : f32
    %259 = vector.broadcast %cst_95 : f32 to vector<8x96xf32>
    %260 = arith.addf %259, %258 : vector<8x96xf32>
    %cst_96 = arith.constant 1.000000e+00 : f32
    %261 = vector.broadcast %cst_96 : f32 to vector<8x96xf32>
    %262 = arith.divf %261, %260 : vector<8x96xf32>
    %263 = vector.extract_strided_slice %254 {offsets = [0, 96], sizes = [8, 32], strides = [1, 1]} : vector<8x128xf32> to vector<8x32xf32>
    %264 = math.tanh %263 : vector<8x32xf32>
    %265 = vector.extract_strided_slice %262 {offsets = [0, 0], sizes = [8, 32], strides = [1, 1]} : vector<8x96xf32> to vector<8x32xf32>
    %266 = vector.extract_strided_slice %262 {offsets = [0, 32], sizes = [8, 32], strides = [1, 1]} : vector<8x96xf32> to vector<8x32xf32>
    %267 = vector.extract_strided_slice %262 {offsets = [0, 64], sizes = [8, 32], strides = [1, 1]} : vector<8x96xf32> to vector<8x32xf32>
    %268 = arith.mulf %266, %226 : vector<8x32xf32>
    %269 = arith.mulf %265, %264 : vector<8x32xf32>
    %270 = arith.addf %268, %269 : vector<8x32xf32>
    %271 = math.tanh %270 : vector<8x32xf32>
    %272 = arith.mulf %267, %271 : vector<8x32xf32>
    %c40_97 = arith.constant 40 : index
    %c0_98 = arith.constant 0 : index
    %273 = vector.load %arg14[%c40_97, %c0_98] : memref<64x64xf32, #tpu.memory_space<vmem>>, vector<8x32xf32>
    tpu.vector_store %arg14[%c40_97, %c0_98], %251 {strides = array<i32>} : memref<64x64xf32, #tpu.memory_space<vmem>>, vector<8x32xf32>,
    %c16_99 = arith.constant 16 : index
    %c32_100 = arith.constant 32 : index
    %274 = vector.load %arg14[%c16_99, %c32_100] : memref<64x64xf32, #tpu.memory_space<vmem>>, vector<8x32xf32>
    tpu.vector_store %arg14[%c16_99, %c32_100], %272 {strides = array<i32>} : memref<64x64xf32, #tpu.memory_space<vmem>>, vector<8x32xf32>,
    %c48_101 = arith.constant 48 : index
    %c0_102 = arith.constant 0 : index
    %275 = vector.load %arg13[%c48_101, %c0_102] : memref<64x256xf32, #tpu.memory_space<vmem>>, vector<8x128xf32>
    %cst_103 = arith.constant dense<0.000000e+00> : vector<8x128xf32>
    %276 = tpu.matmul %251, %8, %cst_103 {dimension_numbers = #tpu.dot_dimension_numbers<[1], [0], [0], [1], [0, 0, 1, 1], [], []>} : vector<8x32xf32>, vector<32x128xf32>, vector<8x128xf32> -> vector<8x128xf32>
    %277 = arith.addf %275, %276 : vector<8x128xf32>
    %278 = vector.extract_strided_slice %277 {offsets = [0, 0], sizes = [8, 96], strides = [1, 1]} : vector<8x128xf32> to vector<8x96xf32>
    %cst_104 = arith.constant 0.000000e+00 : f32
    %279 = vector.broadcast %cst_104 : f32 to vector<8x96xf32>
    %280 = arith.subf %279, %278 : vector<8x96xf32>
    %281 = math.exp %280 : vector<8x96xf32>
    %cst_105 = arith.constant 1.000000e+00 : f32
    %282 = vector.broadcast %cst_105 : f32 to vector<8x96xf32>
    %283 = arith.addf %282, %281 : vector<8x96xf32>
    %cst_106 = arith.constant 1.000000e+00 : f32
    %284 = vector.broadcast %cst_106 : f32 to vector<8x96xf32>
    %285 = arith.divf %284, %283 : vector<8x96xf32>
    %286 = vector.extract_strided_slice %277 {offsets = [0, 96], sizes = [8, 32], strides = [1, 1]} : vector<8x128xf32> to vector<8x32xf32>
    %287 = math.tanh %286 : vector<8x32xf32>
    %288 = vector.extract_strided_slice %285 {offsets = [0, 0], sizes = [8, 32], strides = [1, 1]} : vector<8x96xf32> to vector<8x32xf32>
    %289 = vector.extract_strided_slice %285 {offsets = [0, 32], sizes = [8, 32], strides = [1, 1]} : vector<8x96xf32> to vector<8x32xf32>
    %290 = vector.extract_strided_slice %285 {offsets = [0, 64], sizes = [8, 32], strides = [1, 1]} : vector<8x96xf32> to vector<8x32xf32>
    %291 = arith.mulf %289, %249 : vector<8x32xf32>
    %292 = arith.mulf %288, %287 : vector<8x32xf32>
    %293 = arith.addf %291, %292 : vector<8x32xf32>
    %294 = math.tanh %293 : vector<8x32xf32>
    %295 = arith.mulf %290, %294 : vector<8x32xf32>
    %c8_107 = arith.constant 8 : index
    %c128_108 = arith.constant 128 : index
    %296 = vector.load %arg13[%c8_107, %c128_108] : memref<64x256xf32, #tpu.memory_space<vmem>>, vector<8x128xf32>
    %cst_109 = arith.constant dense<0.000000e+00> : vector<8x128xf32>
    %297 = tpu.matmul %272, %9, %cst_109 {dimension_numbers = #tpu.dot_dimension_numbers<[1], [0], [0], [1], [0, 0, 1, 1], [], []>} : vector<8x32xf32>, vector<32x128xf32>, vector<8x128xf32> -> vector<8x128xf32>
    %298 = arith.addf %296, %297 : vector<8x128xf32>
    %299 = vector.extract_strided_slice %298 {offsets = [0, 0], sizes = [8, 96], strides = [1, 1]} : vector<8x128xf32> to vector<8x96xf32>
    %cst_110 = arith.constant 0.000000e+00 : f32
    %300 = vector.broadcast %cst_110 : f32 to vector<8x96xf32>
    %301 = arith.subf %300, %299 : vector<8x96xf32>
    %302 = math.exp %301 : vector<8x96xf32>
    %cst_111 = arith.constant 1.000000e+00 : f32
    %303 = vector.broadcast %cst_111 : f32 to vector<8x96xf32>
    %304 = arith.addf %303, %302 : vector<8x96xf32>
    %cst_112 = arith.constant 1.000000e+00 : f32
    %305 = vector.broadcast %cst_112 : f32 to vector<8x96xf32>
    %306 = arith.divf %305, %304 : vector<8x96xf32>
    %307 = vector.extract_strided_slice %298 {offsets = [0, 96], sizes = [8, 32], strides = [1, 1]} : vector<8x128xf32> to vector<8x32xf32>
    %308 = math.tanh %307 : vector<8x32xf32>
    %309 = vector.extract_strided_slice %306 {offsets = [0, 0], sizes = [8, 32], strides = [1, 1]} : vector<8x96xf32> to vector<8x32xf32>
    %310 = vector.extract_strided_slice %306 {offsets = [0, 32], sizes = [8, 32], strides = [1, 1]} : vector<8x96xf32> to vector<8x32xf32>
    %311 = vector.extract_strided_slice %306 {offsets = [0, 64], sizes = [8, 32], strides = [1, 1]} : vector<8x96xf32> to vector<8x32xf32>
    %312 = arith.mulf %310, %270 : vector<8x32xf32>
    %313 = arith.mulf %309, %308 : vector<8x32xf32>
    %314 = arith.addf %312, %313 : vector<8x32xf32>
    %315 = math.tanh %314 : vector<8x32xf32>
    %316 = arith.mulf %311, %315 : vector<8x32xf32>
    %c48_113 = arith.constant 48 : index
    %c0_114 = arith.constant 0 : index
    %317 = vector.load %arg14[%c48_113, %c0_114] : memref<64x64xf32, #tpu.memory_space<vmem>>, vector<8x32xf32>
    tpu.vector_store %arg14[%c48_113, %c0_114], %295 {strides = array<i32>} : memref<64x64xf32, #tpu.memory_space<vmem>>, vector<8x32xf32>,
    %c8_115 = arith.constant 8 : index
    %c32_116 = arith.constant 32 : index
    %318 = vector.load %arg14[%c8_115, %c32_116] : memref<64x64xf32, #tpu.memory_space<vmem>>, vector<8x32xf32>
    tpu.vector_store %arg14[%c8_115, %c32_116], %316 {strides = array<i32>} : memref<64x64xf32, #tpu.memory_space<vmem>>, vector<8x32xf32>,
    %c56_117 = arith.constant 56 : index
    %c0_118 = arith.constant 0 : index
    %319 = vector.load %arg13[%c56_117, %c0_118] : memref<64x256xf32, #tpu.memory_space<vmem>>, vector<8x128xf32>
    %cst_119 = arith.constant dense<0.000000e+00> : vector<8x128xf32>
    %320 = tpu.matmul %295, %8, %cst_119 {dimension_numbers = #tpu.dot_dimension_numbers<[1], [0], [0], [1], [0, 0, 1, 1], [], []>} : vector<8x32xf32>, vector<32x128xf32>, vector<8x128xf32> -> vector<8x128xf32>
    %321 = arith.addf %319, %320 : vector<8x128xf32>
    %322 = vector.extract_strided_slice %321 {offsets = [0, 0], sizes = [8, 96], strides = [1, 1]} : vector<8x128xf32> to vector<8x96xf32>
    %cst_120 = arith.constant 0.000000e+00 : f32
    %323 = vector.broadcast %cst_120 : f32 to vector<8x96xf32>
    %324 = arith.subf %323, %322 : vector<8x96xf32>
    %325 = math.exp %324 : vector<8x96xf32>
    %cst_121 = arith.constant 1.000000e+00 : f32
    %326 = vector.broadcast %cst_121 : f32 to vector<8x96xf32>
    %327 = arith.addf %326, %325 : vector<8x96xf32>
    %cst_122 = arith.constant 1.000000e+00 : f32
    %328 = vector.broadcast %cst_122 : f32 to vector<8x96xf32>
    %329 = arith.divf %328, %327 : vector<8x96xf32>
    %330 = vector.extract_strided_slice %321 {offsets = [0, 96], sizes = [8, 32], strides = [1, 1]} : vector<8x128xf32> to vector<8x32xf32>
    %331 = math.tanh %330 : vector<8x32xf32>
    %332 = vector.extract_strided_slice %329 {offsets = [0, 0], sizes = [8, 32], strides = [1, 1]} : vector<8x96xf32> to vector<8x32xf32>
    %333 = vector.extract_strided_slice %329 {offsets = [0, 32], sizes = [8, 32], strides = [1, 1]} : vector<8x96xf32> to vector<8x32xf32>
    %334 = vector.extract_strided_slice %329 {offsets = [0, 64], sizes = [8, 32], strides = [1, 1]} : vector<8x96xf32> to vector<8x32xf32>
    %335 = arith.mulf %333, %293 : vector<8x32xf32>
    %336 = arith.mulf %332, %331 : vector<8x32xf32>
    %337 = arith.addf %335, %336 : vector<8x32xf32>
    %338 = math.tanh %337 : vector<8x32xf32>
    %339 = arith.mulf %334, %338 : vector<8x32xf32>
    %c0_123 = arith.constant 0 : index
    %c128_124 = arith.constant 128 : index
    %340 = vector.load %arg13[%c0_123, %c128_124] : memref<64x256xf32, #tpu.memory_space<vmem>>, vector<8x128xf32>
    %cst_125 = arith.constant dense<0.000000e+00> : vector<8x128xf32>
    %341 = tpu.matmul %316, %9, %cst_125 {dimension_numbers = #tpu.dot_dimension_numbers<[1], [0], [0], [1], [0, 0, 1, 1], [], []>} : vector<8x32xf32>, vector<32x128xf32>, vector<8x128xf32> -> vector<8x128xf32>
    %342 = arith.addf %340, %341 : vector<8x128xf32>
    %343 = vector.extract_strided_slice %342 {offsets = [0, 0], sizes = [8, 96], strides = [1, 1]} : vector<8x128xf32> to vector<8x96xf32>
    %cst_126 = arith.constant 0.000000e+00 : f32
    %344 = vector.broadcast %cst_126 : f32 to vector<8x96xf32>
    %345 = arith.subf %344, %343 : vector<8x96xf32>
    %346 = math.exp %345 : vector<8x96xf32>
    %cst_127 = arith.constant 1.000000e+00 : f32
    %347 = vector.broadcast %cst_127 : f32 to vector<8x96xf32>
    %348 = arith.addf %347, %346 : vector<8x96xf32>
    %cst_128 = arith.constant 1.000000e+00 : f32
    %349 = vector.broadcast %cst_128 : f32 to vector<8x96xf32>
    %350 = arith.divf %349, %348 : vector<8x96xf32>
    %351 = vector.extract_strided_slice %342 {offsets = [0, 96], sizes = [8, 32], strides = [1, 1]} : vector<8x128xf32> to vector<8x32xf32>
    %352 = math.tanh %351 : vector<8x32xf32>
    %353 = vector.extract_strided_slice %350 {offsets = [0, 0], sizes = [8, 32], strides = [1, 1]} : vector<8x96xf32> to vector<8x32xf32>
    %354 = vector.extract_strided_slice %350 {offsets = [0, 32], sizes = [8, 32], strides = [1, 1]} : vector<8x96xf32> to vector<8x32xf32>
    %355 = vector.extract_strided_slice %350 {offsets = [0, 64], sizes = [8, 32], strides = [1, 1]} : vector<8x96xf32> to vector<8x32xf32>
    %356 = arith.mulf %354, %314 : vector<8x32xf32>
    %357 = arith.mulf %353, %352 : vector<8x32xf32>
    %358 = arith.addf %356, %357 : vector<8x32xf32>
    %359 = math.tanh %358 : vector<8x32xf32>
    %360 = arith.mulf %355, %359 : vector<8x32xf32>
    %c56_129 = arith.constant 56 : index
    %c0_130 = arith.constant 0 : index
    %361 = vector.load %arg14[%c56_129, %c0_130] : memref<64x64xf32, #tpu.memory_space<vmem>>, vector<8x32xf32>
    tpu.vector_store %arg14[%c56_129, %c0_130], %339 {strides = array<i32>} : memref<64x64xf32, #tpu.memory_space<vmem>>, vector<8x32xf32>,
    %c0_131 = arith.constant 0 : index
    %c32_132 = arith.constant 32 : index
    %362 = vector.load %arg14[%c0_131, %c32_132] : memref<64x64xf32, #tpu.memory_space<vmem>>, vector<8x32xf32>
    tpu.vector_store %arg14[%c0_131, %c32_132], %360 {strides = array<i32>} : memref<64x64xf32, #tpu.memory_space<vmem>>, vector<8x32xf32>,
    %c0_133 = arith.constant 0 : index
    %c0_134 = arith.constant 0 : index
    %363 = vector.load %arg14[%c0_133, %c0_134] : memref<64x64xf32, #tpu.memory_space<vmem>>, vector<64x64xf32>
    %c0_135 = arith.constant 0 : index
    %c0_136 = arith.constant 0 : index
    %364 = vector.load %arg6[%c0_135, %c0_136] : memref<64x16xf32, #tpu.memory_space<vmem>>, vector<64x16xf32>
    %cst_137 = arith.constant dense<0.000000e+00> : vector<64x16xf32>
    %365 = tpu.matmul %363, %364, %cst_137 {dimension_numbers = #tpu.dot_dimension_numbers<[1], [0], [0], [1], [0, 0, 1, 1], [], []>} : vector<64x64xf32>, vector<64x16xf32>, vector<64x16xf32> -> vector<64x16xf32>
    %366 = math.tanh %365 : vector<64x16xf32>
    %c0_138 = arith.constant 0 : index
    %c0_139 = arith.constant 0 : index
    %367 = vector.load %arg7[%c0_138, %c0_139] : memref<16x4xf32, #tpu.memory_space<vmem>>, vector<16x4xf32>
    %cst_140 = arith.constant dense<0.000000e+00> : vector<64x4xf32>
    %368 = tpu.matmul %366, %367, %cst_140 {dimension_numbers = #tpu.dot_dimension_numbers<[1], [0], [0], [1], [0, 0, 1, 1], [], []>} : vector<64x16xf32>, vector<16x4xf32>, vector<64x4xf32> -> vector<64x4xf32>
    %c0_141 = arith.constant 0 : index
    %c0_142 = arith.constant 0 : index
    %369 = vector.load %arg8[%c0_141, %c0_142] : memref<1x4xf32, #tpu.memory_space<vmem>>, vector<1x4xf32>
    %370 = vector.broadcast %369 : vector<1x4xf32> to vector<64x4xf32>
    %371 = arith.addf %368, %370 : vector<64x4xf32>
    %372 = vector.shape_cast %371 : vector<64x4xf32> to vector<8x8x4xf32>
    %cst_143 = arith.constant dense<0xFF800000> : vector<8x4xf32>
    %373 = vector.multi_reduction <maximumf>, %372, %cst_143 [0] : vector<8x8x4xf32> to vector<8x4xf32>
    %374 = vector.shape_cast %373 : vector<8x4xf32> to vector<1x8x4xf32>
    %375 = vector.broadcast %374 : vector<1x8x4xf32> to vector<8x8x4xf32>
    %376 = arith.subf %372, %375 : vector<8x8x4xf32>
    %377 = math.exp %376 : vector<8x8x4xf32>
    %cst_144 = arith.constant dense<0.000000e+00> : vector<8x4xf32>
    %378 = vector.multi_reduction <add>, %377, %cst_144 [0] : vector<8x8x4xf32> to vector<8x4xf32>
    %379 = vector.shape_cast %378 : vector<8x4xf32> to vector<1x8x4xf32>
    %380 = tpu.reciprocal %379 {approx = true} : vector<1x8x4xf32> -> vector<1x8x4xf32>
    %381 = vector.broadcast %380 : vector<1x8x4xf32> to vector<8x8x4xf32>
    %382 = arith.mulf %377, %381 : vector<8x8x4xf32>
    %383 = vector.shape_cast %382 : vector<8x8x4xf32> to vector<64x4xf32>
    %c0_145 = arith.constant 0 : index
    %c0_146 = arith.constant 0 : index
    %c0_147 = arith.constant 0 : index
    %384 = vector.load %arg12[%c0_145, %c0_146, %c0_147] : memref<1x64x4xf32, #tpu.memory_space<vmem>>, vector<1x64x4xf32>
    %385 = vector.shape_cast %384 : vector<1x64x4xf32> to vector<64x4xf32>
    %386 = vector.shape_cast %383 : vector<64x4xf32> to vector<1x64x4xf32>
    tpu.vector_store %arg12[%c0_145, %c0_146, %c0_147], %386 {strides = array<i32>} : memref<1x64x4xf32, #tpu.memory_space<vmem>>, vector<1x64x4xf32>,
    %387 = vector.shape_cast %363 : vector<64x64xf32> to vector<8x8x64xf32>
    %388 = vector.extract_strided_slice %382 {offsets = [0, 0, 0], sizes = [8, 8, 1], strides = [1, 1, 1]} : vector<8x8x4xf32> to vector<8x8x1xf32>
    %389 = vector.broadcast %388 : vector<8x8x1xf32> to vector<8x8x64xf32>
    %390 = arith.mulf %389, %387 : vector<8x8x64xf32>
    %cst_148 = arith.constant dense<0.000000e+00> : vector<8x64xf32>
    %391 = vector.multi_reduction <add>, %390, %cst_148 [0] : vector<8x8x64xf32> to vector<8x64xf32>
    %c0_149 = arith.constant 0 : index
    %c0_150 = arith.constant 0 : index
    %392 = vector.load %arg15[%c0_149, %c0_150] : memref<8x256xf32, #tpu.memory_space<vmem>>, vector<8x64xf32>
    tpu.vector_store %arg15[%c0_149, %c0_150], %391 {strides = array<i32>} : memref<8x256xf32, #tpu.memory_space<vmem>>, vector<8x64xf32>,
    %393 = vector.extract_strided_slice %382 {offsets = [0, 0, 1], sizes = [8, 8, 1], strides = [1, 1, 1]} : vector<8x8x4xf32> to vector<8x8x1xf32>
    %394 = vector.broadcast %393 : vector<8x8x1xf32> to vector<8x8x64xf32>
    %395 = arith.mulf %394, %387 : vector<8x8x64xf32>
    %cst_151 = arith.constant dense<0.000000e+00> : vector<8x64xf32>
    %396 = vector.multi_reduction <add>, %395, %cst_151 [0] : vector<8x8x64xf32> to vector<8x64xf32>
    %c0_152 = arith.constant 0 : index
    %c64 = arith.constant 64 : index
    %397 = vector.load %arg15[%c0_152, %c64] : memref<8x256xf32, #tpu.memory_space<vmem>>, vector<8x64xf32>
    tpu.vector_store %arg15[%c0_152, %c64], %396 {strides = array<i32>} : memref<8x256xf32, #tpu.memory_space<vmem>>, vector<8x64xf32>,
    %398 = vector.extract_strided_slice %382 {offsets = [0, 0, 2], sizes = [8, 8, 1], strides = [1, 1, 1]} : vector<8x8x4xf32> to vector<8x8x1xf32>
    %399 = vector.broadcast %398 : vector<8x8x1xf32> to vector<8x8x64xf32>
    %400 = arith.mulf %399, %387 : vector<8x8x64xf32>
    %cst_153 = arith.constant dense<0.000000e+00> : vector<8x64xf32>
    %401 = vector.multi_reduction <add>, %400, %cst_153 [0] : vector<8x8x64xf32> to vector<8x64xf32>
    %c0_154 = arith.constant 0 : index
    %c128_155 = arith.constant 128 : index
    %402 = vector.load %arg15[%c0_154, %c128_155] : memref<8x256xf32, #tpu.memory_space<vmem>>, vector<8x64xf32>
    tpu.vector_store %arg15[%c0_154, %c128_155], %401 {strides = array<i32>} : memref<8x256xf32, #tpu.memory_space<vmem>>, vector<8x64xf32>,
    %403 = vector.extract_strided_slice %382 {offsets = [0, 0, 3], sizes = [8, 8, 1], strides = [1, 1, 1]} : vector<8x8x4xf32> to vector<8x8x1xf32>
    %404 = vector.broadcast %403 : vector<8x8x1xf32> to vector<8x8x64xf32>
    %405 = arith.mulf %404, %387 : vector<8x8x64xf32>
    %cst_156 = arith.constant dense<0.000000e+00> : vector<8x64xf32>
    %406 = vector.multi_reduction <add>, %405, %cst_156 [0] : vector<8x8x64xf32> to vector<8x64xf32>
    %c0_157 = arith.constant 0 : index
    %c192 = arith.constant 192 : index
    %407 = vector.load %arg15[%c0_157, %c192] : memref<8x256xf32, #tpu.memory_space<vmem>>, vector<8x64xf32>
    tpu.vector_store %arg15[%c0_157, %c192], %406 {strides = array<i32>} : memref<8x256xf32, #tpu.memory_space<vmem>>, vector<8x64xf32>,
    %c0_158 = arith.constant 0 : index
    %c0_159 = arith.constant 0 : index
    %408 = vector.load %arg15[%c0_158, %c0_159] : memref<8x256xf32, #tpu.memory_space<vmem>>, vector<8x256xf32>
    %c0_160 = arith.constant 0 : index
    %c0_161 = arith.constant 0 : index
    %409 = vector.load %arg9[%c0_160, %c0_161] : memref<256x5xf32, #tpu.memory_space<vmem>>, vector<256x5xf32>
    %cst_162 = arith.constant dense<0.000000e+00> : vector<8x5xf32>
    %410 = tpu.matmul %408, %409, %cst_162 {dimension_numbers = #tpu.dot_dimension_numbers<[1], [0], [0], [1], [0, 0, 1, 1], [], []>} : vector<8x256xf32>, vector<256x5xf32>, vector<8x5xf32> -> vector<8x5xf32>
    %c0_163 = arith.constant 0 : index
    %c0_164 = arith.constant 0 : index
    %411 = vector.load %arg10[%c0_163, %c0_164] : memref<1x5xf32, #tpu.memory_space<vmem>>, vector<1x5xf32>
    %412 = vector.broadcast %411 : vector<1x5xf32> to vector<8x5xf32>
    %413 = arith.addf %410, %412 : vector<8x5xf32>
    %cst_165 = arith.constant dense<0xFF800000> : vector<8xf32>
    %414 = vector.multi_reduction <maximumf>, %413, %cst_165 [1] : vector<8x5xf32> to vector<8xf32>
    %415 = vector.shape_cast %414 : vector<8xf32> to vector<8x1xf32>
    %416 = vector.broadcast %415 : vector<8x1xf32> to vector<8x5xf32>
    %417 = arith.subf %413, %416 : vector<8x5xf32>
    %418 = math.exp %417 : vector<8x5xf32>
    %cst_166 = arith.constant dense<0.000000e+00> : vector<8xf32>
    %419 = vector.multi_reduction <add>, %418, %cst_166 [1] : vector<8x5xf32> to vector<8xf32>
    %420 = vector.shape_cast %419 : vector<8xf32> to vector<8x1xf32>
    %421 = math.log %420 : vector<8x1xf32>
    %422 = arith.addf %421, %415 : vector<8x1xf32>
    %423 = vector.broadcast %422 : vector<8x1xf32> to vector<8x5xf32>
    %424 = arith.subf %413, %423 : vector<8x5xf32>
    %c0_167 = arith.constant 0 : index
    %c0_168 = arith.constant 0 : index
    %c0_169 = arith.constant 0 : index
    %425 = vector.load %arg11[%c0_167, %c0_168, %c0_169] : memref<1x8x5xf32, #tpu.memory_space<vmem>>, vector<1x8x5xf32>
    %426 = vector.shape_cast %425 : vector<1x8x5xf32> to vector<8x5xf32>
    %427 = vector.shape_cast %424 : vector<8x5xf32> to vector<1x8x5xf32>
    tpu.vector_store %arg11[%c0_167, %c0_168, %c0_169], %427 {strides = array<i32>} : memref<1x8x5xf32, #tpu.memory_space<vmem>>, vector<1x8x5xf32>,
    return
  }
  func.func @transform_0(%arg0: i32) -> (i32, i32, i32) {
    %c0_i32 = arith.constant 0 : i32
    %c0_i32_0 = arith.constant 0 : i32
    %c0_i32_1 = arith.constant 0 : i32
    return %arg0, %c0_i32, %c0_i32_0 : i32, i32, i32
  }
  func.func @transform_1(%arg0: i32) -> (i32, i32) {
    %c0_i32 = arith.constant 0 : i32
    %c0_i32_0 = arith.constant 0 : i32
    %c0_i32_1 = arith.constant 0 : i32
    return %c0_i32, %c0_i32_0 : i32, i32
  }
  func.func @transform_2(%arg0: i32) -> (i32, i32) {
    %c0_i32 = arith.constant 0 : i32
    %c0_i32_0 = arith.constant 0 : i32
    %c0_i32_1 = arith.constant 0 : i32
    return %c0_i32, %c0_i32_0 : i32, i32
  }
  func.func @transform_3(%arg0: i32) -> (i32, i32) {
    %c0_i32 = arith.constant 0 : i32
    %c0_i32_0 = arith.constant 0 : i32
    %c0_i32_1 = arith.constant 0 : i32
    return %c0_i32, %c0_i32_0 : i32, i32
  }
  func.func @transform_4(%arg0: i32) -> (i32, i32) {
    %c0_i32 = arith.constant 0 : i32
    %c0_i32_0 = arith.constant 0 : i32
    %c0_i32_1 = arith.constant 0 : i32
    return %c0_i32, %c0_i32_0 : i32, i32
  }
  func.func @transform_5(%arg0: i32) -> (i32, i32) {
    %c0_i32 = arith.constant 0 : i32
    %c0_i32_0 = arith.constant 0 : i32
    %c0_i32_1 = arith.constant 0 : i32
    return %c0_i32, %c0_i32_0 : i32, i32
  }
  func.func @transform_6(%arg0: i32) -> (i32, i32) {
    %c0_i32 = arith.constant 0 : i32
    %c0_i32_0 = arith.constant 0 : i32
    %c0_i32_1 = arith.constant 0 : i32
    return %c0_i32, %c0_i32_0 : i32, i32
  }
  func.func @transform_7(%arg0: i32) -> (i32, i32) {
    %c0_i32 = arith.constant 0 : i32
    %c0_i32_0 = arith.constant 0 : i32
    %c0_i32_1 = arith.constant 0 : i32
    return %c0_i32, %c0_i32_0 : i32, i32
  }
  func.func @transform_8(%arg0: i32) -> (i32, i32) {
    %c0_i32 = arith.constant 0 : i32
    %c0_i32_0 = arith.constant 0 : i32
    %c0_i32_1 = arith.constant 0 : i32
    return %c0_i32, %c0_i32_0 : i32, i32
  }
  func.func @transform_9(%arg0: i32) -> (i32, i32) {
    %c0_i32 = arith.constant 0 : i32
    %c0_i32_0 = arith.constant 0 : i32
    %c0_i32_1 = arith.constant 0 : i32
    return %c0_i32, %c0_i32_0 : i32, i32
  }
  func.func @transform_10(%arg0: i32) -> (i32, i32, i32) {
    %c0_i32 = arith.constant 0 : i32
    %c0_i32_0 = arith.constant 0 : i32
    %c0_i32_1 = arith.constant 0 : i32
    return %arg0, %c0_i32, %c0_i32_0 : i32, i32, i32
  }
  func.func @transform_11(%arg0: i32) -> (i32, i32, i32) {
    %c0_i32 = arith.constant 0 : i32
    %c0_i32_0 = arith.constant 0 : i32
    %c0_i32_1 = arith.constant 0 : i32
    return %arg0, %c0_i32, %c0_i32_0 : i32, i32, i32
  }
}

module attributes {stable_mosaic.version = 11 : i64} {
  func.func @_model_kernel(%arg0: i32, %arg1: memref<1x64x32xf32, #tpu.memory_space<vmem>>, %arg2: memref<32x256xf32, #tpu.memory_space<vmem>>, %arg3: memref<1x256xf32, #tpu.memory_space<vmem>>, %arg4: memref<32x128xf32, #tpu.memory_space<vmem>>, %arg5: memref<32x128xf32, #tpu.memory_space<vmem>>, %arg6: memref<64x16xf32, #tpu.memory_space<vmem>>, %arg7: memref<16x4xf32, #tpu.memory_space<vmem>>, %arg8: memref<1x4xf32, #tpu.memory_space<vmem>>, %arg9: memref<256x5xf32, #tpu.memory_space<vmem>>, %arg10: memref<1x5xf32, #tpu.memory_space<vmem>>, %arg11: memref<1x8x5xf32, #tpu.memory_space<vmem>>, %arg12: memref<1x64x4xf32, #tpu.memory_space<vmem>>, %arg13: memref<64x256xf32, #tpu.memory_space<vmem>>, %arg14: memref<64x64xf32, #tpu.memory_space<vmem>>, %arg15: memref<8x256xf32, #tpu.memory_space<vmem>>) attributes {dimension_semantics = [#tpu.dimension_semantics<parallel>], iteration_bounds = array<i64: 1>, scalar_prefetch = 0 : i64, scratch_operands = 3 : i64, tpu.core_type = #tpu.core_type<tc>, window_params = [{transform_indices = @transform_0, window_bounds = array<i64: 1, 64, 32>}, {pipeline_mode = #tpu.pipeline_mode<synchronous>, transform_indices = @transform_1, window_bounds = array<i64: 32, 256>}, {pipeline_mode = #tpu.pipeline_mode<synchronous>, transform_indices = @transform_2, window_bounds = array<i64: 1, 256>}, {pipeline_mode = #tpu.pipeline_mode<synchronous>, transform_indices = @transform_3, window_bounds = array<i64: 32, 128>}, {pipeline_mode = #tpu.pipeline_mode<synchronous>, transform_indices = @transform_4, window_bounds = array<i64: 32, 128>}, {pipeline_mode = #tpu.pipeline_mode<synchronous>, transform_indices = @transform_5, window_bounds = array<i64: 64, 16>}, {pipeline_mode = #tpu.pipeline_mode<synchronous>, transform_indices = @transform_6, window_bounds = array<i64: 16, 4>}, {pipeline_mode = #tpu.pipeline_mode<synchronous>, transform_indices = @transform_7, window_bounds = array<i64: 1, 4>}, {pipeline_mode = #tpu.pipeline_mode<synchronous>, transform_indices = @transform_8, window_bounds = array<i64: 256, 5>}, {pipeline_mode = #tpu.pipeline_mode<synchronous>, transform_indices = @transform_9, window_bounds = array<i64: 1, 5>}, {transform_indices = @transform_10, window_bounds = array<i64: 1, 8, 5>}, {transform_indices = @transform_11, window_bounds = array<i64: 1, 64, 4>}]} {
    %c0 = arith.constant 0 : index
    %c0_0 = arith.constant 0 : index
    %c0_1 = arith.constant 0 : index
    %0 = vector.load %arg1[%c0, %c0_0, %c0_1] : memref<1x64x32xf32, #tpu.memory_space<vmem>>, vector<1x64x32xf32>
    %1 = vector.shape_cast %0 : vector<1x64x32xf32> to vector<64x32xf32>
    %c0_2 = arith.constant 0 : index
    %c0_3 = arith.constant 0 : index
    %2 = vector.load %arg2[%c0_2, %c0_3] : memref<32x256xf32, #tpu.memory_space<vmem>>, vector<32x256xf32>
    %cst = arith.constant dense<0.000000e+00> : vector<64x256xf32>
    %3 = tpu.matmul %1, %2, %cst {dimension_numbers = #tpu.dot_dimension_numbers<[1], [0], [0], [1], [0, 0, 1, 1], [], []>} : vector<64x32xf32>, vector<32x256xf32>, vector<64x256xf32> -> vector<64x256xf32>
    %c0_4 = arith.constant 0 : index
    %c0_5 = arith.constant 0 : index
    %4 = vector.load %arg3[%c0_4, %c0_5] : memref<1x256xf32, #tpu.memory_space<vmem>>, vector<1x256xf32>
    %5 = vector.broadcast %4 : vector<1x256xf32> to vector<64x256xf32>
    %6 = arith.addf %3, %5 : vector<64x256xf32>
    %c0_6 = arith.constant 0 : index
    %c0_7 = arith.constant 0 : index
    %7 = vector.load %arg13[%c0_6, %c0_7] : memref<64x256xf32, #tpu.memory_space<vmem>>, vector<64x256xf32>
    tpu.vector_store %arg13[%c0_6, %c0_7], %6 {strides = array<i32>} : memref<64x256xf32, #tpu.memory_space<vmem>>, vector<64x256xf32>,
    %c0_8 = arith.constant 0 : index
    %c0_9 = arith.constant 0 : index
    %8 = vector.load %arg4[%c0_8, %c0_9] : memref<32x128xf32, #tpu.memory_space<vmem>>, vector<32x128xf32>
    %c0_10 = arith.constant 0 : index
    %c0_11 = arith.constant 0 : index
    %9 = vector.load %arg5[%c0_10, %c0_11] : memref<32x128xf32, #tpu.memory_space<vmem>>, vector<32x128xf32>
    %cst_12 = arith.constant 0.000000e+00 : f32
    %10 = vector.broadcast %cst_12 : f32 to vector<8x32xf32>
    %c0_13 = arith.constant 0 : index
    %c0_14 = arith.constant 0 : index
    %11 = vector.load %arg13[%c0_13, %c0_14] : memref<64x256xf32, #tpu.memory_space<vmem>>, vector<8x128xf32>
    %cst_15 = arith.constant dense<0.000000e+00> : vector<8x128xf32>
    %12 = tpu.matmul %10, %8, %cst_15 {dimension_numbers = #tpu.dot_dimension_numbers<[1], [0], [0], [1], [0, 0, 1, 1], [], []>} : vector<8x32xf32>, vector<32x128xf32>, vector<8x128xf32> -> vector<8x128xf32>
    %13 = arith.addf %11, %12 : vector<8x128xf32>
    %14 = vector.extract_strided_slice %13 {offsets = [0, 0], sizes = [8, 96], strides = [1, 1]} : vector<8x128xf32> to vector<8x96xf32>
    %cst_16 = arith.constant 0.000000e+00 : f32
    %15 = vector.broadcast %cst_16 : f32 to vector<8x96xf32>
    %16 = arith.subf %15, %14 : vector<8x96xf32>
    %17 = math.exp %16 : vector<8x96xf32>
    %cst_17 = arith.constant 1.000000e+00 : f32
    %18 = vector.broadcast %cst_17 : f32 to vector<8x96xf32>
    %19 = arith.addf %18, %17 : vector<8x96xf32>
    %cst_18 = arith.constant 1.000000e+00 : f32
    %20 = vector.broadcast %cst_18 : f32 to vector<8x96xf32>
    %21 = arith.divf %20, %19 : vector<8x96xf32>
    %22 = vector.extract_strided_slice %13 {offsets = [0, 96], sizes = [8, 32], strides = [1, 1]} : vector<8x128xf32> to vector<8x32xf32>
    %23 = math.tanh %22 : vector<8x32xf32>
    %24 = vector.extract_strided_slice %21 {offsets = [0, 0], sizes = [8, 32], strides = [1, 1]} : vector<8x96xf32> to vector<8x32xf32>
    %25 = vector.extract_strided_slice %21 {offsets = [0, 32], sizes = [8, 32], strides = [1, 1]} : vector<8x96xf32> to vector<8x32xf32>
    %26 = vector.extract_strided_slice %21 {offsets = [0, 64], sizes = [8, 32], strides = [1, 1]} : vector<8x96xf32> to vector<8x32xf32>
    %27 = arith.mulf %25, %10 : vector<8x32xf32>
    %28 = arith.mulf %24, %23 : vector<8x32xf32>
    %29 = arith.addf %27, %28 : vector<8x32xf32>
    %30 = math.tanh %29 : vector<8x32xf32>
    %31 = arith.mulf %26, %30 : vector<8x32xf32>
    %c56 = arith.constant 56 : index
    %c128 = arith.constant 128 : index
    %32 = vector.load %arg13[%c56, %c128] : memref<64x256xf32, #tpu.memory_space<vmem>>, vector<8x128xf32>
    %cst_19 = arith.constant dense<0.000000e+00> : vector<8x128xf32>
    %33 = tpu.matmul %10, %9, %cst_19 {dimension_numbers = #tpu.dot_dimension_numbers<[1], [0], [0], [1], [0, 0, 1, 1], [], []>} : vector<8x32xf32>, vector<32x128xf32>, vector<8x128xf32> -> vector<8x128xf32>
    %34 = arith.addf %32, %33 : vector<8x128xf32>
    %35 = vector.extract_strided_slice %34 {offsets = [0, 0], sizes = [8, 96], strides = [1, 1]} : vector<8x128xf32> to vector<8x96xf32>
    %cst_20 = arith.constant 0.000000e+00 : f32
    %36 = vector.broadcast %cst_20 : f32 to vector<8x96xf32>
    %37 = arith.subf %36, %35 : vector<8x96xf32>
    %38 = math.exp %37 : vector<8x96xf32>
    %cst_21 = arith.constant 1.000000e+00 : f32
    %39 = vector.broadcast %cst_21 : f32 to vector<8x96xf32>
    %40 = arith.addf %39, %38 : vector<8x96xf32>
    %cst_22 = arith.constant 1.000000e+00 : f32
    %41 = vector.broadcast %cst_22 : f32 to vector<8x96xf32>
    %42 = arith.divf %41, %40 : vector<8x96xf32>
    %43 = vector.extract_strided_slice %34 {offsets = [0, 96], sizes = [8, 32], strides = [1, 1]} : vector<8x128xf32> to vector<8x32xf32>
    %44 = math.tanh %43 : vector<8x32xf32>
    %45 = vector.extract_strided_slice %42 {offsets = [0, 0], sizes = [8, 32], strides = [1, 1]} : vector<8x96xf32> to vector<8x32xf32>
    %46 = vector.extract_strided_slice %42 {offsets = [0, 32], sizes = [8, 32], strides = [1, 1]} : vector<8x96xf32> to vector<8x32xf32>
    %47 = vector.extract_strided_slice %42 {offsets = [0, 64], sizes = [8, 32], strides = [1, 1]} : vector<8x96xf32> to vector<8x32xf32>
    %48 = arith.mulf %46, %10 : vector<8x32xf32>
    %49 = arith.mulf %45, %44 : vector<8x32xf32>
    %50 = arith.addf %48, %49 : vector<8x32xf32>
    %51 = math.tanh %50 : vector<8x32xf32>
    %52 = arith.mulf %47, %51 : vector<8x32xf32>
    %c0_23 = arith.constant 0 : index
    %c0_24 = arith.constant 0 : index
    %53 = vector.load %arg14[%c0_23, %c0_24] : memref<64x64xf32, #tpu.memory_space<vmem>>, vector<8x32xf32>
    tpu.vector_store %arg14[%c0_23, %c0_24], %31 {strides = array<i32>} : memref<64x64xf32, #tpu.memory_space<vmem>>, vector<8x32xf32>,
    %c56_25 = arith.constant 56 : index
    %c32 = arith.constant 32 : index
    %54 = vector.load %arg14[%c56_25, %c32] : memref<64x64xf32, #tpu.memory_space<vmem>>, vector<8x32xf32>
    tpu.vector_store %arg14[%c56_25, %c32], %52 {strides = array<i32>} : memref<64x64xf32, #tpu.memory_space<vmem>>, vector<8x32xf32>,
    %c8 = arith.constant 8 : index
    %c0_26 = arith.constant 0 : index
    %55 = vector.load %arg13[%c8, %c0_26] : memref<64x256xf32, #tpu.memory_space<vmem>>, vector<8x128xf32>
    %cst_27 = arith.constant dense<0.000000e+00> : vector<8x128xf32>
    %56 = tpu.matmul %31, %8, %cst_27 {dimension_numbers = #tpu.dot_dimension_numbers<[1], [0], [0], [1], [0, 0, 1, 1], [], []>} : vector<8x32xf32>, vector<32x128xf32>, vector<8x128xf32> -> vector<8x128xf32>
    %57 = arith.addf %55, %56 : vector<8x128xf32>
    %58 = vector.extract_strided_slice %57 {offsets = [0, 0], sizes = [8, 96], strides = [1, 1]} : vector<8x128xf32> to vector<8x96xf32>
    %cst_28 = arith.constant 0.000000e+00 : f32
    %59 = vector.broadcast %cst_28 : f32 to vector<8x96xf32>
    %60 = arith.subf %59, %58 : vector<8x96xf32>
    %61 = math.exp %60 : vector<8x96xf32>
    %cst_29 = arith.constant 1.000000e+00 : f32
    %62 = vector.broadcast %cst_29 : f32 to vector<8x96xf32>
    %63 = arith.addf %62, %61 : vector<8x96xf32>
    %cst_30 = arith.constant 1.000000e+00 : f32
    %64 = vector.broadcast %cst_30 : f32 to vector<8x96xf32>
    %65 = arith.divf %64, %63 : vector<8x96xf32>
    %66 = vector.extract_strided_slice %57 {offsets = [0, 96], sizes = [8, 32], strides = [1, 1]} : vector<8x128xf32> to vector<8x32xf32>
    %67 = math.tanh %66 : vector<8x32xf32>
    %68 = vector.extract_strided_slice %65 {offsets = [0, 0], sizes = [8, 32], strides = [1, 1]} : vector<8x96xf32> to vector<8x32xf32>
    %69 = vector.extract_strided_slice %65 {offsets = [0, 32], sizes = [8, 32], strides = [1, 1]} : vector<8x96xf32> to vector<8x32xf32>
    %70 = vector.extract_strided_slice %65 {offsets = [0, 64], sizes = [8, 32], strides = [1, 1]} : vector<8x96xf32> to vector<8x32xf32>
    %71 = arith.mulf %69, %29 : vector<8x32xf32>
    %72 = arith.mulf %68, %67 : vector<8x32xf32>
    %73 = arith.addf %71, %72 : vector<8x32xf32>
    %74 = math.tanh %73 : vector<8x32xf32>
    %75 = arith.mulf %70, %74 : vector<8x32xf32>
    %c48 = arith.constant 48 : index
    %c128_31 = arith.constant 128 : index
    %76 = vector.load %arg13[%c48, %c128_31] : memref<64x256xf32, #tpu.memory_space<vmem>>, vector<8x128xf32>
    %cst_32 = arith.constant dense<0.000000e+00> : vector<8x128xf32>
    %77 = tpu.matmul %52, %9, %cst_32 {dimension_numbers = #tpu.dot_dimension_numbers<[1], [0], [0], [1], [0, 0, 1, 1], [], []>} : vector<8x32xf32>, vector<32x128xf32>, vector<8x128xf32> -> vector<8x128xf32>
    %78 = arith.addf %76, %77 : vector<8x128xf32>
    %79 = vector.extract_strided_slice %78 {offsets = [0, 0], sizes = [8, 96], strides = [1, 1]} : vector<8x128xf32> to vector<8x96xf32>
    %cst_33 = arith.constant 0.000000e+00 : f32
    %80 = vector.broadcast %cst_33 : f32 to vector<8x96xf32>
    %81 = arith.subf %80, %79 : vector<8x96xf32>
    %82 = math.exp %81 : vector<8x96xf32>
    %cst_34 = arith.constant 1.000000e+00 : f32
    %83 = vector.broadcast %cst_34 : f32 to vector<8x96xf32>
    %84 = arith.addf %83, %82 : vector<8x96xf32>
    %cst_35 = arith.constant 1.000000e+00 : f32
    %85 = vector.broadcast %cst_35 : f32 to vector<8x96xf32>
    %86 = arith.divf %85, %84 : vector<8x96xf32>
    %87 = vector.extract_strided_slice %78 {offsets = [0, 96], sizes = [8, 32], strides = [1, 1]} : vector<8x128xf32> to vector<8x32xf32>
    %88 = math.tanh %87 : vector<8x32xf32>
    %89 = vector.extract_strided_slice %86 {offsets = [0, 0], sizes = [8, 32], strides = [1, 1]} : vector<8x96xf32> to vector<8x32xf32>
    %90 = vector.extract_strided_slice %86 {offsets = [0, 32], sizes = [8, 32], strides = [1, 1]} : vector<8x96xf32> to vector<8x32xf32>
    %91 = vector.extract_strided_slice %86 {offsets = [0, 64], sizes = [8, 32], strides = [1, 1]} : vector<8x96xf32> to vector<8x32xf32>
    %92 = arith.mulf %90, %50 : vector<8x32xf32>
    %93 = arith.mulf %89, %88 : vector<8x32xf32>
    %94 = arith.addf %92, %93 : vector<8x32xf32>
    %95 = math.tanh %94 : vector<8x32xf32>
    %96 = arith.mulf %91, %95 : vector<8x32xf32>
    %c8_36 = arith.constant 8 : index
    %c0_37 = arith.constant 0 : index
    %97 = vector.load %arg14[%c8_36, %c0_37] : memref<64x64xf32, #tpu.memory_space<vmem>>, vector<8x32xf32>
    tpu.vector_store %arg14[%c8_36, %c0_37], %75 {strides = array<i32>} : memref<64x64xf32, #tpu.memory_space<vmem>>, vector<8x32xf32>,
    %c48_38 = arith.constant 48 : index
    %c32_39 = arith.constant 32 : index
    %98 = vector.load %arg14[%c48_38, %c32_39] : memref<64x64xf32, #tpu.memory_space<vmem>>, vector<8x32xf32>
    tpu.vector_store %arg14[%c48_38, %c32_39], %96 {strides = array<i32>} : memref<64x64xf32, #tpu.memory_space<vmem>>, vector<8x32xf32>,
    %c16 = arith.constant 16 : index
    %c0_40 = arith.constant 0 : index
    %99 = vector.load %arg13[%c16, %c0_40] : memref<64x256xf32, #tpu.memory_space<vmem>>, vector<8x128xf32>
    %cst_41 = arith.constant dense<0.000000e+00> : vector<8x128xf32>
    %100 = tpu.matmul %75, %8, %cst_41 {dimension_numbers = #tpu.dot_dimension_numbers<[1], [0], [0], [1], [0, 0, 1, 1], [], []>} : vector<8x32xf32>, vector<32x128xf32>, vector<8x128xf32> -> vector<8x128xf32>
    %101 = arith.addf %99, %100 : vector<8x128xf32>
    %102 = vector.extract_strided_slice %101 {offsets = [0, 0], sizes = [8, 96], strides = [1, 1]} : vector<8x128xf32> to vector<8x96xf32>
    %cst_42 = arith.constant 0.000000e+00 : f32
    %103 = vector.broadcast %cst_42 : f32 to vector<8x96xf32>
    %104 = arith.subf %103, %102 : vector<8x96xf32>
    %105 = math.exp %104 : vector<8x96xf32>
    %cst_43 = arith.constant 1.000000e+00 : f32
    %106 = vector.broadcast %cst_43 : f32 to vector<8x96xf32>
    %107 = arith.addf %106, %105 : vector<8x96xf32>
    %cst_44 = arith.constant 1.000000e+00 : f32
    %108 = vector.broadcast %cst_44 : f32 to vector<8x96xf32>
    %109 = arith.divf %108, %107 : vector<8x96xf32>
    %110 = vector.extract_strided_slice %101 {offsets = [0, 96], sizes = [8, 32], strides = [1, 1]} : vector<8x128xf32> to vector<8x32xf32>
    %111 = math.tanh %110 : vector<8x32xf32>
    %112 = vector.extract_strided_slice %109 {offsets = [0, 0], sizes = [8, 32], strides = [1, 1]} : vector<8x96xf32> to vector<8x32xf32>
    %113 = vector.extract_strided_slice %109 {offsets = [0, 32], sizes = [8, 32], strides = [1, 1]} : vector<8x96xf32> to vector<8x32xf32>
    %114 = vector.extract_strided_slice %109 {offsets = [0, 64], sizes = [8, 32], strides = [1, 1]} : vector<8x96xf32> to vector<8x32xf32>
    %115 = arith.mulf %113, %73 : vector<8x32xf32>
    %116 = arith.mulf %112, %111 : vector<8x32xf32>
    %117 = arith.addf %115, %116 : vector<8x32xf32>
    %118 = math.tanh %117 : vector<8x32xf32>
    %119 = arith.mulf %114, %118 : vector<8x32xf32>
    %c40 = arith.constant 40 : index
    %c128_45 = arith.constant 128 : index
    %120 = vector.load %arg13[%c40, %c128_45] : memref<64x256xf32, #tpu.memory_space<vmem>>, vector<8x128xf32>
    %cst_46 = arith.constant dense<0.000000e+00> : vector<8x128xf32>
    %121 = tpu.matmul %96, %9, %cst_46 {dimension_numbers = #tpu.dot_dimension_numbers<[1], [0], [0], [1], [0, 0, 1, 1], [], []>} : vector<8x32xf32>, vector<32x128xf32>, vector<8x128xf32> -> vector<8x128xf32>
    %122 = arith.addf %120, %121 : vector<8x128xf32>
    %123 = vector.extract_strided_slice %122 {offsets = [0, 0], sizes = [8, 96], strides = [1, 1]} : vector<8x128xf32> to vector<8x96xf32>
    %cst_47 = arith.constant 0.000000e+00 : f32
    %124 = vector.broadcast %cst_47 : f32 to vector<8x96xf32>
    %125 = arith.subf %124, %123 : vector<8x96xf32>
    %126 = math.exp %125 : vector<8x96xf32>
    %cst_48 = arith.constant 1.000000e+00 : f32
    %127 = vector.broadcast %cst_48 : f32 to vector<8x96xf32>
    %128 = arith.addf %127, %126 : vector<8x96xf32>
    %cst_49 = arith.constant 1.000000e+00 : f32
    %129 = vector.broadcast %cst_49 : f32 to vector<8x96xf32>
    %130 = arith.divf %129, %128 : vector<8x96xf32>
    %131 = vector.extract_strided_slice %122 {offsets = [0, 96], sizes = [8, 32], strides = [1, 1]} : vector<8x128xf32> to vector<8x32xf32>
    %132 = math.tanh %131 : vector<8x32xf32>
    %133 = vector.extract_strided_slice %130 {offsets = [0, 0], sizes = [8, 32], strides = [1, 1]} : vector<8x96xf32> to vector<8x32xf32>
    %134 = vector.extract_strided_slice %130 {offsets = [0, 32], sizes = [8, 32], strides = [1, 1]} : vector<8x96xf32> to vector<8x32xf32>
    %135 = vector.extract_strided_slice %130 {offsets = [0, 64], sizes = [8, 32], strides = [1, 1]} : vector<8x96xf32> to vector<8x32xf32>
    %136 = arith.mulf %134, %94 : vector<8x32xf32>
    %137 = arith.mulf %133, %132 : vector<8x32xf32>
    %138 = arith.addf %136, %137 : vector<8x32xf32>
    %139 = math.tanh %138 : vector<8x32xf32>
    %140 = arith.mulf %135, %139 : vector<8x32xf32>
    %c16_50 = arith.constant 16 : index
    %c0_51 = arith.constant 0 : index
    %141 = vector.load %arg14[%c16_50, %c0_51] : memref<64x64xf32, #tpu.memory_space<vmem>>, vector<8x32xf32>
    tpu.vector_store %arg14[%c16_50, %c0_51], %119 {strides = array<i32>} : memref<64x64xf32, #tpu.memory_space<vmem>>, vector<8x32xf32>,
    %c40_52 = arith.constant 40 : index
    %c32_53 = arith.constant 32 : index
    %142 = vector.load %arg14[%c40_52, %c32_53] : memref<64x64xf32, #tpu.memory_space<vmem>>, vector<8x32xf32>
    tpu.vector_store %arg14[%c40_52, %c32_53], %140 {strides = array<i32>} : memref<64x64xf32, #tpu.memory_space<vmem>>, vector<8x32xf32>,
    %c24 = arith.constant 24 : index
    %c0_54 = arith.constant 0 : index
    %143 = vector.load %arg13[%c24, %c0_54] : memref<64x256xf32, #tpu.memory_space<vmem>>, vector<8x128xf32>
    %cst_55 = arith.constant dense<0.000000e+00> : vector<8x128xf32>
    %144 = tpu.matmul %119, %8, %cst_55 {dimension_numbers = #tpu.dot_dimension_numbers<[1], [0], [0], [1], [0, 0, 1, 1], [], []>} : vector<8x32xf32>, vector<32x128xf32>, vector<8x128xf32> -> vector<8x128xf32>
    %145 = arith.addf %143, %144 : vector<8x128xf32>
    %146 = vector.extract_strided_slice %145 {offsets = [0, 0], sizes = [8, 96], strides = [1, 1]} : vector<8x128xf32> to vector<8x96xf32>
    %cst_56 = arith.constant 0.000000e+00 : f32
    %147 = vector.broadcast %cst_56 : f32 to vector<8x96xf32>
    %148 = arith.subf %147, %146 : vector<8x96xf32>
    %149 = math.exp %148 : vector<8x96xf32>
    %cst_57 = arith.constant 1.000000e+00 : f32
    %150 = vector.broadcast %cst_57 : f32 to vector<8x96xf32>
    %151 = arith.addf %150, %149 : vector<8x96xf32>
    %cst_58 = arith.constant 1.000000e+00 : f32
    %152 = vector.broadcast %cst_58 : f32 to vector<8x96xf32>
    %153 = arith.divf %152, %151 : vector<8x96xf32>
    %154 = vector.extract_strided_slice %145 {offsets = [0, 96], sizes = [8, 32], strides = [1, 1]} : vector<8x128xf32> to vector<8x32xf32>
    %155 = math.tanh %154 : vector<8x32xf32>
    %156 = vector.extract_strided_slice %153 {offsets = [0, 0], sizes = [8, 32], strides = [1, 1]} : vector<8x96xf32> to vector<8x32xf32>
    %157 = vector.extract_strided_slice %153 {offsets = [0, 32], sizes = [8, 32], strides = [1, 1]} : vector<8x96xf32> to vector<8x32xf32>
    %158 = vector.extract_strided_slice %153 {offsets = [0, 64], sizes = [8, 32], strides = [1, 1]} : vector<8x96xf32> to vector<8x32xf32>
    %159 = arith.mulf %157, %117 : vector<8x32xf32>
    %160 = arith.mulf %156, %155 : vector<8x32xf32>
    %161 = arith.addf %159, %160 : vector<8x32xf32>
    %162 = math.tanh %161 : vector<8x32xf32>
    %163 = arith.mulf %158, %162 : vector<8x32xf32>
    %c32_59 = arith.constant 32 : index
    %c128_60 = arith.constant 128 : index
    %164 = vector.load %arg13[%c32_59, %c128_60] : memref<64x256xf32, #tpu.memory_space<vmem>>, vector<8x128xf32>
    %cst_61 = arith.constant dense<0.000000e+00> : vector<8x128xf32>
    %165 = tpu.matmul %140, %9, %cst_61 {dimension_numbers = #tpu.dot_dimension_numbers<[1], [0], [0], [1], [0, 0, 1, 1], [], []>} : vector<8x32xf32>, vector<32x128xf32>, vector<8x128xf32> -> vector<8x128xf32>
    %166 = arith.addf %164, %165 : vector<8x128xf32>
    %167 = vector.extract_strided_slice %166 {offsets = [0, 0], sizes = [8, 96], strides = [1, 1]} : vector<8x128xf32> to vector<8x96xf32>
    %cst_62 = arith.constant 0.000000e+00 : f32
    %168 = vector.broadcast %cst_62 : f32 to vector<8x96xf32>
    %169 = arith.subf %168, %167 : vector<8x96xf32>
    %170 = math.exp %169 : vector<8x96xf32>
    %cst_63 = arith.constant 1.000000e+00 : f32
    %171 = vector.broadcast %cst_63 : f32 to vector<8x96xf32>
    %172 = arith.addf %171, %170 : vector<8x96xf32>
    %cst_64 = arith.constant 1.000000e+00 : f32
    %173 = vector.broadcast %cst_64 : f32 to vector<8x96xf32>
    %174 = arith.divf %173, %172 : vector<8x96xf32>
    %175 = vector.extract_strided_slice %166 {offsets = [0, 96], sizes = [8, 32], strides = [1, 1]} : vector<8x128xf32> to vector<8x32xf32>
    %176 = math.tanh %175 : vector<8x32xf32>
    %177 = vector.extract_strided_slice %174 {offsets = [0, 0], sizes = [8, 32], strides = [1, 1]} : vector<8x96xf32> to vector<8x32xf32>
    %178 = vector.extract_strided_slice %174 {offsets = [0, 32], sizes = [8, 32], strides = [1, 1]} : vector<8x96xf32> to vector<8x32xf32>
    %179 = vector.extract_strided_slice %174 {offsets = [0, 64], sizes = [8, 32], strides = [1, 1]} : vector<8x96xf32> to vector<8x32xf32>
    %180 = arith.mulf %178, %138 : vector<8x32xf32>
    %181 = arith.mulf %177, %176 : vector<8x32xf32>
    %182 = arith.addf %180, %181 : vector<8x32xf32>
    %183 = math.tanh %182 : vector<8x32xf32>
    %184 = arith.mulf %179, %183 : vector<8x32xf32>
    %c24_65 = arith.constant 24 : index
    %c0_66 = arith.constant 0 : index
    %185 = vector.load %arg14[%c24_65, %c0_66] : memref<64x64xf32, #tpu.memory_space<vmem>>, vector<8x32xf32>
    tpu.vector_store %arg14[%c24_65, %c0_66], %163 {strides = array<i32>} : memref<64x64xf32, #tpu.memory_space<vmem>>, vector<8x32xf32>,
    %c32_67 = arith.constant 32 : index
    %c32_68 = arith.constant 32 : index
    %186 = vector.load %arg14[%c32_67, %c32_68] : memref<64x64xf32, #tpu.memory_space<vmem>>, vector<8x32xf32>
    tpu.vector_store %arg14[%c32_67, %c32_68], %184 {strides = array<i32>} : memref<64x64xf32, #tpu.memory_space<vmem>>, vector<8x32xf32>,
    %c32_69 = arith.constant 32 : index
    %c0_70 = arith.constant 0 : index
    %187 = vector.load %arg13[%c32_69, %c0_70] : memref<64x256xf32, #tpu.memory_space<vmem>>, vector<8x128xf32>
    %cst_71 = arith.constant dense<0.000000e+00> : vector<8x128xf32>
    %188 = tpu.matmul %163, %8, %cst_71 {dimension_numbers = #tpu.dot_dimension_numbers<[1], [0], [0], [1], [0, 0, 1, 1], [], []>} : vector<8x32xf32>, vector<32x128xf32>, vector<8x128xf32> -> vector<8x128xf32>
    %189 = arith.addf %187, %188 : vector<8x128xf32>
    %190 = vector.extract_strided_slice %189 {offsets = [0, 0], sizes = [8, 96], strides = [1, 1]} : vector<8x128xf32> to vector<8x96xf32>
    %cst_72 = arith.constant 0.000000e+00 : f32
    %191 = vector.broadcast %cst_72 : f32 to vector<8x96xf32>
    %192 = arith.subf %191, %190 : vector<8x96xf32>
    %193 = math.exp %192 : vector<8x96xf32>
    %cst_73 = arith.constant 1.000000e+00 : f32
    %194 = vector.broadcast %cst_73 : f32 to vector<8x96xf32>
    %195 = arith.addf %194, %193 : vector<8x96xf32>
    %cst_74 = arith.constant 1.000000e+00 : f32
    %196 = vector.broadcast %cst_74 : f32 to vector<8x96xf32>
    %197 = arith.divf %196, %195 : vector<8x96xf32>
    %198 = vector.extract_strided_slice %189 {offsets = [0, 96], sizes = [8, 32], strides = [1, 1]} : vector<8x128xf32> to vector<8x32xf32>
    %199 = math.tanh %198 : vector<8x32xf32>
    %200 = vector.extract_strided_slice %197 {offsets = [0, 0], sizes = [8, 32], strides = [1, 1]} : vector<8x96xf32> to vector<8x32xf32>
    %201 = vector.extract_strided_slice %197 {offsets = [0, 32], sizes = [8, 32], strides = [1, 1]} : vector<8x96xf32> to vector<8x32xf32>
    %202 = vector.extract_strided_slice %197 {offsets = [0, 64], sizes = [8, 32], strides = [1, 1]} : vector<8x96xf32> to vector<8x32xf32>
    %203 = arith.mulf %201, %161 : vector<8x32xf32>
    %204 = arith.mulf %200, %199 : vector<8x32xf32>
    %205 = arith.addf %203, %204 : vector<8x32xf32>
    %206 = math.tanh %205 : vector<8x32xf32>
    %207 = arith.mulf %202, %206 : vector<8x32xf32>
    %c24_75 = arith.constant 24 : index
    %c128_76 = arith.constant 128 : index
    %208 = vector.load %arg13[%c24_75, %c128_76] : memref<64x256xf32, #tpu.memory_space<vmem>>, vector<8x128xf32>
    %cst_77 = arith.constant dense<0.000000e+00> : vector<8x128xf32>
    %209 = tpu.matmul %184, %9, %cst_77 {dimension_numbers = #tpu.dot_dimension_numbers<[1], [0], [0], [1], [0, 0, 1, 1], [], []>} : vector<8x32xf32>, vector<32x128xf32>, vector<8x128xf32> -> vector<8x128xf32>
    %210 = arith.addf %208, %209 : vector<8x128xf32>
    %211 = vector.extract_strided_slice %210 {offsets = [0, 0], sizes = [8, 96], strides = [1, 1]} : vector<8x128xf32> to vector<8x96xf32>
    %cst_78 = arith.constant 0.000000e+00 : f32
    %212 = vector.broadcast %cst_78 : f32 to vector<8x96xf32>
    %213 = arith.subf %212, %211 : vector<8x96xf32>
    %214 = math.exp %213 : vector<8x96xf32>
    %cst_79 = arith.constant 1.000000e+00 : f32
    %215 = vector.broadcast %cst_79 : f32 to vector<8x96xf32>
    %216 = arith.addf %215, %214 : vector<8x96xf32>
    %cst_80 = arith.constant 1.000000e+00 : f32
    %217 = vector.broadcast %cst_80 : f32 to vector<8x96xf32>
    %218 = arith.divf %217, %216 : vector<8x96xf32>
    %219 = vector.extract_strided_slice %210 {offsets = [0, 96], sizes = [8, 32], strides = [1, 1]} : vector<8x128xf32> to vector<8x32xf32>
    %220 = math.tanh %219 : vector<8x32xf32>
    %221 = vector.extract_strided_slice %218 {offsets = [0, 0], sizes = [8, 32], strides = [1, 1]} : vector<8x96xf32> to vector<8x32xf32>
    %222 = vector.extract_strided_slice %218 {offsets = [0, 32], sizes = [8, 32], strides = [1, 1]} : vector<8x96xf32> to vector<8x32xf32>
    %223 = vector.extract_strided_slice %218 {offsets = [0, 64], sizes = [8, 32], strides = [1, 1]} : vector<8x96xf32> to vector<8x32xf32>
    %224 = arith.mulf %222, %182 : vector<8x32xf32>
    %225 = arith.mulf %221, %220 : vector<8x32xf32>
    %226 = arith.addf %224, %225 : vector<8x32xf32>
    %227 = math.tanh %226 : vector<8x32xf32>
    %228 = arith.mulf %223, %227 : vector<8x32xf32>
    %c32_81 = arith.constant 32 : index
    %c0_82 = arith.constant 0 : index
    %229 = vector.load %arg14[%c32_81, %c0_82] : memref<64x64xf32, #tpu.memory_space<vmem>>, vector<8x32xf32>
    tpu.vector_store %arg14[%c32_81, %c0_82], %207 {strides = array<i32>} : memref<64x64xf32, #tpu.memory_space<vmem>>, vector<8x32xf32>,
    %c24_83 = arith.constant 24 : index
    %c32_84 = arith.constant 32 : index
    %230 = vector.load %arg14[%c24_83, %c32_84] : memref<64x64xf32, #tpu.memory_space<vmem>>, vector<8x32xf32>
    tpu.vector_store %arg14[%c24_83, %c32_84], %228 {strides = array<i32>} : memref<64x64xf32, #tpu.memory_space<vmem>>, vector<8x32xf32>,
    %c40_85 = arith.constant 40 : index
    %c0_86 = arith.constant 0 : index
    %231 = vector.load %arg13[%c40_85, %c0_86] : memref<64x256xf32, #tpu.memory_space<vmem>>, vector<8x128xf32>
    %cst_87 = arith.constant dense<0.000000e+00> : vector<8x128xf32>
    %232 = tpu.matmul %207, %8, %cst_87 {dimension_numbers = #tpu.dot_dimension_numbers<[1], [0], [0], [1], [0, 0, 1, 1], [], []>} : vector<8x32xf32>, vector<32x128xf32>, vector<8x128xf32> -> vector<8x128xf32>
    %233 = arith.addf %231, %232 : vector<8x128xf32>
    %234 = vector.extract_strided_slice %233 {offsets = [0, 0], sizes = [8, 96], strides = [1, 1]} : vector<8x128xf32> to vector<8x96xf32>
    %cst_88 = arith.constant 0.000000e+00 : f32
    %235 = vector.broadcast %cst_88 : f32 to vector<8x96xf32>
    %236 = arith.subf %235, %234 : vector<8x96xf32>
    %237 = math.exp %236 : vector<8x96xf32>
    %cst_89 = arith.constant 1.000000e+00 : f32
    %238 = vector.broadcast %cst_89 : f32 to vector<8x96xf32>
    %239 = arith.addf %238, %237 : vector<8x96xf32>
    %cst_90 = arith.constant 1.000000e+00 : f32
    %240 = vector.broadcast %cst_90 : f32 to vector<8x96xf32>
    %241 = arith.divf %240, %239 : vector<8x96xf32>
    %242 = vector.extract_strided_slice %233 {offsets = [0, 96], sizes = [8, 32], strides = [1, 1]} : vector<8x128xf32> to vector<8x32xf32>
    %243 = math.tanh %242 : vector<8x32xf32>
    %244 = vector.extract_strided_slice %241 {offsets = [0, 0], sizes = [8, 32], strides = [1, 1]} : vector<8x96xf32> to vector<8x32xf32>
    %245 = vector.extract_strided_slice %241 {offsets = [0, 32], sizes = [8, 32], strides = [1, 1]} : vector<8x96xf32> to vector<8x32xf32>
    %246 = vector.extract_strided_slice %241 {offsets = [0, 64], sizes = [8, 32], strides = [1, 1]} : vector<8x96xf32> to vector<8x32xf32>
    %247 = arith.mulf %245, %205 : vector<8x32xf32>
    %248 = arith.mulf %244, %243 : vector<8x32xf32>
    %249 = arith.addf %247, %248 : vector<8x32xf32>
    %250 = math.tanh %249 : vector<8x32xf32>
    %251 = arith.mulf %246, %250 : vector<8x32xf32>
    %c16_91 = arith.constant 16 : index
    %c128_92 = arith.constant 128 : index
    %252 = vector.load %arg13[%c16_91, %c128_92] : memref<64x256xf32, #tpu.memory_space<vmem>>, vector<8x128xf32>
    %cst_93 = arith.constant dense<0.000000e+00> : vector<8x128xf32>
    %253 = tpu.matmul %228, %9, %cst_93 {dimension_numbers = #tpu.dot_dimension_numbers<[1], [0], [0], [1], [0, 0, 1, 1], [], []>} : vector<8x32xf32>, vector<32x128xf32>, vector<8x128xf32> -> vector<8x128xf32>
    %254 = arith.addf %252, %253 : vector<8x128xf32>
    %255 = vector.extract_strided_slice %254 {offsets = [0, 0], sizes = [8, 96], strides = [1, 1]} : vector<8x128xf32> to vector<8x96xf32>
    %cst_94 = arith.constant 0.000000e+00 : f32
    %256 = vector.broadcast %cst_94 : f32 to vector<8x96xf32>
    %257 = arith.subf %256, %255 : vector<8x96xf32>
    %258 = math.exp %257 : vector<8x96xf32>
    %cst_95 = arith.constant 1.000000e+00 : f32
    %259 = vector.broadcast %cst_95 : f32 to vector<8x96xf32>
    %260 = arith.addf %259, %258 : vector<8x96xf32>
    %cst_96 = arith.constant 1.000000e+00 : f32
    %261 = vector.broadcast %cst_96 : f32 to vector<8x96xf32>
    %262 = arith.divf %261, %260 : vector<8x96xf32>
    %263 = vector.extract_strided_slice %254 {offsets = [0, 96], sizes = [8, 32], strides = [1, 1]} : vector<8x128xf32> to vector<8x32xf32>
    %264 = math.tanh %263 : vector<8x32xf32>
    %265 = vector.extract_strided_slice %262 {offsets = [0, 0], sizes = [8, 32], strides = [1, 1]} : vector<8x96xf32> to vector<8x32xf32>
    %266 = vector.extract_strided_slice %262 {offsets = [0, 32], sizes = [8, 32], strides = [1, 1]} : vector<8x96xf32> to vector<8x32xf32>
    %267 = vector.extract_strided_slice %262 {offsets = [0, 64], sizes = [8, 32], strides = [1, 1]} : vector<8x96xf32> to vector<8x32xf32>
    %268 = arith.mulf %266, %226 : vector<8x32xf32>
    %269 = arith.mulf %265, %264 : vector<8x32xf32>
    %270 = arith.addf %268, %269 : vector<8x32xf32>
    %271 = math.tanh %270 : vector<8x32xf32>
    %272 = arith.mulf %267, %271 : vector<8x32xf32>
    %c40_97 = arith.constant 40 : index
    %c0_98 = arith.constant 0 : index
    %273 = vector.load %arg14[%c40_97, %c0_98] : memref<64x64xf32, #tpu.memory_space<vmem>>, vector<8x32xf32>
    tpu.vector_store %arg14[%c40_97, %c0_98], %251 {strides = array<i32>} : memref<64x64xf32, #tpu.memory_space<vmem>>, vector<8x32xf32>,
    %c16_99 = arith.constant 16 : index
    %c32_100 = arith.constant 32 : index
    %274 = vector.load %arg14[%c16_99, %c32_100] : memref<64x64xf32, #tpu.memory_space<vmem>>, vector<8x32xf32>
    tpu.vector_store %arg14[%c16_99, %c32_100], %272 {strides = array<i32>} : memref<64x64xf32, #tpu.memory_space<vmem>>, vector<8x32xf32>,
    %c48_101 = arith.constant 48 : index
    %c0_102 = arith.constant 0 : index
    %275 = vector.load %arg13[%c48_101, %c0_102] : memref<64x256xf32, #tpu.memory_space<vmem>>, vector<8x128xf32>
    %cst_103 = arith.constant dense<0.000000e+00> : vector<8x128xf32>
    %276 = tpu.matmul %251, %8, %cst_103 {dimension_numbers = #tpu.dot_dimension_numbers<[1], [0], [0], [1], [0, 0, 1, 1], [], []>} : vector<8x32xf32>, vector<32x128xf32>, vector<8x128xf32> -> vector<8x128xf32>
    %277 = arith.addf %275, %276 : vector<8x128xf32>
    %278 = vector.extract_strided_slice %277 {offsets = [0, 0], sizes = [8, 96], strides = [1, 1]} : vector<8x128xf32> to vector<8x96xf32>
    %cst_104 = arith.constant 0.000000e+00 : f32
    %279 = vector.broadcast %cst_104 : f32 to vector<8x96xf32>
    %280 = arith.subf %279, %278 : vector<8x96xf32>
    %281 = math.exp %280 : vector<8x96xf32>
    %cst_105 = arith.constant 1.000000e+00 : f32
    %282 = vector.broadcast %cst_105 : f32 to vector<8x96xf32>
    %283 = arith.addf %282, %281 : vector<8x96xf32>
    %cst_106 = arith.constant 1.000000e+00 : f32
    %284 = vector.broadcast %cst_106 : f32 to vector<8x96xf32>
    %285 = arith.divf %284, %283 : vector<8x96xf32>
    %286 = vector.extract_strided_slice %277 {offsets = [0, 96], sizes = [8, 32], strides = [1, 1]} : vector<8x128xf32> to vector<8x32xf32>
    %287 = math.tanh %286 : vector<8x32xf32>
    %288 = vector.extract_strided_slice %285 {offsets = [0, 0], sizes = [8, 32], strides = [1, 1]} : vector<8x96xf32> to vector<8x32xf32>
    %289 = vector.extract_strided_slice %285 {offsets = [0, 32], sizes = [8, 32], strides = [1, 1]} : vector<8x96xf32> to vector<8x32xf32>
    %290 = vector.extract_strided_slice %285 {offsets = [0, 64], sizes = [8, 32], strides = [1, 1]} : vector<8x96xf32> to vector<8x32xf32>
    %291 = arith.mulf %289, %249 : vector<8x32xf32>
    %292 = arith.mulf %288, %287 : vector<8x32xf32>
    %293 = arith.addf %291, %292 : vector<8x32xf32>
    %294 = math.tanh %293 : vector<8x32xf32>
    %295 = arith.mulf %290, %294 : vector<8x32xf32>
    %c8_107 = arith.constant 8 : index
    %c128_108 = arith.constant 128 : index
    %296 = vector.load %arg13[%c8_107, %c128_108] : memref<64x256xf32, #tpu.memory_space<vmem>>, vector<8x128xf32>
    %cst_109 = arith.constant dense<0.000000e+00> : vector<8x128xf32>
    %297 = tpu.matmul %272, %9, %cst_109 {dimension_numbers = #tpu.dot_dimension_numbers<[1], [0], [0], [1], [0, 0, 1, 1], [], []>} : vector<8x32xf32>, vector<32x128xf32>, vector<8x128xf32> -> vector<8x128xf32>
    %298 = arith.addf %296, %297 : vector<8x128xf32>
    %299 = vector.extract_strided_slice %298 {offsets = [0, 0], sizes = [8, 96], strides = [1, 1]} : vector<8x128xf32> to vector<8x96xf32>
    %cst_110 = arith.constant 0.000000e+00 : f32
    %300 = vector.broadcast %cst_110 : f32 to vector<8x96xf32>
    %301 = arith.subf %300, %299 : vector<8x96xf32>
    %302 = math.exp %301 : vector<8x96xf32>
    %cst_111 = arith.constant 1.000000e+00 : f32
    %303 = vector.broadcast %cst_111 : f32 to vector<8x96xf32>
    %304 = arith.addf %303, %302 : vector<8x96xf32>
    %cst_112 = arith.constant 1.000000e+00 : f32
    %305 = vector.broadcast %cst_112 : f32 to vector<8x96xf32>
    %306 = arith.divf %305, %304 : vector<8x96xf32>
    %307 = vector.extract_strided_slice %298 {offsets = [0, 96], sizes = [8, 32], strides = [1, 1]} : vector<8x128xf32> to vector<8x32xf32>
    %308 = math.tanh %307 : vector<8x32xf32>
    %309 = vector.extract_strided_slice %306 {offsets = [0, 0], sizes = [8, 32], strides = [1, 1]} : vector<8x96xf32> to vector<8x32xf32>
    %310 = vector.extract_strided_slice %306 {offsets = [0, 32], sizes = [8, 32], strides = [1, 1]} : vector<8x96xf32> to vector<8x32xf32>
    %311 = vector.extract_strided_slice %306 {offsets = [0, 64], sizes = [8, 32], strides = [1, 1]} : vector<8x96xf32> to vector<8x32xf32>
    %312 = arith.mulf %310, %270 : vector<8x32xf32>
    %313 = arith.mulf %309, %308 : vector<8x32xf32>
    %314 = arith.addf %312, %313 : vector<8x32xf32>
    %315 = math.tanh %314 : vector<8x32xf32>
    %316 = arith.mulf %311, %315 : vector<8x32xf32>
    %c48_113 = arith.constant 48 : index
    %c0_114 = arith.constant 0 : index
    %317 = vector.load %arg14[%c48_113, %c0_114] : memref<64x64xf32, #tpu.memory_space<vmem>>, vector<8x32xf32>
    tpu.vector_store %arg14[%c48_113, %c0_114], %295 {strides = array<i32>} : memref<64x64xf32, #tpu.memory_space<vmem>>, vector<8x32xf32>,
    %c8_115 = arith.constant 8 : index
    %c32_116 = arith.constant 32 : index
    %318 = vector.load %arg14[%c8_115, %c32_116] : memref<64x64xf32, #tpu.memory_space<vmem>>, vector<8x32xf32>
    tpu.vector_store %arg14[%c8_115, %c32_116], %316 {strides = array<i32>} : memref<64x64xf32, #tpu.memory_space<vmem>>, vector<8x32xf32>,
    %c56_117 = arith.constant 56 : index
    %c0_118 = arith.constant 0 : index
    %319 = vector.load %arg13[%c56_117, %c0_118] : memref<64x256xf32, #tpu.memory_space<vmem>>, vector<8x128xf32>
    %cst_119 = arith.constant dense<0.000000e+00> : vector<8x128xf32>
    %320 = tpu.matmul %295, %8, %cst_119 {dimension_numbers = #tpu.dot_dimension_numbers<[1], [0], [0], [1], [0, 0, 1, 1], [], []>} : vector<8x32xf32>, vector<32x128xf32>, vector<8x128xf32> -> vector<8x128xf32>
    %321 = arith.addf %319, %320 : vector<8x128xf32>
    %322 = vector.extract_strided_slice %321 {offsets = [0, 0], sizes = [8, 96], strides = [1, 1]} : vector<8x128xf32> to vector<8x96xf32>
    %cst_120 = arith.constant 0.000000e+00 : f32
    %323 = vector.broadcast %cst_120 : f32 to vector<8x96xf32>
    %324 = arith.subf %323, %322 : vector<8x96xf32>
    %325 = math.exp %324 : vector<8x96xf32>
    %cst_121 = arith.constant 1.000000e+00 : f32
    %326 = vector.broadcast %cst_121 : f32 to vector<8x96xf32>
    %327 = arith.addf %326, %325 : vector<8x96xf32>
    %cst_122 = arith.constant 1.000000e+00 : f32
    %328 = vector.broadcast %cst_122 : f32 to vector<8x96xf32>
    %329 = arith.divf %328, %327 : vector<8x96xf32>
    %330 = vector.extract_strided_slice %321 {offsets = [0, 96], sizes = [8, 32], strides = [1, 1]} : vector<8x128xf32> to vector<8x32xf32>
    %331 = math.tanh %330 : vector<8x32xf32>
    %332 = vector.extract_strided_slice %329 {offsets = [0, 0], sizes = [8, 32], strides = [1, 1]} : vector<8x96xf32> to vector<8x32xf32>
    %333 = vector.extract_strided_slice %329 {offsets = [0, 32], sizes = [8, 32], strides = [1, 1]} : vector<8x96xf32> to vector<8x32xf32>
    %334 = vector.extract_strided_slice %329 {offsets = [0, 64], sizes = [8, 32], strides = [1, 1]} : vector<8x96xf32> to vector<8x32xf32>
    %335 = arith.mulf %333, %293 : vector<8x32xf32>
    %336 = arith.mulf %332, %331 : vector<8x32xf32>
    %337 = arith.addf %335, %336 : vector<8x32xf32>
    %338 = math.tanh %337 : vector<8x32xf32>
    %339 = arith.mulf %334, %338 : vector<8x32xf32>
    %c0_123 = arith.constant 0 : index
    %c128_124 = arith.constant 128 : index
    %340 = vector.load %arg13[%c0_123, %c128_124] : memref<64x256xf32, #tpu.memory_space<vmem>>, vector<8x128xf32>
    %cst_125 = arith.constant dense<0.000000e+00> : vector<8x128xf32>
    %341 = tpu.matmul %316, %9, %cst_125 {dimension_numbers = #tpu.dot_dimension_numbers<[1], [0], [0], [1], [0, 0, 1, 1], [], []>} : vector<8x32xf32>, vector<32x128xf32>, vector<8x128xf32> -> vector<8x128xf32>
    %342 = arith.addf %340, %341 : vector<8x128xf32>
    %343 = vector.extract_strided_slice %342 {offsets = [0, 0], sizes = [8, 96], strides = [1, 1]} : vector<8x128xf32> to vector<8x96xf32>
    %cst_126 = arith.constant 0.000000e+00 : f32
    %344 = vector.broadcast %cst_126 : f32 to vector<8x96xf32>
    %345 = arith.subf %344, %343 : vector<8x96xf32>
    %346 = math.exp %345 : vector<8x96xf32>
    %cst_127 = arith.constant 1.000000e+00 : f32
    %347 = vector.broadcast %cst_127 : f32 to vector<8x96xf32>
    %348 = arith.addf %347, %346 : vector<8x96xf32>
    %cst_128 = arith.constant 1.000000e+00 : f32
    %349 = vector.broadcast %cst_128 : f32 to vector<8x96xf32>
    %350 = arith.divf %349, %348 : vector<8x96xf32>
    %351 = vector.extract_strided_slice %342 {offsets = [0, 96], sizes = [8, 32], strides = [1, 1]} : vector<8x128xf32> to vector<8x32xf32>
    %352 = math.tanh %351 : vector<8x32xf32>
    %353 = vector.extract_strided_slice %350 {offsets = [0, 0], sizes = [8, 32], strides = [1, 1]} : vector<8x96xf32> to vector<8x32xf32>
    %354 = vector.extract_strided_slice %350 {offsets = [0, 32], sizes = [8, 32], strides = [1, 1]} : vector<8x96xf32> to vector<8x32xf32>
    %355 = vector.extract_strided_slice %350 {offsets = [0, 64], sizes = [8, 32], strides = [1, 1]} : vector<8x96xf32> to vector<8x32xf32>
    %356 = arith.mulf %354, %314 : vector<8x32xf32>
    %357 = arith.mulf %353, %352 : vector<8x32xf32>
    %358 = arith.addf %356, %357 : vector<8x32xf32>
    %359 = math.tanh %358 : vector<8x32xf32>
    %360 = arith.mulf %355, %359 : vector<8x32xf32>
    %c56_129 = arith.constant 56 : index
    %c0_130 = arith.constant 0 : index
    %361 = vector.load %arg14[%c56_129, %c0_130] : memref<64x64xf32, #tpu.memory_space<vmem>>, vector<8x32xf32>
    tpu.vector_store %arg14[%c56_129, %c0_130], %339 {strides = array<i32>} : memref<64x64xf32, #tpu.memory_space<vmem>>, vector<8x32xf32>,
    %c0_131 = arith.constant 0 : index
    %c32_132 = arith.constant 32 : index
    %362 = vector.load %arg14[%c0_131, %c32_132] : memref<64x64xf32, #tpu.memory_space<vmem>>, vector<8x32xf32>
    tpu.vector_store %arg14[%c0_131, %c32_132], %360 {strides = array<i32>} : memref<64x64xf32, #tpu.memory_space<vmem>>, vector<8x32xf32>,
    %c0_133 = arith.constant 0 : index
    %c0_134 = arith.constant 0 : index
    %363 = vector.load %arg14[%c0_133, %c0_134] : memref<64x64xf32, #tpu.memory_space<vmem>>, vector<64x64xf32>
    %c0_135 = arith.constant 0 : index
    %c0_136 = arith.constant 0 : index
    %364 = vector.load %arg6[%c0_135, %c0_136] : memref<64x16xf32, #tpu.memory_space<vmem>>, vector<64x16xf32>
    %cst_137 = arith.constant dense<0.000000e+00> : vector<64x16xf32>
    %365 = tpu.matmul %363, %364, %cst_137 {dimension_numbers = #tpu.dot_dimension_numbers<[1], [0], [0], [1], [0, 0, 1, 1], [], []>} : vector<64x64xf32>, vector<64x16xf32>, vector<64x16xf32> -> vector<64x16xf32>
    %366 = math.tanh %365 : vector<64x16xf32>
    %c0_138 = arith.constant 0 : index
    %c0_139 = arith.constant 0 : index
    %367 = vector.load %arg7[%c0_138, %c0_139] : memref<16x4xf32, #tpu.memory_space<vmem>>, vector<16x4xf32>
    %cst_140 = arith.constant dense<0.000000e+00> : vector<64x4xf32>
    %368 = tpu.matmul %366, %367, %cst_140 {dimension_numbers = #tpu.dot_dimension_numbers<[1], [0], [0], [1], [0, 0, 1, 1], [], []>} : vector<64x16xf32>, vector<16x4xf32>, vector<64x4xf32> -> vector<64x4xf32>
    %c0_141 = arith.constant 0 : index
    %c0_142 = arith.constant 0 : index
    %369 = vector.load %arg8[%c0_141, %c0_142] : memref<1x4xf32, #tpu.memory_space<vmem>>, vector<1x4xf32>
    %370 = vector.broadcast %369 : vector<1x4xf32> to vector<64x4xf32>
    %371 = arith.addf %368, %370 : vector<64x4xf32>
    %372 = vector.shape_cast %371 : vector<64x4xf32> to vector<8x8x4xf32>
    %cst_143 = arith.constant dense<0xFF800000> : vector<8x4xf32>
    %373 = vector.multi_reduction <maximumf>, %372, %cst_143 [0] : vector<8x8x4xf32> to vector<8x4xf32>
    %374 = vector.shape_cast %373 : vector<8x4xf32> to vector<1x8x4xf32>
    %375 = vector.broadcast %374 : vector<1x8x4xf32> to vector<8x8x4xf32>
    %376 = arith.subf %372, %375 : vector<8x8x4xf32>
    %377 = math.exp %376 : vector<8x8x4xf32>
    %cst_144 = arith.constant dense<0.000000e+00> : vector<8x4xf32>
    %378 = vector.multi_reduction <add>, %377, %cst_144 [0] : vector<8x8x4xf32> to vector<8x4xf32>
    %379 = vector.shape_cast %378 : vector<8x4xf32> to vector<1x8x4xf32>
    %380 = tpu.reciprocal %379 {approx = true} : vector<1x8x4xf32> -> vector<1x8x4xf32>
    %381 = vector.broadcast %380 : vector<1x8x4xf32> to vector<8x8x4xf32>
    %382 = arith.mulf %377, %381 : vector<8x8x4xf32>
    %383 = vector.shape_cast %382 : vector<8x8x4xf32> to vector<64x4xf32>
    %c0_145 = arith.constant 0 : index
    %c0_146 = arith.constant 0 : index
    %c0_147 = arith.constant 0 : index
    %384 = vector.load %arg12[%c0_145, %c0_146, %c0_147] : memref<1x64x4xf32, #tpu.memory_space<vmem>>, vector<1x64x4xf32>
    %385 = vector.shape_cast %384 : vector<1x64x4xf32> to vector<64x4xf32>
    %386 = vector.shape_cast %383 : vector<64x4xf32> to vector<1x64x4xf32>
    tpu.vector_store %arg12[%c0_145, %c0_146, %c0_147], %386 {strides = array<i32>} : memref<1x64x4xf32, #tpu.memory_space<vmem>>, vector<1x64x4xf32>,
    %387 = vector.shape_cast %363 : vector<64x64xf32> to vector<8x8x64xf32>
    %388 = vector.extract_strided_slice %382 {offsets = [0, 0, 0], sizes = [8, 8, 1], strides = [1, 1, 1]} : vector<8x8x4xf32> to vector<8x8x1xf32>
    %389 = vector.broadcast %388 : vector<8x8x1xf32> to vector<8x8x64xf32>
    %390 = arith.mulf %389, %387 : vector<8x8x64xf32>
    %cst_148 = arith.constant dense<0.000000e+00> : vector<8x64xf32>
    %391 = vector.multi_reduction <add>, %390, %cst_148 [0] : vector<8x8x64xf32> to vector<8x64xf32>
    %c0_149 = arith.constant 0 : index
    %c0_150 = arith.constant 0 : index
    %392 = vector.load %arg15[%c0_149, %c0_150] : memref<8x256xf32, #tpu.memory_space<vmem>>, vector<8x64xf32>
    tpu.vector_store %arg15[%c0_149, %c0_150], %391 {strides = array<i32>} : memref<8x256xf32, #tpu.memory_space<vmem>>, vector<8x64xf32>,
    %393 = vector.extract_strided_slice %382 {offsets = [0, 0, 1], sizes = [8, 8, 1], strides = [1, 1, 1]} : vector<8x8x4xf32> to vector<8x8x1xf32>
    %394 = vector.broadcast %393 : vector<8x8x1xf32> to vector<8x8x64xf32>
    %395 = arith.mulf %394, %387 : vector<8x8x64xf32>
    %cst_151 = arith.constant dense<0.000000e+00> : vector<8x64xf32>
    %396 = vector.multi_reduction <add>, %395, %cst_151 [0] : vector<8x8x64xf32> to vector<8x64xf32>
    %c0_152 = arith.constant 0 : index
    %c64 = arith.constant 64 : index
    %397 = vector.load %arg15[%c0_152, %c64] : memref<8x256xf32, #tpu.memory_space<vmem>>, vector<8x64xf32>
    tpu.vector_store %arg15[%c0_152, %c64], %396 {strides = array<i32>} : memref<8x256xf32, #tpu.memory_space<vmem>>, vector<8x64xf32>,
    %398 = vector.extract_strided_slice %382 {offsets = [0, 0, 2], sizes = [8, 8, 1], strides = [1, 1, 1]} : vector<8x8x4xf32> to vector<8x8x1xf32>
    %399 = vector.broadcast %398 : vector<8x8x1xf32> to vector<8x8x64xf32>
    %400 = arith.mulf %399, %387 : vector<8x8x64xf32>
    %cst_153 = arith.constant dense<0.000000e+00> : vector<8x64xf32>
    %401 = vector.multi_reduction <add>, %400, %cst_153 [0] : vector<8x8x64xf32> to vector<8x64xf32>
    %c0_154 = arith.constant 0 : index
    %c128_155 = arith.constant 128 : index
    %402 = vector.load %arg15[%c0_154, %c128_155] : memref<8x256xf32, #tpu.memory_space<vmem>>, vector<8x64xf32>
    tpu.vector_store %arg15[%c0_154, %c128_155], %401 {strides = array<i32>} : memref<8x256xf32, #tpu.memory_space<vmem>>, vector<8x64xf32>,
    %403 = vector.extract_strided_slice %382 {offsets = [0, 0, 3], sizes = [8, 8, 1], strides = [1, 1, 1]} : vector<8x8x4xf32> to vector<8x8x1xf32>
    %404 = vector.broadcast %403 : vector<8x8x1xf32> to vector<8x8x64xf32>
    %405 = arith.mulf %404, %387 : vector<8x8x64xf32>
    %cst_156 = arith.constant dense<0.000000e+00> : vector<8x64xf32>
    %406 = vector.multi_reduction <add>, %405, %cst_156 [0] : vector<8x8x64xf32> to vector<8x64xf32>
    %c0_157 = arith.constant 0 : index
    %c192 = arith.constant 192 : index
    %407 = vector.load %arg15[%c0_157, %c192] : memref<8x256xf32, #tpu.memory_space<vmem>>, vector<8x64xf32>
    tpu.vector_store %arg15[%c0_157, %c192], %406 {strides = array<i32>} : memref<8x256xf32, #tpu.memory_space<vmem>>, vector<8x64xf32>,
    %c0_158 = arith.constant 0 : index
    %c0_159 = arith.constant 0 : index
    %408 = vector.load %arg15[%c0_158, %c0_159] : memref<8x256xf32, #tpu.memory_space<vmem>>, vector<8x256xf32>
    %c0_160 = arith.constant 0 : index
    %c0_161 = arith.constant 0 : index
    %409 = vector.load %arg9[%c0_160, %c0_161] : memref<256x5xf32, #tpu.memory_space<vmem>>, vector<256x5xf32>
    %cst_162 = arith.constant dense<0.000000e+00> : vector<8x5xf32>
    %410 = tpu.matmul %408, %409, %cst_162 {dimension_numbers = #tpu.dot_dimension_numbers<[1], [0], [0], [1], [0, 0, 1, 1], [], []>} : vector<8x256xf32>, vector<256x5xf32>, vector<8x5xf32> -> vector<8x5xf32>
    %c0_163 = arith.constant 0 : index
    %c0_164 = arith.constant 0 : index
    %411 = vector.load %arg10[%c0_163, %c0_164] : memref<1x5xf32, #tpu.memory_space<vmem>>, vector<1x5xf32>
    %412 = vector.broadcast %411 : vector<1x5xf32> to vector<8x5xf32>
    %413 = arith.addf %410, %412 : vector<8x5xf32>
    %cst_165 = arith.constant dense<0xFF800000> : vector<8xf32>
    %414 = vector.multi_reduction <maximumf>, %413, %cst_165 [1] : vector<8x5xf32> to vector<8xf32>
    %415 = vector.shape_cast %414 : vector<8xf32> to vector<8x1xf32>
    %416 = vector.broadcast %415 : vector<8x1xf32> to vector<8x5xf32>
    %417 = arith.subf %413, %416 : vector<8x5xf32>
    %418 = math.exp %417 : vector<8x5xf32>
    %cst_166 = arith.constant dense<0.000000e+00> : vector<8xf32>
    %419 = vector.multi_reduction <add>, %418, %cst_166 [1] : vector<8x5xf32> to vector<8xf32>
    %420 = vector.shape_cast %419 : vector<8xf32> to vector<8x1xf32>
    %421 = math.log %420 : vector<8x1xf32>
    %422 = arith.addf %421, %415 : vector<8x1xf32>
    %423 = vector.broadcast %422 : vector<8x1xf32> to vector<8x5xf32>
    %424 = arith.subf %413, %423 : vector<8x5xf32>
    %c0_167 = arith.constant 0 : index
    %c0_168 = arith.constant 0 : index
    %c0_169 = arith.constant 0 : index
    %425 = vector.load %arg11[%c0_167, %c0_168, %c0_169] : memref<1x8x5xf32, #tpu.memory_space<vmem>>, vector<1x8x5xf32>
    %426 = vector.shape_cast %425 : vector<1x8x5xf32> to vector<8x5xf32>
    %427 = vector.shape_cast %424 : vector<8x5xf32> to vector<1x8x5xf32>
    tpu.vector_store %arg11[%c0_167, %c0_168, %c0_169], %427 {strides = array<i32>} : memref<1x8x5xf32, #tpu.memory_space<vmem>>, vector<1x8x5xf32>,
    return
  }
  func.func @transform_0(%arg0: i32) -> (i32, i32, i32) {
    %c0_i32 = arith.constant 0 : i32
    %c0_i32_0 = arith.constant 0 : i32
    %c0_i32_1 = arith.constant 0 : i32
    return %arg0, %c0_i32, %c0_i32_0 : i32, i32, i32
  }
  func.func @transform_1(%arg0: i32) -> (i32, i32) {
    %c0_i32 = arith.constant 0 : i32
    %c0_i32_0 = arith.constant 0 : i32
    %c0_i32_1 = arith.constant 0 : i32
    return %c0_i32, %c0_i32_0 : i32, i32
  }
  func.func @transform_2(%arg0: i32) -> (i32, i32) {
    %c0_i32 = arith.constant 0 : i32
    %c0_i32_0 = arith.constant 0 : i32
    %c0_i32_1 = arith.constant 0 : i32
    return %c0_i32, %c0_i32_0 : i32, i32
  }
  func.func @transform_3(%arg0: i32) -> (i32, i32) {
    %c0_i32 = arith.constant 0 : i32
    %c0_i32_0 = arith.constant 0 : i32
    %c0_i32_1 = arith.constant 0 : i32
    return %c0_i32, %c0_i32_0 : i32, i32
  }
  func.func @transform_4(%arg0: i32) -> (i32, i32) {
    %c0_i32 = arith.constant 0 : i32
    %c0_i32_0 = arith.constant 0 : i32
    %c0_i32_1 = arith.constant 0 : i32
    return %c0_i32, %c0_i32_0 : i32, i32
  }
  func.func @transform_5(%arg0: i32) -> (i32, i32) {
    %c0_i32 = arith.constant 0 : i32
    %c0_i32_0 = arith.constant 0 : i32
    %c0_i32_1 = arith.constant 0 : i32
    return %c0_i32, %c0_i32_0 : i32, i32
  }
  func.func @transform_6(%arg0: i32) -> (i32, i32) {
    %c0_i32 = arith.constant 0 : i32
    %c0_i32_0 = arith.constant 0 : i32
    %c0_i32_1 = arith.constant 0 : i32
    return %c0_i32, %c0_i32_0 : i32, i32
  }
  func.func @transform_7(%arg0: i32) -> (i32, i32) {
    %c0_i32 = arith.constant 0 : i32
    %c0_i32_0 = arith.constant 0 : i32
    %c0_i32_1 = arith.constant 0 : i32
    return %c0_i32, %c0_i32_0 : i32, i32
  }
  func.func @transform_8(%arg0: i32) -> (i32, i32) {
    %c0_i32 = arith.constant 0 : i32
    %c0_i32_0 = arith.constant 0 : i32
    %c0_i32_1 = arith.constant 0 : i32
    return %c0_i32, %c0_i32_0 : i32, i32
  }
  func.func @transform_9(%arg0: i32) -> (i32, i32) {
    %c0_i32 = arith.constant 0 : i32
    %c0_i32_0 = arith.constant 0 : i32
    %c0_i32_1 = arith.constant 0 : i32
    return %c0_i32, %c0_i32_0 : i32, i32
  }
  func.func @transform_10(%arg0: i32) -> (i32, i32, i32) {
    %c0_i32 = arith.constant 0 : i32
    %c0_i32_0 = arith.constant 0 : i32
    %c0_i32_1 = arith.constant 0 : i32
    return %arg0, %c0_i32, %c0_i32_0 : i32, i32, i32
  }
  func.func @transform_11(%arg0: i32) -> (i32, i32, i32) {
    %c0_i32 = arith.constant 0 : i32
    %c0_i32_0 = arith.constant 0 : i32
    %c0_i32_1 = arith.constant 0 : i32
    return %arg0, %c0_i32, %c0_i32_0 : i32, i32, i32
  }
}

</mosaic_0001>

<bundles_post_ra>
// kernel: tpu_custom_call.1
= control target key start
LH: loop header
LB: loop body
LE: loop exit
PB: predicated region body
PF: predicated region fallthrough
CT: control target
= control target key end

     0   :  { %vm59_vm0 = vcmask 261120   ;;  %v2096_v19 = vmov 0.0   ;;  %s2098_s18 = smov 64   ;;  %s2886_s1 = inlined_call_operand.vmem [shape: f32[32,256], index: 1, kind: input, shape index: {}]   ;;  %s2887_s0 = inlined_call_operand.vmem [shape: f32[1,64,32], index: 0, kind: input, shape index: {}]   ;;  %s2888_s4 = inlined_call_operand.vmem [shape: f32[32,128], index: 4, kind: input, shape index: {}]   ;;  %s2889_s3 = inlined_call_operand.vmem [shape: f32[32,128], index: 3, kind: input, shape index: {}]   ;;  %s2890_s2 = inlined_call_operand.vmem [shape: f32[1,256], index: 2, kind: input, shape index: {}]   ;;  %s2891_s5 = inlined_call_operand.vmem [shape: f32[64,16], index: 5, kind: input, shape index: {}]   ;;  %s2892_s6 = inlined_call_operand.vmem [shape: f32[16,4], index: 6, kind: input, shape index: {}]   ;;  %s2893_s7 = inlined_call_operand.vmem [shape: f32[1,4], index: 7, kind: input, shape index: {}]   ;;  %s2894_s11 = inlined_call_operand.vmem [shape: f32[1,64,4], index: 11, kind: output, shape index: {1}]   ;;  %s2895_s8 = inlined_call_operand.vmem [shape: f32[256,5], index: 8, kind: input, shape index: {}]   ;;  %s2896_s9 = inlined_call_operand.vmem [shape: f32[1,5], index: 9, kind: input, shape index: {}]   ;;  %s2897_s10 = inlined_call_operand.vmem [shape: f32[1,8,5], index: 10, kind: output, shape index: {0}]  }
   0x1   :  { %v51_v0 = vld [vmem:[%s2886_s1 + $0x30] sm:$0xff]  ;;  %v52_v1 = vld [vmem:[%s2886_s1 + $0x38] sm:$0xff]  ;;  %v49_v2 = vld [vmem:[%s2886_s1 + $0x20] sm:$0xff] }
   0x2   :  { %1882 = vmatpush.msra.mxu2 %v51_v0  ;;  %1886 = vmatpush.msra.mxu3 %v52_v1  ;;  %v50_v3 = vld [vmem:[%s2886_s1 + $0x28] sm:$0xff]  ;;  %v47_v4 = vld [vmem:[%s2886_s1 + $0x10] sm:$0xff]  ;;  %v48_v5 = vld [vmem:[%s2886_s1 + $0x18] sm:$0xff] }
   0x3   :  { %96 = vmatpush.msra.mxu0 %v51_v0  ;;  %137 = vmatpush.msra.mxu1 %v52_v1  ;;  %v45_v6 = vld [vmem:[%s2886_s1] sm:$0xff]  ;;  %v46_v7 = vld [vmem:[%s2886_s1 + $0x8] sm:$0xff]  ;;  %v43_v8 = vld [vmem:[%s2887_s0 + $0x30] sm:$0xff] }
   0x4   :  { %1883 = vmatpush.msra.mxu2 %v49_v2  ;;  %1887 = vmatpush.msra.mxu3 %v50_v3  ;;  %v2194_v9 = vld [vmem:[%s2888_s4 + $0x18] sm:$0xff]  ;;  %v2206_v11 = vld [vmem:[%s2888_s4 + $0x10] sm:$0xff]  ;;  %v37_v13 = vld [vmem:[%s2887_s0] sm:$0xff] }
   0x5   :  { %97 = vmatpush.msra.mxu0 %v49_v2  ;;  %138 = vmatpush.msra.mxu1 %v50_v3  ;;  %v2199_v10 = vld [vmem:[%s2889_s3 + $0x18] sm:$0xff]  ;;  %v2211_v12 = vld [vmem:[%s2889_s3 + $0x10] sm:$0xff]  ;;  %v2221_v14 = vld [vmem:[%s2888_s4 + $0x8] sm:$0xff] }
   0x6   :  { %1884 = vmatpush.msra.mxu2 %v47_v4  ;;  %1888 = vmatpush.msra.mxu3 %v48_v5  ;;  %v2226_v15 = vld [vmem:[%s2889_s3 + $0x8] sm:$0xff]  ;;  %v2233_v16 = vld [vmem:[%s2888_s4] sm:$0xff]  ;;  %v44_v18 = vld [vmem:[%s2887_s0 + $0x38] sm:$0xff] }
   0x7   :  { %98 = vmatpush.msra.mxu0 %v47_v4  ;;  %139 = vmatpush.msra.mxu1 %v48_v5  ;;  %v2238_v17 = vld [vmem:[%s2889_s3] sm:$0xff] }
   0x8   :  { %1885 = vmatpush.msra.mxu2 %v45_v6  ;;  %1889 = vmatpush.msra.mxu3 %v46_v7  ;;  %v53_v22 = vld [vmem:[%s2890_s2] sm:$0x3]  ;;  %s2097_s2 = smov 32  }
   0x9   :  { %1842 = vmatmul.msk.f32.vlgmr.msra.gmra.mxu2 %vm59_vm0, %v43_v8  ;;  %1850 = vmatmul.msk.f32.vlgmr.msra.gmra.mxu3 %vm59_vm0, %v43_v8  ;;  %v2276_v25 = vperm.slane %v53_v22, 0  ;;  %v2278_v27 = vperm.slane %v53_v22, 1 }
   0xa   :  { %265 = vmatpush.msrb.mxu3 %v2194_v9  ;;  %206 = vmatpush.msrb.mxu2 %v2199_v10 }
   0xb   :  { %99 = vmatpush.msra.mxu0 %v45_v6  ;;  %140 = vmatpush.msra.mxu1 %v46_v7 }
   0xc   :  { %266 = vmatpush.msrb.mxu3 %v2206_v11  ;;  %207 = vmatpush.msrb.mxu2 %v2211_v12 }
   0xd   :  { %1836 = vmatmul.msk.f32.vlgmr.msra.gmra.mxu0 %vm59_vm0, %v37_v13  ;;  %1844 = vmatmul.msk.f32.vlgmr.msra.gmra.mxu1 %vm59_vm0, %v37_v13 }
   0xe   :  { %267 = vmatpush.msrb.mxu3 %v2221_v14  ;;  %208 = vmatpush.msrb.mxu2 %v2226_v15 }
  0x10   :  { %268 = vmatpush.msrb.mxu3 %v2233_v16  ;;  %209 = vmatpush.msrb.mxu2 %v2238_v17 }
  0x11   :  { %1843 = vmatmul.msk.f32.gmra.mxu2 %vm59_vm0, %v44_v18  ;;  %1851 = vmatmul.msk.f32.gmra.mxu3 %vm59_vm0, %v44_v18 }
  0x12   :  { %400 = vmatpush.msra.mxu3 %v2194_v9  ;;  %337 = vmatpush.msra.mxu2 %v2199_v10 }
  0x14   :  { %401 = vmatpush.msra.mxu3 %v2206_v11  ;;  %338 = vmatpush.msra.mxu2 %v2211_v12 }
  0x16   :  { %402 = vmatpush.msra.mxu3 %v2221_v14  ;;  %339 = vmatpush.msra.mxu2 %v2226_v15 }
  0x18   :  { %403 = vmatpush.msra.mxu3 %v2233_v16  ;;  %340 = vmatpush.msra.mxu2 %v2238_v17 }
  0x19   :  { %210 = vmatmul.f32.vlgmr.msrb.gmra.mxu2 %v2096_v19  ;;  %269 = vmatmul.f32.vlgmr.msrb.gmra.mxu3 %v2096_v19 }
  0x1a   :  { %534 = vmatpush.msrb.mxu3 %v2194_v9  ;;  %471 = vmatpush.msrb.mxu2 %v2199_v10 }
  0x1c   :  { %535 = vmatpush.msrb.mxu3 %v2206_v11  ;;  %472 = vmatpush.msrb.mxu2 %v2211_v12 }
  0x1e   :  { %536 = vmatpush.msrb.mxu3 %v2221_v14  ;;  %473 = vmatpush.msrb.mxu2 %v2226_v15 }
  0x20   :  { %537 = vmatpush.msrb.mxu3 %v2233_v16  ;;  %474 = vmatpush.msrb.mxu2 %v2238_v17 }
  0x8a   :  { %v101_v26 = vpop.f32.mrf.mxu0 }
  0x8b   :  { %v102_v28 = vadd.f32 %v101_v26, %v2276_v25 }
  0x8c   :  { %v2267_v20 = vpop.f32.mrf.mxu2  ;;  %v2269_v21 = vpop.f32.mrf.mxu3 }
  0x94   :  { %v2274_v23 = vpop.f32.mrf.mxu2  ;;  %v163_v24 = vpop.f32.mrf.mxu3 }
  0x95   :  { %v164_v29 = vadd.f32 %v163_v24, %v2278_v27 }
  0x9c   :  { %v211_v30 = vpop.f32.mrf.mxu2  ;;  %v270_v31 = vpop.f32.mrf.mxu3 }
  0x9d   :  { %v214_v32 = vadd.f32 %v211_v30, %v102_v28  ;;  %v273_v33 = vadd.f32 %v270_v31, %v164_v29  ;;  %v38_v29 = vld [vmem:[%s2887_s0 + $0x8] sm:$0xff] }
  0x9e   :  { %1837 = vmatmul.msk.f32.gmra.mxu0 %vm59_vm0, %v38_v29  ;;  %1845 = vmatmul.msk.f32.gmra.mxu1 %vm59_vm0, %v38_v29 }
  0x9f   :  { %1925 = vtanh.f32 %v214_v32  ;;  %v215_v36 = vsub.f32 0.0, %v214_v32  ;;  %v274_v37 = vsub.f32 0.0, %v273_v33 }
  0xa0   :  { %1927 = vtanh.f32 %v273_v33 }
  0xa1   :  { %v216_v38 = vmul.f32 1.442695, %v215_v36  ;;  %v275_v39 = vmul.f32 1.442695, %v274_v37 }
  0xa3   :  { %1929 = vpow2.f32 %v216_v38 }
  0xa4   :  { %1931 = vpow2.f32 %v275_v39 }
  0xa5   :  { %v1926_v34 = vpop.eup %1925 }
  0xa6   :  { %v1928_v35 = vpop.eup %1927  ;;  %237 = vrot.lane.b32.xlu1 %v1926_v34, %s2097_s2  ;;  %v161_v34 = vadd.f32 %v2269_v21, %v2278_v27 }
  0xa7   :  { %296 = vrot.lane.b32.xlu0 %v1928_v35, %s2097_s2 }
  0xa9   :  { %v1930_v40 = vpop.eup %1929 }
  0xaa   :  { %v1932_v41 = vpop.eup %1931  ;;  %v218_v42 = vadd.f32 1.0, %v1930_v40 }
  0xab   :  { %v277_v43 = vadd.f32 1.0, %v1932_v41 }
  0xac   :  { %1933 = vrcp.f32 %v218_v42  ;;  %vm224_vm1 = vweird.f32 %v218_v42  ;;  %v230_v52 = vand.u32 2147483648, %v218_v42  ;;  %v228_v54 = vand.u32 2147483647, %v218_v42 }
  0xad   :  { %1935 = vrcp.f32 %v277_v43  ;;  %v289_v56 = vand.u32 2147483648, %v277_v43  ;;  %vm283_vm5 = vweird.f32 %v277_v43  ;;  %v287_v57 = vand.u32 2147483647, %v277_v43 }
  0xae   :  { %v231_v58 = vor.u32 1.1754944e-38, %v230_v52  ;;  %vm229_vm7 = vcmp.eq.f32.partialorder %v228_v54, 8.507059e+37 }
  0xaf   :  { %v290_v61 = vor.u32 1.1754944e-38, %v289_v56  ;;  %vm288_vm8 = vcmp.eq.f32.partialorder %v287_v57, 8.507059e+37 }
  0xb2   :  { %v1934_v44 = vpop.eup %1933 }
  0xb3   :  { %v1936_v45 = vpop.eup %1935  ;;  %v220_v46 = vmul.f32 %v1934_v44, %v218_v42  ;;  %vm225_vm2 = vweird.f32 %v1934_v44 }
  0xb4   :  { %v279_v47 = vmul.f32 %v1936_v45, %v277_v43  ;;  %vm284_vm3 = vweird.f32 %v1936_v45  ;;  %vm226_vm4 = vmor %vm224_vm1, %vm225_vm2 }
  0xb5   :  { %v221_v48 = vsub.f32 1.0, %v220_v46  ;;  %vm285_vm6 = vmor %vm283_vm5, %vm284_vm3 }
  0xb6   :  { %v280_v49 = vsub.f32 1.0, %v279_v47 }
  0xb7   :  { %v222_v50 = vmul.f32 %v1934_v44, %v221_v48 }
  0xb8   :  { %v281_v51 = vmul.f32 %v1936_v45, %v280_v49 }
  0xb9   :  { %v223_v53 = vadd.f32 %v1934_v44, %v222_v50 }
  0xba   :  { %v282_v55 = vadd.f32 %v1936_v45, %v281_v51 }
  0xbb   :  { %v227_v59 = vsel %vm226_vm4, %v1934_v44, %v223_v53 }
  0xbc   :  { %v286_v60 = vsel %vm285_vm6, %v1936_v45, %v282_v55  ;;  %v232_v63 = vsel %vm229_vm7, %v231_v58, %v227_v59 }
  0xbd   :  { %v291_v1 = vsel %vm288_vm8, %v290_v61, %v286_v60  ;;  %v235_v4 = vmul.f32 0.0, %v232_v63 }
  0xbe   :  { %v294_v8 = vmul.f32 0.0, %v291_v1 }
 0x118   :  { %v238_v62 = vpop.permute.xlu1 %237 }
 0x119   :  { %v297_v0 = vpop.permute.xlu0 %296  ;;  %v240_v2 = vmul.f32 %v238_v62, %v232_v63 }
 0x11a   :  { %v299_v3 = vmul.f32 %v297_v0, %v291_v1 }
 0x11b   :  { %242 = vrot.lane.b32.xlu2 %v240_v2, %s2097_s2  ;;  %v104_v32 = vpop.f32.mrf.mxu0 }
 0x11c   :  { %301 = vrot.lane.b32.xlu0 %v299_v3, %s2097_s2  ;;  %v105_v33 = vadd.f32 %v104_v32, %v2276_v25 }
 0x175   :  { %v243_v5 = vpop.permute.xlu2 %242 }
 0x176   :  { %v2286_v6 = vadd.f32 %v243_v5, %v235_v4 }
 0x178   :  { %1937 = vtanh.f32 %v2286_v6 }
 0x17e   :  { %v1938_v7 = vpop.eup %1937 }
 0x17f   :  { %248 = vrot.lane.b32.xlu0 %v1938_v7, %s2097_s2 }
 0x18e   :  { %v302_v13 = vpop.permute.xlu0 %301 }
 0x18f   :  { %v2290_v18 = vadd.f32 %v302_v13, %v294_v8 }
 0x191   :  { %1939 = vtanh.f32 %v2290_v18 }
 0x197   :  { %v1940_v19 = vpop.eup %1939 }
 0x198   :  { %307 = vrot.lane.b32.xlu1 %v1940_v19, %s2097_s2 }
 0x1f1   :  { %v249_v22 = vpop.permute.xlu0 %248 }
 0x1f2   :  { %v251_v24 = vmul.f32 %v249_v22, %v232_v63 }
 0x1f4   :  { %312 = vrot.lane.b32.xlu1 %v251_v24, %s2098_s18 }
 0x20a   :  { %v308_v26 = vpop.permute.xlu1 %307 }
 0x20b   :  { %v2295_v28 = vmul.f32 %v308_v26, %v291_v1 }
 0x20d   :  { %384 = vrot.lane.b32.xlu2 %v2295_v28, %s2098_s18 }
 0x266   :  { %v313_v30 = vpop.permute.xlu1 %312 }
 0x267   :  { %v385_v31 = vpop.permute.xlu2 %384  ;;  %315 = vst.msk [vmem:[#allocation3] sm:$0xff] %vm59_vm0, %v313_v30  ;;  %1852 = vmatmul.msk.f32.vlgmr.msra.gmra.mxu2 %vm59_vm0, %v313_v30 }
 0x268   :  { %1853 = vmatmul.msk.f32.vlgmr.msra.gmra.mxu3 %vm59_vm0, %v385_v31  ;;  %605 = vmatpush.msra.mxu2 %v2199_v10 }
 0x269   :  { %668 = vmatpush.msra.mxu3 %v2194_v9 }
 0x26a   :  { %606 = vmatpush.msra.mxu2 %v2211_v12 }
 0x26b   :  { %669 = vmatpush.msra.mxu3 %v2206_v11 }
 0x26c   :  { %607 = vmatpush.msra.mxu2 %v2226_v15 }
 0x26d   :  { %670 = vmatpush.msra.mxu3 %v2221_v14 }
 0x26e   :  { %608 = vmatpush.msra.mxu2 %v2238_v17 }
 0x26f   :  { %671 = vmatpush.msra.mxu3 %v2233_v16 }
 0x2ea   :  { %v342_v35 = vpop.f32.mrf.mxu2 }
 0x2eb   :  { %v345_v36 = vadd.f32 %v342_v35, %v105_v33  ;;  %v405_v37 = vpop.f32.mrf.mxu3 }
 0x2ec   :  { %v408_v38 = vadd.f32 %v405_v37, %v161_v34  ;;  %v41_v34 = vld [vmem:[%s2887_s0 + $0x20] sm:$0xff]  ;;  %v42_v37 = vld [vmem:[%s2887_s0 + $0x28] sm:$0xff] }
 0x2ed   :  { %1941 = vtanh.f32 %v345_v36  ;;  %v346_v45 = vsub.f32 0.0, %v345_v36 }
 0x2ee   :  { %1943 = vtanh.f32 %v408_v38  ;;  %v409_v41 = vsub.f32 0.0, %v408_v38 }
 0x2ef   :  { %v347_v46 = vmul.f32 1.442695, %v346_v45 }
 0x2f0   :  { %v410_v42 = vmul.f32 1.442695, %v409_v41 }
 0x2f2   :  { %1945 = vpow2.f32 %v410_v42 }
 0x2f3   :  { %v1942_v39 = vpop.eup %1941 }
 0x2f4   :  { %v1944_v40 = vpop.eup %1943  ;;  %368 = vrot.lane.b32.xlu1 %v1942_v39, %s2097_s2 }
 0x2f5   :  { %431 = vrot.lane.b32.xlu2 %v1944_v40, %s2097_s2  ;;  %v2368_v40 = vpop.f32.mrf.mxu1 }
 0x2f8   :  { %v1946_v43 = vpop.eup %1945 }
 0x2f9   :  { %v412_v44 = vadd.f32 1.0, %v1946_v43 }
 0x2fb   :  { %1947 = vrcp.f32 %v412_v44  ;;  %v424_v53 = vand.u32 2147483648, %v412_v44  ;;  %vm418_vm10 = vweird.f32 %v412_v44  ;;  %v422_v54 = vand.u32 2147483647, %v412_v44 }
 0x2fc   :  { %1949 = vpow2.f32 %v347_v46 }
 0x2fd   :  { %v425_v56 = vor.u32 1.1754944e-38, %v424_v53  ;;  %vm423_vm12 = vcmp.eq.f32.partialorder %v422_v54, 8.507059e+37  ;;  %v2370_v41 = vpop.f32.mrf.mxu1 }
 0x301   :  { %v1948_v21 = vpop.eup %1947 }
 0x302   :  { %v414_v47 = vmul.f32 %v1948_v21, %v412_v44  ;;  %v1950_v49 = vpop.eup %1949  ;;  %vm419_vm9 = vweird.f32 %v1948_v21 }
 0x303   :  { %v349_v51 = vadd.f32 1.0, %v1950_v49  ;;  %vm420_vm11 = vmor %vm418_vm10, %vm419_vm9 }
 0x304   :  { %v415_v48 = vsub.f32 1.0, %v414_v47 }
 0x305   :  { %1951 = vrcp.f32 %v349_v51  ;;  %v361_v1 = vand.u32 2147483648, %v349_v51  ;;  %vm355_vm14 = vweird.f32 %v349_v51  ;;  %v359_v2 = vand.u32 2147483647, %v349_v51 }
 0x306   :  { %v416_v50 = vmul.f32 %v1948_v21, %v415_v48 }
 0x307   :  { %v362_v4 = vor.u32 1.1754944e-38, %v361_v1  ;;  %vm360_vm1 = vcmp.eq.f32.partialorder %v359_v2, 8.507059e+37 }
 0x308   :  { %v417_v52 = vadd.f32 %v1948_v21, %v416_v50 }
 0x30a   :  { %v421_v55 = vsel %vm420_vm11, %v1948_v21, %v417_v52 }
 0x30b   :  { %v426_v58 = vsel %vm423_vm12, %v425_v56, %v421_v55  ;;  %v1952_v59 = vpop.eup %1951 }
 0x30c   :  { %v351_v61 = vmul.f32 %v1952_v59, %v349_v51  ;;  %vm356_vm13 = vweird.f32 %v1952_v59  ;;  %v429_v13 = vmul.f32 %v426_v58, %v2290_v18  ;;  %v39_v18 = vld [vmem:[%s2887_s0 + $0x10] sm:$0xff] }
 0x30d   :  { %vm357_vm15 = vmor %vm355_vm14, %vm356_vm13  ;;  %1846 = vmatmul.msk.f32.gmra.mxu1 %vm59_vm0, %v39_v18  ;;  %1838 = vmatmul.msk.f32.gmra.mxu0 %vm59_vm0, %v39_v18 }
 0x30e   :  { %v352_v62 = vsub.f32 1.0, %v351_v61 }
 0x310   :  { %v353_v63 = vmul.f32 %v1952_v59, %v352_v62 }
 0x312   :  { %v354_v0 = vadd.f32 %v1952_v59, %v353_v63 }
 0x314   :  { %v358_v3 = vsel %vm357_vm15, %v1952_v59, %v354_v0 }
 0x315   :  { %v363_v7 = vsel %vm360_vm1, %v362_v4, %v358_v3 }
 0x316   :  { %v366_v26 = vmul.f32 %v363_v7, %v2286_v6  ;;  %v40_v6 = vld [vmem:[%s2887_s0 + $0x18] sm:$0xff] }
 0x317   :  { %1847 = vmatmul.msk.f32.gmra.mxu1 %vm59_vm0, %v40_v6  ;;  %1839 = vmatmul.msk.f32.gmra.mxu0 %vm59_vm0, %v40_v6 }
 0x31f   :  { %1848 = vmatmul.msk.f32.gmra.mxu1 %vm59_vm0, %v41_v34  ;;  %1840 = vmatmul.msk.f32.gmra.mxu0 %vm59_vm0, %v41_v34 }
 0x327   :  { %1849 = vmatmul.msk.f32.gmra.mxu1 %vm59_vm0, %v42_v37  ;;  %1841 = vmatmul.msk.f32.gmra.mxu0 %vm59_vm0, %v42_v37 }
 0x34f   :  { %v432_v57 = vpop.permute.xlu2 %431 }
 0x350   :  { %v434_v60 = vmul.f32 %v432_v57, %v426_v58 }
 0x352   :  { %436 = vrot.lane.b32.xlu0 %v434_v60, %s2097_s2 }
 0x366   :  { %v369_v5 = vpop.permute.xlu1 %368 }
 0x367   :  { %v371_v8 = vmul.f32 %v369_v5, %v363_v7 }
 0x369   :  { %373 = vrot.lane.b32.xlu0 %v371_v8, %s2097_s2 }
 0x38a   :  { %v2372_v42 = vpop.f32.mrf.mxu1  ;;  %v107_v49 = vpop.f32.mrf.mxu0 }
 0x38b   :  { %v108_v50 = vadd.f32 %v107_v49, %v2276_v25 }
 0x394   :  { %v2374_v43 = vpop.f32.mrf.mxu1 }
 0x39c   :  { %v2376_v44 = vpop.f32.mrf.mxu1 }
 0x3a4   :  { %v157_v45 = vpop.f32.mrf.mxu1 }
 0x3a5   :  { %v158_v21 = vadd.f32 %v157_v45, %v2278_v27 }
 0x3c4   :  { %v437_v19 = vpop.permute.xlu0 %436 }
 0x3c5   :  { %v2323_v22 = vadd.f32 %v437_v19, %v429_v13 }
 0x3c7   :  { %1953 = vtanh.f32 %v2323_v22 }
 0x3cd   :  { %v1954_v24 = vpop.eup %1953 }
 0x3ce   :  { %442 = vrot.lane.b32.xlu2 %v1954_v24, %s2097_s2 }
 0x3db   :  { %v374_v29 = vpop.permute.xlu0 %373 }
 0x3dc   :  { %v2328_v30 = vadd.f32 %v374_v29, %v366_v26 }
 0x3de   :  { %1955 = vtanh.f32 %v2328_v30 }
 0x3e4   :  { %v1956_v31 = vpop.eup %1955 }
 0x3e5   :  { %379 = vrot.lane.b32.xlu2 %v1956_v31, %s2097_s2 }
 0x428   :  { %v443_v32 = vpop.permute.xlu2 %442 }
 0x429   :  { %v2340_v33 = vmul.f32 %v443_v32, %v426_v58 }
 0x42b   :  { %518 = vrot.lane.b32.xlu1 %v2340_v33, %s2098_s18 }
 0x43f   :  { %v380_v35 = vpop.permute.xlu2 %379 }
 0x440   :  { %v382_v36 = vmul.f32 %v380_v35, %v363_v7 }
 0x442   :  { %447 = vrot.lane.b32.xlu0 %v382_v36, %s2098_s18 }
 0x49d   :  { %v519_v38 = vpop.permute.xlu1 %518 }
 0x49e   :  { %1855 = vmatmul.msk.f32.vlgmr.msrb.gmra.mxu3 %vm59_vm0, %v519_v38 }
 0x49f   :  { %802 = vmatpush.msrb.mxu3 %v2194_v9 }
 0x4a1   :  { %803 = vmatpush.msrb.mxu3 %v2206_v11 }
 0x4a3   :  { %804 = vmatpush.msrb.mxu3 %v2221_v14 }
 0x4a5   :  { %805 = vmatpush.msrb.mxu3 %v2233_v16 }
 0x4b4   :  { %v448_v39 = vpop.permute.xlu0 %447 }
 0x4b5   :  { %450 = vst.msk [vmem:[#allocation3 + $0x8] sm:$0xff] %vm59_vm0, %v448_v39  ;;  %1854 = vmatmul.msk.f32.vlgmr.msrb.gmra.mxu2 %vm59_vm0, %v448_v39 }
 0x4b6   :  { %739 = vmatpush.msrb.mxu2 %v2199_v10 }
 0x4b8   :  { %740 = vmatpush.msrb.mxu2 %v2211_v12 }
 0x4ba   :  { %741 = vmatpush.msrb.mxu2 %v2226_v15 }
 0x4bc   :  { %742 = vmatpush.msrb.mxu2 %v2238_v17 }
 0x521   :  { %v539_v46 = vpop.f32.mrf.mxu3 }
 0x522   :  { %v542_v47 = vadd.f32 %v539_v46, %v158_v21 }
 0x524   :  { %1957 = vtanh.f32 %v542_v47  ;;  %v543_v54 = vsub.f32 0.0, %v542_v47 }
 0x526   :  { %v544_v55 = vmul.f32 1.442695, %v543_v54 }
 0x52a   :  { %v1958_v48 = vpop.eup %1957 }
 0x52b   :  { %565 = vrot.lane.b32.xlu1 %v1958_v48, %s2097_s2 }
 0x538   :  { %v476_v51 = vpop.f32.mrf.mxu2 }
 0x539   :  { %v479_v52 = vadd.f32 %v476_v51, %v108_v50 }
 0x53b   :  { %1959 = vtanh.f32 %v479_v52  ;;  %v480_v58 = vsub.f32 0.0, %v479_v52 }
 0x53c   :  { %1961 = vpow2.f32 %v544_v55  ;;  %v110_v55 = vpop.f32.mrf.mxu0 }
 0x53d   :  { %v481_v60 = vmul.f32 1.442695, %v480_v58 }
 0x541   :  { %v1960_v53 = vpop.eup %1959 }
 0x542   :  { %502 = vrot.lane.b32.xlu0 %v1960_v53, %s2097_s2  ;;  %v1962_v56 = vpop.eup %1961 }
 0x543   :  { %v546_v57 = vadd.f32 1.0, %v1962_v56  ;;  %v111_v56 = vadd.f32 %v110_v55, %v2276_v25 }
 0x545   :  { %1963 = vrcp.f32 %v546_v57  ;;  %v558_v3 = vand.u32 2147483648, %v546_v57  ;;  %vm552_vm3 = vweird.f32 %v546_v57  ;;  %v556_v4 = vand.u32 2147483647, %v546_v57 }
 0x546   :  { %1965 = vpow2.f32 %v481_v60 }
 0x547   :  { %v559_v7 = vor.u32 1.1754944e-38, %v558_v3  ;;  %vm557_vm5 = vcmp.eq.f32.partialorder %v556_v4, 8.507059e+37 }
 0x54b   :  { %v1964_v59 = vpop.eup %1963 }
 0x54c   :  { %v548_v61 = vmul.f32 %v1964_v59, %v546_v57  ;;  %v1966_v63 = vpop.eup %1965  ;;  %vm553_vm2 = vweird.f32 %v1964_v59  ;;  %v155_v57 = vadd.f32 %v2376_v44, %v2278_v27 }
 0x54d   :  { %v483_v1 = vadd.f32 1.0, %v1966_v63  ;;  %vm554_vm4 = vmor %vm552_vm3, %vm553_vm2 }
 0x54e   :  { %v549_v62 = vsub.f32 1.0, %v548_v61 }
 0x54f   :  { %1967 = vrcp.f32 %v483_v1  ;;  %v495_v32 = vand.u32 2147483648, %v483_v1  ;;  %vm489_vm7 = vweird.f32 %v483_v1  ;;  %v493_v6 = vand.u32 2147483647, %v483_v1 }
 0x550   :  { %v550_v0 = vmul.f32 %v1964_v59, %v549_v62 }
 0x551   :  { %v496_v35 = vor.u32 1.1754944e-38, %v495_v32  ;;  %vm494_vm9 = vcmp.eq.f32.partialorder %v493_v6, 8.507059e+37 }
 0x552   :  { %v551_v2 = vadd.f32 %v1964_v59, %v550_v0 }
 0x554   :  { %v555_v5 = vsel %vm554_vm4, %v1964_v59, %v551_v2 }
 0x555   :  { %v560_v13 = vsel %vm557_vm5, %v559_v7, %v555_v5  ;;  %v1968_v19 = vpop.eup %1967 }
 0x556   :  { %v485_v26 = vmul.f32 %v1968_v19, %v483_v1  ;;  %vm490_vm6 = vweird.f32 %v1968_v19  ;;  %v563_v39 = vmul.f32 %v560_v13, %v2323_v22 }
 0x557   :  { %vm491_vm8 = vmor %vm489_vm7, %vm490_vm6 }
 0x558   :  { %v486_v29 = vsub.f32 1.0, %v485_v26 }
 0x55a   :  { %v487_v31 = vmul.f32 %v1968_v19, %v486_v29 }
 0x55c   :  { %v488_v18 = vadd.f32 %v1968_v19, %v487_v31 }
 0x55e   :  { %v492_v34 = vsel %vm491_vm8, %v1968_v19, %v488_v18 }
 0x55f   :  { %v497_v37 = vsel %vm494_vm9, %v496_v35, %v492_v34 }
 0x560   :  { %v500_v47 = vmul.f32 %v497_v37, %v2328_v30 }
 0x59d   :  { %v566_v8 = vpop.permute.xlu1 %565 }
 0x59e   :  { %v568_v24 = vmul.f32 %v566_v8, %v560_v13 }
 0x5a0   :  { %570 = vrot.lane.b32.xlu2 %v568_v24, %s2097_s2 }
 0x5b4   :  { %v503_v36 = vpop.permute.xlu0 %502 }
 0x5b5   :  { %v505_v38 = vmul.f32 %v503_v36, %v497_v37 }
 0x5b7   :  { %507 = vrot.lane.b32.xlu2 %v505_v38, %s2097_s2 }
 0x5fa   :  { %v571_v45 = vpop.permute.xlu2 %570 }
 0x5fb   :  { %v2385_v21 = vadd.f32 %v571_v45, %v563_v39 }
 0x5fd   :  { %1969 = vtanh.f32 %v2385_v21 }
 0x603   :  { %v1970_v46 = vpop.eup %1969 }
 0x604   :  { %576 = vrot.lane.b32.xlu1 %v1970_v46, %s2097_s2 }
 0x611   :  { %v508_v48 = vpop.permute.xlu2 %507 }
 0x612   :  { %v2390_v49 = vadd.f32 %v508_v48, %v500_v47 }
 0x614   :  { %1971 = vtanh.f32 %v2390_v49 }
 0x61a   :  { %v1972_v50 = vpop.eup %1971 }
 0x61b   :  { %513 = vrot.lane.b32.xlu1 %v1972_v50, %s2097_s2 }
 0x676   :  { %v577_v51 = vpop.permute.xlu1 %576 }
 0x677   :  { %v2394_v22 = vmul.f32 %v577_v51, %v560_v13 }
 0x679   :  { %652 = vrot.lane.b32.xlu0 %v2394_v22, %s2098_s18 }
 0x68d   :  { %v514_v52 = vpop.permute.xlu1 %513 }
 0x68e   :  { %v516_v53 = vmul.f32 %v514_v52, %v497_v37 }
 0x690   :  { %581 = vrot.lane.b32.xlu2 %v516_v53, %s2098_s18 }
 0x6ea   :  { %v582_v54 = vpop.permute.xlu2 %581 }
 0x6eb   :  { %v653_v30 = vpop.permute.xlu0 %652  ;;  %584 = vst.msk [vmem:[#allocation3 + $0x10] sm:$0xff] %vm59_vm0, %v582_v54  ;;  %1856 = vmatmul.msk.f32.vlgmr.msra.gmra.mxu2 %vm59_vm0, %v582_v54 }
 0x6ec   :  { %1857 = vmatmul.msk.f32.vlgmr.msra.gmra.mxu3 %vm59_vm0, %v653_v30  ;;  %873 = vmatpush.msra.mxu2 %v2199_v10 }
 0x6ed   :  { %936 = vmatpush.msra.mxu3 %v2194_v9 }
 0x6ee   :  { %874 = vmatpush.msra.mxu2 %v2211_v12 }
 0x6ef   :  { %937 = vmatpush.msra.mxu3 %v2206_v11 }
 0x6f0   :  { %875 = vmatpush.msra.mxu2 %v2226_v15 }
 0x6f1   :  { %938 = vmatpush.msra.mxu3 %v2221_v14 }
 0x6f2   :  { %876 = vmatpush.msra.mxu2 %v2238_v17 }
 0x6f3   :  { %939 = vmatpush.msra.mxu3 %v2233_v16 }
 0x76e   :  { %v610_v58 = vpop.f32.mrf.mxu2 }
 0x76f   :  { %v613_v59 = vadd.f32 %v610_v58, %v111_v56  ;;  %v673_v60 = vpop.f32.mrf.mxu3 }
 0x770   :  { %v676_v61 = vadd.f32 %v673_v60, %v155_v57 }
 0x771   :  { %1973 = vtanh.f32 %v613_v59  ;;  %v614_v2 = vsub.f32 0.0, %v613_v59 }
 0x772   :  { %1975 = vtanh.f32 %v676_v61  ;;  %v677_v0 = vsub.f32 0.0, %v676_v61 }
 0x773   :  { %v615_v3 = vmul.f32 1.442695, %v614_v2 }
 0x774   :  { %v678_v1 = vmul.f32 1.442695, %v677_v0 }
 0x776   :  { %1977 = vpow2.f32 %v678_v1 }
 0x777   :  { %v1974_v62 = vpop.eup %1973  ;;  %1979 = vpow2.f32 %v615_v3  ;;  %v113_v3 = vpop.f32.mrf.mxu0 }
 0x778   :  { %v1976_v63 = vpop.eup %1975  ;;  %636 = vrot.lane.b32.xlu2 %v1974_v62, %s2097_s2 }
 0x779   :  { %699 = vrot.lane.b32.xlu0 %v1976_v63, %s2097_s2 }
 0x77c   :  { %v1978_v4 = vpop.eup %1977 }
 0x77d   :  { %v680_v44 = vadd.f32 1.0, %v1978_v4  ;;  %v1980_v5 = vpop.eup %1979  ;;  %v114_v4 = vadd.f32 %v113_v3, %v2276_v25 }
 0x77e   :  { %v617_v7 = vadd.f32 1.0, %v1980_v5 }
 0x77f   :  { %1981 = vrcp.f32 %v680_v44  ;;  %v692_v32 = vand.u32 2147483648, %v680_v44  ;;  %vm686_vm11 = vweird.f32 %v680_v44  ;;  %v690_v6 = vand.u32 2147483647, %v680_v44 }
 0x780   :  { %1983 = vrcp.f32 %v617_v7  ;;  %v629_v46 = vand.u32 2147483648, %v617_v7  ;;  %vm623_vm15 = vweird.f32 %v617_v7  ;;  %v627_v47 = vand.u32 2147483647, %v617_v7 }
 0x781   :  { %v693_v36 = vor.u32 1.1754944e-38, %v692_v32  ;;  %vm691_vm13 = vcmp.eq.f32.partialorder %v690_v6, 8.507059e+37 }
 0x782   :  { %v630_v51 = vor.u32 1.1754944e-38, %v629_v46  ;;  %vm628_vm2 = vcmp.eq.f32.partialorder %v627_v47, 8.507059e+37 }
 0x785   :  { %v1982_v8 = vpop.eup %1981 }
 0x786   :  { %v682_v13 = vmul.f32 %v1982_v8, %v680_v44  ;;  %v1984_v24 = vpop.eup %1983  ;;  %vm687_vm10 = vweird.f32 %v1982_v8 }
 0x787   :  { %v619_v26 = vmul.f32 %v1984_v24, %v617_v7  ;;  %vm688_vm12 = vmor %vm686_vm11, %vm687_vm10  ;;  %vm624_vm14 = vweird.f32 %v1984_v24 }
 0x788   :  { %v683_v19 = vsub.f32 1.0, %v682_v13  ;;  %vm625_vm1 = vmor %vm623_vm15, %vm624_vm14 }
 0x789   :  { %v620_v31 = vsub.f32 1.0, %v619_v26 }
 0x78a   :  { %v684_v29 = vmul.f32 %v1982_v8, %v683_v19 }
 0x78b   :  { %v621_v34 = vmul.f32 %v1984_v24, %v620_v31 }
 0x78c   :  { %v685_v18 = vadd.f32 %v1982_v8, %v684_v29 }
 0x78d   :  { %v622_v39 = vadd.f32 %v1984_v24, %v621_v34 }
 0x78e   :  { %v689_v35 = vsel %vm688_vm12, %v1982_v8, %v685_v18 }
 0x78f   :  { %v694_v38 = vsel %vm691_vm13, %v693_v36, %v689_v35  ;;  %v626_v48 = vsel %vm625_vm1, %v1984_v24, %v622_v39 }
 0x790   :  { %v631_v52 = vsel %vm628_vm2, %v630_v51, %v626_v48  ;;  %v697_v54 = vmul.f32 %v694_v38, %v2385_v21 }
 0x791   :  { %v634_v56 = vmul.f32 %v631_v52, %v2390_v49 }
 0x7d2   :  { %v637_v50 = vpop.permute.xlu2 %636 }
 0x7d3   :  { %v639_v53 = vmul.f32 %v637_v50, %v631_v52 }
 0x7eb   :  { %v700_v37 = vpop.permute.xlu0 %699 }
 0x7ec   :  { %v702_v45 = vmul.f32 %v700_v37, %v694_v38 }
 0x7ee   :  { %704 = vrot.lane.b32.xlu1 %v702_v45, %s2097_s2 }
 0x7f6   :  { %641 = vrot.lane.b32.xlu1 %v639_v53, %s2097_s2 }
 0x860   :  { %v705_v30 = vpop.permute.xlu1 %704 }
 0x861   :  { %v2418_v55 = vadd.f32 %v705_v30, %v697_v54 }
 0x863   :  { %1985 = vtanh.f32 %v2418_v55 }
 0x868   :  { %v642_v57 = vpop.permute.xlu1 %641 }
 0x869   :  { %v1986_v58 = vpop.eup %1985  ;;  %v2422_v59 = vadd.f32 %v642_v57, %v634_v56 }
 0x86a   :  { %710 = vrot.lane.b32.xlu0 %v1986_v58, %s2097_s2 }
 0x86b   :  { %1987 = vtanh.f32 %v2422_v59 }
 0x871   :  { %v1988_v60 = vpop.eup %1987 }
 0x872   :  { %647 = vrot.lane.b32.xlu0 %v1988_v60, %s2097_s2 }
 0x8dc   :  { %v711_v61 = vpop.permute.xlu0 %710 }
 0x8dd   :  { %v2427_v21 = vmul.f32 %v711_v61, %v694_v38 }
 0x8df   :  { %786 = vrot.lane.b32.xlu2 %v2427_v21, %s2098_s18 }
 0x8e4   :  { %v648_v62 = vpop.permute.xlu0 %647 }
 0x8e5   :  { %v650_v63 = vmul.f32 %v648_v62, %v631_v52 }
 0x8e7   :  { %715 = vrot.lane.b32.xlu1 %v650_v63, %s2098_s18 }
 0x939   :  { %v787_v49 = vpop.permute.xlu2 %786 }
 0x93a   :  { %1859 = vmatmul.msk.f32.vlgmr.msrb.gmra.mxu3 %vm59_vm0, %v787_v49 }
 0x93b   :  { %1070 = vmatpush.msrb.mxu3 %v2194_v9  ;;  %v152_v9 = vadd.f32 %v2374_v43, %v2278_v27 }
 0x93d   :  { %1071 = vmatpush.msrb.mxu3 %v2206_v11 }
 0x93f   :  { %1072 = vmatpush.msrb.mxu3 %v2221_v14 }
 0x941   :  { %1073 = vmatpush.msrb.mxu3 %v2233_v16 }
 0x959   :  { %v716_v0 = vpop.permute.xlu1 %715 }
 0x95a   :  { %718 = vst.msk [vmem:[#allocation3 + $0x18] sm:$0xff] %vm59_vm0, %v716_v0  ;;  %1858 = vmatmul.msk.f32.vlgmr.msrb.gmra.mxu2 %vm59_vm0, %v716_v0 }
 0x95b   :  { %1007 = vmatpush.msrb.mxu2 %v2199_v10 }
 0x95d   :  { %1008 = vmatpush.msrb.mxu2 %v2211_v12 }
 0x95f   :  { %1009 = vmatpush.msrb.mxu2 %v2226_v15 }
 0x961   :  { %1010 = vmatpush.msrb.mxu2 %v2238_v17 }
 0x9bd   :  { %v807_v11 = vpop.f32.mrf.mxu3 }
 0x9be   :  { %v810_v1 = vadd.f32 %v807_v11, %v152_v9 }
 0x9c0   :  { %1989 = vtanh.f32 %v810_v1  ;;  %v811_v15 = vsub.f32 0.0, %v810_v1 }
 0x9c2   :  { %v812_v5 = vmul.f32 1.442695, %v811_v15 }
 0x9c6   :  { %v1990_v2 = vpop.eup %1989 }
 0x9c7   :  { %833 = vrot.lane.b32.xlu2 %v1990_v2, %s2097_s2 }
 0x9dd   :  { %v744_v44 = vpop.f32.mrf.mxu2 }
 0x9de   :  { %v747_v10 = vadd.f32 %v744_v44, %v114_v4  ;;  %v2092_v4 = vld [vmem:[%s2888_s4 + $0x10] sm:$0xff] }
 0x9e0   :  { %1991 = vtanh.f32 %v747_v10  ;;  %v748_v36 = vsub.f32 0.0, %v747_v10  ;;  %v2093_v10 = vld [vmem:[%s2889_s3 + $0x18] sm:$0xff] }
 0x9e1   :  { %1993 = vpow2.f32 %v812_v5 }
 0x9e2   :  { %v749_v37 = vmul.f32 1.442695, %v748_v36 }
 0x9e6   :  { %v1992_v12 = vpop.eup %1991 }
 0x9e7   :  { %770 = vrot.lane.b32.xlu1 %v1992_v12, %s2097_s2  ;;  %v1994_v7 = vpop.eup %1993  ;;  %v2094_v12 = vld [vmem:[%s2889_s3 + $0x10] sm:$0xff] }
 0x9e8   :  { %v814_v43 = vadd.f32 1.0, %v1994_v7 }
 0x9ea   :  { %1995 = vrcp.f32 %v814_v43  ;;  %v826_v29 = vand.u32 2147483648, %v814_v43  ;;  %vm820_vm4 = vweird.f32 %v814_v43  ;;  %v824_v31 = vand.u32 2147483647, %v814_v43 }
 0x9eb   :  { %1997 = vpow2.f32 %v749_v37 }
 0x9ec   :  { %v827_v32 = vor.u32 1.1754944e-38, %v826_v29  ;;  %vm825_vm6 = vcmp.eq.f32.partialorder %v824_v31, 8.507059e+37 }
 0x9f0   :  { %v1996_v8 = vpop.eup %1995 }
 0x9f1   :  { %v816_v13 = vmul.f32 %v1996_v8, %v814_v43  ;;  %vm821_vm3 = vweird.f32 %v1996_v8  ;;  %v1998_v38 = vpop.eup %1997  ;;  %v116_v43 = vpop.f32.mrf.mxu0 }
 0x9f2   :  { %vm822_vm5 = vmor %vm820_vm4, %vm821_vm3  ;;  %v751_v39 = vadd.f32 1.0, %v1998_v38 }
 0x9f3   :  { %v817_v19 = vsub.f32 1.0, %v816_v13 }
 0x9f4   :  { %1999 = vrcp.f32 %v751_v39  ;;  %v763_v51 = vand.u32 2147483648, %v751_v39  ;;  %vm757_vm8 = vweird.f32 %v751_v39  ;;  %v761_v52 = vand.u32 2147483647, %v751_v39 }
 0x9f5   :  { %v818_v24 = vmul.f32 %v1996_v8, %v817_v19 }
 0x9f6   :  { %v764_v54 = vor.u32 1.1754944e-38, %v763_v51  ;;  %vm762_vm10 = vcmp.eq.f32.partialorder %v761_v52, 8.507059e+37 }
 0x9f7   :  { %v819_v26 = vadd.f32 %v1996_v8, %v818_v24 }
 0x9f9   :  { %v823_v18 = vsel %vm822_vm5, %v1996_v8, %v819_v26  ;;  %v117_v8 = vadd.f32 %v116_v43, %v2276_v25 }
 0x9fa   :  { %v828_v34 = vsel %vm825_vm6, %v827_v32, %v823_v18  ;;  %v2000_v45 = vpop.eup %1999 }
 0x9fb   :  { %v753_v46 = vmul.f32 %v2000_v45, %v751_v39  ;;  %vm758_vm7 = vweird.f32 %v2000_v45  ;;  %v831_v58 = vmul.f32 %v828_v34, %v2418_v55 }
 0x9fc   :  { %vm759_vm9 = vmor %vm757_vm8, %vm758_vm7 }
 0x9fd   :  { %v754_v47 = vsub.f32 1.0, %v753_v46 }
 0x9ff   :  { %v755_v48 = vmul.f32 %v2000_v45, %v754_v47 }
 0xa01   :  { %v756_v50 = vadd.f32 %v2000_v45, %v755_v48 }
 0xa03   :  { %v760_v53 = vsel %vm759_vm9, %v2000_v45, %v756_v50 }
 0xa04   :  { %v765_v56 = vsel %vm762_vm10, %v764_v54, %v760_v53 }
 0xa05   :  { %v768_v63 = vmul.f32 %v765_v56, %v2422_v59  ;;  %v2091_v59 = vld [vmem:[%s2888_s4 + $0x18] sm:$0xff] }
 0xa21   :  { %v834_v6 = vpop.permute.xlu2 %833 }
 0xa22   :  { %v836_v35 = vmul.f32 %v834_v6, %v828_v34 }
 0xa24   :  { %838 = vrot.lane.b32.xlu0 %v836_v35, %s2097_s2 }
 0xa59   :  { %v771_v30 = vpop.permute.xlu1 %770 }
 0xa5a   :  { %v773_v57 = vmul.f32 %v771_v30, %v765_v56 }
 0xa5c   :  { %775 = vrot.lane.b32.xlu0 %v773_v57, %s2097_s2 }
 0xa96   :  { %v839_v60 = vpop.permute.xlu0 %838 }
 0xa97   :  { %v2451_v61 = vadd.f32 %v839_v60, %v831_v58 }
 0xa99   :  { %2001 = vtanh.f32 %v2451_v61 }
 0xa9f   :  { %v2002_v62 = vpop.eup %2001 }
 0xaa0   :  { %844 = vrot.lane.b32.xlu2 %v2002_v62, %s2097_s2 }
 0xace   :  { %v776_v49 = vpop.permute.xlu0 %775 }
 0xacf   :  { %v2456_v0 = vadd.f32 %v776_v49, %v768_v63 }
 0xad1   :  { %2003 = vtanh.f32 %v2456_v0 }
 0xad7   :  { %v2004_v9 = vpop.eup %2003 }
 0xad8   :  { %781 = vrot.lane.b32.xlu2 %v2004_v9, %s2097_s2 }
 0xafa   :  { %v845_v11 = vpop.permute.xlu2 %844 }
 0xafb   :  { %v2460_v55 = vmul.f32 %v845_v11, %v828_v34 }
 0xafd   :  { %920 = vrot.lane.b32.xlu1 %v2460_v55, %s2098_s18 }
 0xb32   :  { %v782_v1 = vpop.permute.xlu2 %781 }
 0xb33   :  { %v784_v2 = vmul.f32 %v782_v1, %v765_v56 }
 0xb35   :  { %849 = vrot.lane.b32.xlu0 %v784_v2, %s2098_s18 }
 0xb6f   :  { %v921_v3 = vpop.permute.xlu1 %920 }
 0xb70   :  { %1861 = vmatmul.msk.f32.vlgmr.msra.gmra.mxu3 %vm59_vm0, %v921_v3 }
 0xb71   :  { %1204 = vmatpush.msra.mxu3 %v2091_v59 }
 0xb73   :  { %1205 = vmatpush.msra.mxu3 %v2092_v4 }
 0xb75   :  { %1206 = vmatpush.msra.mxu3 %v2221_v14  ;;  %v2095_v14 = vld [vmem:[%s2889_s3 + $0x8] sm:$0xff]  ;;  %s2099_s3 = smov 96  }
 0xb77   :  { %1207 = vmatpush.msra.mxu3 %v2233_v16  ;;  %v149_v16 = vadd.f32 %v2372_v42, %v2278_v27 }
 0xba7   :  { %v2474_v44 = vpop.permute.xlu0 %849 }
 0xba8   :  { %1860 = vmatmul.msk.f32.vlgmr.msra.gmra.mxu2 %vm59_vm0, %v2474_v44 }
 0xba9   :  { %1141 = vmatpush.msra.mxu2 %v2093_v10 }
 0xbab   :  { %1142 = vmatpush.msra.mxu2 %v2094_v12 }
 0xbad   :  { %1143 = vmatpush.msra.mxu2 %v2095_v14 }
 0xbaf   :  { %1144 = vmatpush.msra.mxu2 %v2238_v17 }
 0xbf3   :  { %v941_v15 = vpop.f32.mrf.mxu3 }
 0xbf4   :  { %v944_v5 = vadd.f32 %v941_v15, %v149_v16 }
 0xbf6   :  { %2005 = vtanh.f32 %v944_v5  ;;  %v945_v26 = vsub.f32 0.0, %v944_v5 }
 0xbf8   :  { %v946_v17 = vmul.f32 1.442695, %v945_v26 }
 0xbfc   :  { %v2006_v7 = vpop.eup %2005 }
 0xbfd   :  { %967 = vrot.lane.b32.xlu1 %v2006_v7, %s2097_s2  ;;  %v146_v7 = vadd.f32 %v2370_v41, %v2278_v27 }
 0xc2b   :  { %v878_v13 = vpop.f32.mrf.mxu2 }
 0xc2c   :  { %v881_v19 = vadd.f32 %v878_v13, %v117_v8 }
 0xc2e   :  { %2007 = vtanh.f32 %v881_v19  ;;  %v882_v47 = vsub.f32 0.0, %v881_v19  ;;  %v120_v19 = vadd.f32 %v2267_v20, %v2276_v25 }
 0xc2f   :  { %2009 = vpow2.f32 %v946_v17 }
 0xc30   :  { %v883_v48 = vmul.f32 1.442695, %v882_v47 }
 0xc34   :  { %v2008_v24 = vpop.eup %2007 }
 0xc35   :  { %904 = vrot.lane.b32.xlu0 %v2008_v24, %s2097_s2  ;;  %v2010_v29 = vpop.eup %2009 }
 0xc36   :  { %v948_v42 = vadd.f32 1.0, %v2010_v29 }
 0xc38   :  { %2011 = vrcp.f32 %v948_v42  ;;  %v960_v35 = vand.u32 2147483648, %v948_v42  ;;  %vm954_vm12 = vweird.f32 %v948_v42  ;;  %v958_v36 = vand.u32 2147483647, %v948_v42 }
 0xc39   :  { %2013 = vpow2.f32 %v883_v48 }
 0xc3a   :  { %v961_v38 = vor.u32 1.1754944e-38, %v960_v35  ;;  %vm959_vm14 = vcmp.eq.f32.partialorder %v958_v36, 8.507059e+37 }
 0xc3e   :  { %v2012_v31 = vpop.eup %2011 }
 0xc3f   :  { %v950_v18 = vmul.f32 %v2012_v31, %v948_v42  ;;  %vm955_vm11 = vweird.f32 %v2012_v31  ;;  %v2014_v50 = vpop.eup %2013 }
 0xc40   :  { %vm956_vm13 = vmor %vm954_vm12, %vm955_vm11  ;;  %v885_v51 = vadd.f32 1.0, %v2014_v50 }
 0xc41   :  { %v951_v32 = vsub.f32 1.0, %v950_v18 }
 0xc42   :  { %2015 = vrcp.f32 %v885_v51  ;;  %v897_v57 = vand.u32 2147483648, %v885_v51  ;;  %vm891_vm1 = vweird.f32 %v885_v51  ;;  %v895_v58 = vand.u32 2147483647, %v885_v51 }
 0xc43   :  { %v952_v6 = vmul.f32 %v2012_v31, %v951_v32 }
 0xc44   :  { %v898_v62 = vor.u32 1.1754944e-38, %v897_v57  ;;  %vm896_vm3 = vcmp.eq.f32.partialorder %v895_v58, 8.507059e+37 }
 0xc45   :  { %v953_v34 = vadd.f32 %v2012_v31, %v952_v6 }
 0xc47   :  { %v957_v37 = vsel %vm956_vm13, %v2012_v31, %v953_v34 }
 0xc48   :  { %v962_v45 = vsel %vm959_vm14, %v961_v38, %v957_v37  ;;  %v2016_v52 = vpop.eup %2015 }
 0xc49   :  { %v887_v53 = vmul.f32 %v2016_v52, %v885_v51  ;;  %vm892_vm15 = vweird.f32 %v2016_v52  ;;  %v965_v11 = vmul.f32 %v962_v45, %v2451_v61 }
 0xc4a   :  { %vm893_vm2 = vmor %vm891_vm1, %vm892_vm15 }
 0xc4b   :  { %v888_v54 = vsub.f32 1.0, %v887_v53 }
 0xc4d   :  { %v889_v30 = vmul.f32 %v2016_v52, %v888_v54 }
 0xc4f   :  { %v890_v56 = vadd.f32 %v2016_v52, %v889_v30 }
 0xc51   :  { %v894_v60 = vsel %vm893_vm2, %v2016_v52, %v890_v56 }
 0xc52   :  { %v899_v49 = vsel %vm896_vm3, %v898_v62, %v894_v60 }
 0xc53   :  { %v902_v59 = vmul.f32 %v899_v49, %v2456_v0 }
 0xc6f   :  { %v968_v39 = vpop.permute.xlu1 %967 }
 0xc70   :  { %v970_v46 = vmul.f32 %v968_v39, %v962_v45 }
 0xc72   :  { %972 = vrot.lane.b32.xlu2 %v970_v46, %s2097_s2 }
 0xca7   :  { %v905_v63 = vpop.permute.xlu0 %904 }
 0xca8   :  { %v907_v9 = vmul.f32 %v905_v63, %v899_v49 }
 0xcaa   :  { %909 = vrot.lane.b32.xlu2 %v907_v9, %s2097_s2 }
 0xccc   :  { %v973_v1 = vpop.permute.xlu2 %972 }
 0xccd   :  { %v2496_v2 = vadd.f32 %v973_v1, %v965_v11 }
 0xccf   :  { %2017 = vtanh.f32 %v2496_v2 }
 0xcd5   :  { %v2018_v3 = vpop.eup %2017 }
 0xcd6   :  { %978 = vrot.lane.b32.xlu1 %v2018_v3, %s2097_s2 }
 0xd04   :  { %v910_v4 = vpop.permute.xlu2 %909 }
 0xd05   :  { %v2501_v10 = vadd.f32 %v910_v4, %v902_v59 }
 0xd07   :  { %2019 = vtanh.f32 %v2501_v10 }
 0xd0d   :  { %v2020_v12 = vpop.eup %2019 }
 0xd0e   :  { %915 = vrot.lane.b32.xlu1 %v2020_v12, %s2097_s2 }
 0xd48   :  { %v979_v14 = vpop.permute.xlu1 %978 }
 0xd49   :  { %v2505_v61 = vmul.f32 %v979_v14, %v962_v45 }
 0xd4b   :  { %1054 = vrot.lane.b32.xlu0 %v2505_v61, %s2098_s18 }
 0xd80   :  { %v916_v16 = vpop.permute.xlu1 %915 }
 0xd81   :  { %v918_v15 = vmul.f32 %v916_v16, %v899_v49 }
 0xd83   :  { %983 = vrot.lane.b32.xlu2 %v918_v15, %s2098_s18 }
 0xdbd   :  { %v1055_v5 = vpop.permute.xlu0 %1054 }
 0xdbe   :  { %1863 = vmatmul.msk.f32.vlgmr.msrb.gmra.mxu3 %vm59_vm0, %v1055_v5 }
 0xddd   :  { %v2511_v0 = vpop.permute.xlu2 %983 }
 0xdde   :  { %1862 = vmatmul.msk.f32.vlgmr.msrb.gmra.mxu2 %vm59_vm0, %v2511_v0 }
 0xe41   :  { %v1075_v43 = vpop.f32.mrf.mxu3 }
 0xe42   :  { %v1078_v8 = vadd.f32 %v1075_v43, %v146_v7 }
 0xe44   :  { %2021 = vtanh.f32 %v1078_v8  ;;  %v1079_v29 = vsub.f32 0.0, %v1078_v8  ;;  %v143_v8 = vadd.f32 %v2368_v40, %v2278_v27 }
 0xe46   :  { %v1080_v42 = vmul.f32 1.442695, %v1079_v29 }
 0xe4a   :  { %v2022_v13 = vpop.eup %2021 }
 0xe4b   :  { %1101 = vrot.lane.b32.xlu0 %v2022_v13, %s2097_s2 }
 0xe61   :  { %v1012_v24 = vpop.f32.mrf.mxu2 }
 0xe62   :  { %v1015_v26 = vadd.f32 %v1012_v24, %v120_v19 }
 0xe64   :  { %2023 = vtanh.f32 %v1015_v26  ;;  %v1016_v31 = vsub.f32 0.0, %v1015_v26  ;;  %v123_v26 = vadd.f32 %v2274_v23, %v2276_v25 }
 0xe65   :  { %2025 = vpow2.f32 %v1080_v42 }
 0xe66   :  { %v1017_v41 = vmul.f32 1.442695, %v1016_v31 }
 0xe68   :  { %2027 = vpow2.f32 %v1017_v41 }
 0xe6a   :  { %v2024_v17 = vpop.eup %2023 }
 0xe6b   :  { %1038 = vrot.lane.b32.xlu2 %v2024_v17, %s2097_s2  ;;  %v2026_v18 = vpop.eup %2025 }
 0xe6c   :  { %v1082_v32 = vadd.f32 1.0, %v2026_v18 }
 0xe6e   :  { %2029 = vrcp.f32 %v1082_v32  ;;  %v2028_v6 = vpop.eup %2027  ;;  %v1094_v47 = vand.u32 2147483648, %v1082_v32  ;;  %vm1088_vm5 = vweird.f32 %v1082_v32  ;;  %v1092_v48 = vand.u32 2147483647, %v1082_v32 }
 0xe6f   :  { %v1019_v34 = vadd.f32 1.0, %v2028_v6 }
 0xe70   :  { %v1095_v52 = vor.u32 1.1754944e-38, %v1094_v47  ;;  %vm1093_vm7 = vcmp.eq.f32.partialorder %v1092_v48, 8.507059e+37 }
 0xe71   :  { %2031 = vrcp.f32 %v1019_v34  ;;  %v1031_v57 = vand.u32 2147483648, %v1019_v34  ;;  %vm1025_vm9 = vweird.f32 %v1019_v34  ;;  %v1029_v58 = vand.u32 2147483647, %v1019_v34 }
 0xe73   :  { %v1032_v62 = vor.u32 1.1754944e-38, %v1031_v57  ;;  %vm1030_vm11 = vcmp.eq.f32.partialorder %v1029_v58, 8.507059e+37 }
 0xe74   :  { %v2030_v35 = vpop.eup %2029 }
 0xe75   :  { %v1084_v20 = vmul.f32 %v2030_v35, %v1082_v32  ;;  %vm1089_vm4 = vweird.f32 %v2030_v35 }
 0xe76   :  { %vm1090_vm6 = vmor %vm1088_vm5, %vm1089_vm4  ;;  %vm320_vm5 = vcmask 523520  }
 0xe77   :  { %v1085_v36 = vsub.f32 1.0, %v1084_v20  ;;  %v2032_v37 = vpop.eup %2031 }
 0xe78   :  { %v1021_v39 = vmul.f32 %v2032_v37, %v1019_v34  ;;  %vm1026_vm8 = vweird.f32 %v2032_v37 }
 0xe79   :  { %v1086_v38 = vmul.f32 %v2030_v35, %v1085_v36  ;;  %vm1027_vm10 = vmor %vm1025_vm9, %vm1026_vm8  ;;  %vm1617_vm8 = vcmask 1048064   ;;  %vm1813_vm9 = vcmask 39936  }
 0xe7a   :  { %v1022_v46 = vsub.f32 1.0, %v1021_v39 }
 0xe7b   :  { %v1087_v45 = vadd.f32 %v2030_v35, %v1086_v38 }
 0xe7c   :  { %v1023_v51 = vmul.f32 %v2032_v37, %v1022_v46 }
 0xe7d   :  { %v1091_v50 = vsel %vm1090_vm6, %v2030_v35, %v1087_v45  ;;  %vm1276_vm6 = vcmask 523264  }
 0xe7e   :  { %v1096_v54 = vsel %vm1093_vm7, %v1095_v52, %v1091_v50  ;;  %v1024_v56 = vadd.f32 %v2032_v37, %v1023_v51  ;;  %vm1356_vm7 = vcmask 130048  }
 0xe7f   :  { %v1099_v11 = vmul.f32 %v1096_v54, %v2496_v2 }
 0xe80   :  { %v1028_v60 = vsel %vm1027_vm10, %v2032_v37, %v1024_v56 }
 0xe81   :  { %v1033_v49 = vsel %vm1030_vm11, %v1032_v62, %v1028_v60 }
 0xe82   :  { %v1036_v59 = vmul.f32 %v1033_v49, %v2501_v10 }
 0xebd   :  { %v1102_v53 = vpop.permute.xlu0 %1101 }
 0xebe   :  { %v1104_v30 = vmul.f32 %v1102_v53, %v1096_v54 }
 0xec0   :  { %1106 = vrot.lane.b32.xlu1 %v1104_v30, %s2097_s2 }
 0xec5   :  { %v1039_v63 = vpop.permute.xlu2 %1038 }
 0xec6   :  { %v1041_v9 = vmul.f32 %v1039_v63, %v1033_v49 }
 0xec8   :  { %1043 = vrot.lane.b32.xlu1 %v1041_v9, %s2097_s2 }
 0xf32   :  { %v1107_v1 = vpop.permute.xlu1 %1106 }
 0xf33   :  { %v2524_v3 = vadd.f32 %v1107_v1, %v1099_v11 }
 0xf35   :  { %2033 = vtanh.f32 %v2524_v3 }
 0xf3a   :  { %v1044_v4 = vpop.permute.xlu1 %1043 }
 0xf3b   :  { %v2034_v12 = vpop.eup %2033  ;;  %v2528_v14 = vadd.f32 %v1044_v4, %v1036_v59 }
 0xf3c   :  { %1112 = vrot.lane.b32.xlu0 %v2034_v12, %s2097_s2 }
 0xf3d   :  { %2035 = vtanh.f32 %v2528_v14 }
 0xf43   :  { %v2036_v16 = vpop.eup %2035 }
 0xf44   :  { %1049 = vrot.lane.b32.xlu0 %v2036_v16, %s2097_s2 }
 0xfae   :  { %v1113_v15 = vpop.permute.xlu0 %1112 }
 0xfaf   :  { %v2533_v2 = vmul.f32 %v1113_v15, %v1096_v54 }
 0xfb1   :  { %1188 = vrot.lane.b32.xlu2 %v2533_v2, %s2098_s18 }
 0xfb6   :  { %v1050_v5 = vpop.permute.xlu0 %1049 }
 0xfb7   :  { %v1052_v7 = vmul.f32 %v1050_v5, %v1033_v49 }
 0xfb9   :  { %1117 = vrot.lane.b32.xlu1 %v1052_v7, %s2098_s18  ;;  %v1271_v7 = vld [vmem:[%s2891_s5 + $0x18] sm:$0xff] }
0x100b   :  { %v1189_v10 = vpop.permute.xlu2 %1188 }
0x100c   :  { %1865 = vmatmul.msk.f32.vlgmr.msra.gmra.mxu3 %vm59_vm0, %v1189_v10  ;;  %v1270_v10 = vld [vmem:[%s2891_s5 + $0x10] sm:$0xff] }
0x102b   :  { %v2539_v43 = vpop.permute.xlu1 %1117 }
0x102c   :  { %1864 = vmatmul.msk.f32.vlgmr.msra.gmra.mxu2 %vm59_vm0, %v2539_v43 }
0x108f   :  { %v1209_v13 = vpop.f32.mrf.mxu3 }
0x1090   :  { %v1212_v19 = vadd.f32 %v1209_v13, %v143_v8  ;;  %v1269_v8 = vld [vmem:[%s2891_s5 + $0x8] sm:$0xff]  ;;  %v1268_v13 = vld [vmem:[%s2891_s5] sm:$0xff] }
0x1092   :  { %2037 = vtanh.f32 %v1212_v19  ;;  %v1213_v31 = vsub.f32 0.0, %v1212_v19 }
0x1094   :  { %v1214_v41 = vmul.f32 1.442695, %v1213_v31 }
0x1098   :  { %v2038_v24 = vpop.eup %2037 }
0x1099   :  { %1235 = vrot.lane.b32.xlu2 %v2038_v24, %s2097_s2 }
0x10af   :  { %v1146_v17 = vpop.f32.mrf.mxu2 }
0x10b0   :  { %v1149_v29 = vadd.f32 %v1146_v17, %v123_v26 }
0x10b2   :  { %2039 = vtanh.f32 %v1149_v29  ;;  %v1150_v45 = vsub.f32 0.0, %v1149_v29 }
0x10b3   :  { %2041 = vpow2.f32 %v1214_v41 }
0x10b4   :  { %v1151_v46 = vmul.f32 1.442695, %v1150_v45 }
0x10b8   :  { %v2040_v42 = vpop.eup %2039 }
0x10b9   :  { %1172 = vrot.lane.b32.xlu1 %v2040_v42, %s2097_s2  ;;  %v2042_v18 = vpop.eup %2041 }
0x10ba   :  { %v1216_v27 = vadd.f32 1.0, %v2042_v18 }
0x10bc   :  { %2043 = vrcp.f32 %v1216_v27  ;;  %v1228_v20 = vand.u32 2147483648, %v1216_v27  ;;  %vm1222_vm13 = vweird.f32 %v1216_v27  ;;  %v1226_v23 = vand.u32 2147483647, %v1216_v27 }
0x10bd   :  { %2045 = vpow2.f32 %v1151_v46 }
0x10be   :  { %v1229_v36 = vor.u32 1.1754944e-38, %v1228_v20  ;;  %vm1227_vm15 = vcmp.eq.f32.partialorder %v1226_v23, 8.507059e+37 }
0x10c2   :  { %v2044_v40 = vpop.eup %2043 }
0x10c3   :  { %v1218_v32 = vmul.f32 %v2044_v40, %v1216_v27  ;;  %vm1223_vm12 = vweird.f32 %v2044_v40  ;;  %v2046_v47 = vpop.eup %2045  ;;  %v1351_v27 = vld [vmem:[%s2892_s6 + $0x8] sm:$0xff] }
0x10c4   :  { %vm1224_vm14 = vmor %vm1222_vm13, %vm1223_vm12  ;;  %v1153_v48 = vadd.f32 1.0, %v2046_v47  ;;  %1395 = vmatpush.msrb.mxu1 %v1351_v27 }
0x10c5   :  { %v1219_v6 = vsub.f32 1.0, %v1218_v32 }
0x10c6   :  { %2047 = vrcp.f32 %v1153_v48  ;;  %v1165_v30 = vand.u32 2147483648, %v1153_v48  ;;  %vm1159_vm2 = vweird.f32 %v1153_v48  ;;  %v1163_v56 = vand.u32 2147483647, %v1153_v48 }
0x10c7   :  { %v1220_v34 = vmul.f32 %v2044_v40, %v1219_v6  ;;  %v1350_v6 = vld [vmem:[%s2892_s6] sm:$0xff] }
0x10c8   :  { %v1166_v58 = vor.u32 1.1754944e-38, %v1165_v30  ;;  %vm1164_vm4 = vcmp.eq.f32.partialorder %v1163_v56, 8.507059e+37  ;;  %1396 = vmatpush.msrb.mxu1 %v1350_v6 }
0x10c9   :  { %v1221_v35 = vadd.f32 %v2044_v40, %v1220_v34 }
0x10cb   :  { %v1225_v25 = vsel %vm1224_vm14, %v2044_v40, %v1221_v35 }
0x10cc   :  { %v1230_v38 = vsel %vm1227_vm15, %v1229_v36, %v1225_v25  ;;  %v2048_v50 = vpop.eup %2047 }
0x10cd   :  { %v1155_v51 = vmul.f32 %v2048_v50, %v1153_v48  ;;  %vm1160_vm1 = vweird.f32 %v2048_v50  ;;  %v1233_v49 = vmul.f32 %v1230_v38, %v2524_v3 }
0x10ce   :  { %vm1161_vm3 = vmor %vm1159_vm2, %vm1160_vm1 }
0x10cf   :  { %v1156_v52 = vsub.f32 1.0, %v1155_v51 }
0x10d1   :  { %v1157_v53 = vmul.f32 %v2048_v50, %v1156_v52 }
0x10d3   :  { %v1158_v54 = vadd.f32 %v2048_v50, %v1157_v53 }
0x10d5   :  { %v1162_v57 = vsel %vm1161_vm3, %v2048_v50, %v1158_v54 }
0x10d6   :  { %v1167_v62 = vsel %vm1164_vm4, %v1166_v58, %v1162_v57 }
0x10d7   :  { %v1170_v59 = vmul.f32 %v1167_v62, %v2528_v14 }
0x10f3   :  { %v1236_v37 = vpop.permute.xlu2 %1235 }
0x10f4   :  { %v1238_v39 = vmul.f32 %v1236_v37, %v1230_v38 }
0x10f6   :  { %1240 = vrot.lane.b32.xlu0 %v1238_v39, %s2097_s2 }
0x112b   :  { %v1173_v60 = vpop.permute.xlu1 %1172 }
0x112c   :  { %v1175_v63 = vmul.f32 %v1173_v60, %v1167_v62 }
0x112e   :  { %1177 = vrot.lane.b32.xlu0 %v1175_v63, %s2097_s2 }
0x1168   :  { %v1241_v9 = vpop.permute.xlu0 %1240 }
0x1169   :  { %v1243_v11 = vadd.f32 %v1241_v9, %v1233_v49 }
0x116b   :  { %2049 = vtanh.f32 %v1243_v11 }
0x1171   :  { %v2050_v1 = vpop.eup %2049 }
0x1172   :  { %1246 = vrot.lane.b32.xlu2 %v2050_v1, %s2097_s2 }
0x117a   :  { %1122 = vrot.lane.b32.xlu2 %v2533_v2, %s2099_s3 }
0x1182   :  { %854 = vrot.lane.b32.xlu2 %v2460_v55, %s2099_s3 }
0x118a   :  { %452 = vrot.lane.b32.xlu2 %v2340_v33, %s2099_s3 }
0x11a0   :  { %v1178_v4 = vpop.permute.xlu0 %1177 }
0x11a1   :  { %v1180_v12 = vadd.f32 %v1178_v4, %v1170_v59 }
0x11a3   :  { %2051 = vtanh.f32 %v1180_v12 }
0x11a9   :  { %v2052_v16 = vpop.eup %2051 }
0x11aa   :  { %1183 = vrot.lane.b32.xlu0 %v2052_v16, %s2097_s2 }
0x11b2   :  { %720 = vrot.lane.b32.xlu0 %v2427_v21, %s2099_s3  ;;  %v1274_v21 = vld [vmem:[%s2891_s5 + $0x30] sm:$0xff] }
0x11ba   :  { %317 = vrot.lane.b32.xlu0 %v2295_v28, %s2099_s3  ;;  %v1275_v28 = vld [vmem:[%s2891_s5 + $0x38] sm:$0xff] }
0x11bb   :  { %1309 = vmatpush.msrb.mxu0 %v1275_v28 }
0x11bd   :  { %1310 = vmatpush.msrb.mxu0 %v1274_v21 }
0x11cc   :  { %v1247_v3 = vpop.permute.xlu2 %1246 }
0x11cd   :  { %v1249_v15 = vmul.f32 %v1247_v3, %v1230_v38 }
0x11cf   :  { %1256 = vrot.lane.b32.xlu1 %v1249_v15, %s2099_s3 }
0x11d4   :  { %v1123_v2 = vpop.permute.xlu2 %1122 }
0x11d5   :  { %1125 = vst.msk [vmem:[#allocation3 + $0x8] sm:$0xff] %vm320_vm5, %v1123_v2 }
0x11d7   :  { %988 = vrot.lane.b32.xlu1 %v2505_v61, %s2099_s3  ;;  %v1273_v61 = vld [vmem:[%s2891_s5 + $0x28] sm:$0xff] }
0x11d8   :  { %1311 = vmatpush.msrb.mxu0 %v1273_v61 }
0x11dc   :  { %v855_v33 = vpop.permute.xlu2 %854  ;;  %v2602_v29 = vld [vmem:[#allocation3 + $0x8] sm:$0xff] }
0x11dd   :  { %857 = vst.msk [vmem:[#allocation3 + $0x18] sm:$0xff] %vm320_vm5, %v855_v33 }
0x11df   :  { %586 = vrot.lane.b32.xlu1 %v2394_v22, %s2099_s3  ;;  %v1272_v22 = vld [vmem:[%s2891_s5 + $0x20] sm:$0xff] }
0x11e0   :  { %1312 = vmatpush.msrb.mxu0 %v1272_v22 }
0x11e2   :  { %1313 = vmatpush.msrb.mxu0 %v1271_v7 }
0x11e4   :  { %v453_v55 = vpop.permute.xlu2 %452  ;;  %1314 = vmatpush.msrb.mxu0 %v1270_v10  ;;  %v2613_v31 = vld [vmem:[#allocation3 + $0x18] sm:$0xff] }
0x11e5   :  { %455 = vst.msk [vmem:[#allocation3 + $0x30] sm:$0xff] %vm320_vm5, %v453_v55 }
0x11e6   :  { %1120 = vst.msk [vmem:[#allocation3 + $0x30] sm:$0xff] %vm59_vm0, %v2539_v43  ;;  %1315 = vmatpush.msrb.mxu0 %v1269_v8 }
0x11e8   :  { %1316 = vmatpush.msrb.mxu0 %v1268_v13 }
0x121c   :  { %v1184_v14 = vpop.permute.xlu0 %1183 }
0x121d   :  { %v1186_v5 = vmul.f32 %v1184_v14, %v1167_v62  ;;  %v1923_v62 = vld [vmem:[%s2893_s7] ss:$0 sm:$0xff] }
0x121f   :  { %1251 = vrot.lane.b32.xlu1 %v1186_v5, %s2098_s18 }
0x1224   :  { %v721_v43 = vpop.permute.xlu0 %720 }
0x1225   :  { %723 = vst.msk [vmem:[#allocation3 + $0x20] sm:$0xff] %vm320_vm5, %v721_v43 }
0x1226   :  { %852 = vst.msk [vmem:[#allocation3 + $0x20] sm:$0xff] %vm59_vm0, %v2474_v44 }
0x122c   :  { %v318_v19 = vpop.permute.xlu0 %317 }
0x122d   :  { %321 = vst.msk [vmem:[#allocation3 + $0x38] sm:$0xff] %vm320_vm5, %v318_v19  ;;  %v2617_v41 = vld [vmem:[#allocation3 + $0x20] sm:$0xff] }
0x1241   :  { %v1257_v24 = vpop.permute.xlu1 %1256 }
0x1242   :  { %1259 = vst.msk [vmem:[#allocation3] sm:$0xff] %vm320_vm5, %v1257_v24 }
0x1249   :  { %v989_v26 = vpop.permute.xlu1 %988  ;;  %v2597_v17 = vld [vmem:[#allocation3] sm:$0xff] }
0x124a   :  { %991 = vst.msk [vmem:[#allocation3 + $0x10] sm:$0xff] %vm320_vm5, %v989_v26  ;;  %1866 = vmatmul.msk.f32.vlgmr.msrb.gmra.mxu0 %vm1276_vm6, %v2597_v17 }
0x1251   :  { %v587_v44 = vpop.permute.xlu1 %586  ;;  %v2609_v42 = vld [vmem:[#allocation3 + $0x10] sm:$0xff] }
0x1252   :  { %589 = vst.msk [vmem:[#allocation3 + $0x28] sm:$0xff] %vm320_vm5, %v587_v44  ;;  %1867 = vmatmul.msk.f32.gmra.mxu0 %vm1276_vm6, %v2602_v29 }
0x1253   :  { %986 = vst.msk [vmem:[#allocation3 + $0x28] sm:$0xff] %vm59_vm0, %v2511_v0  ;;  %v2625_v0 = vld [vmem:[#allocation3 + $0x30] sm:$0xff] }
0x125a   :  { %1868 = vmatmul.msk.f32.gmra.mxu0 %vm1276_vm6, %v2609_v42  ;;  %v2621_v18 = vld [vmem:[#allocation3 + $0x28] sm:$0xff] }
0x1262   :  { %1869 = vmatmul.msk.f32.gmra.mxu0 %vm1276_vm6, %v2613_v31 }
0x126a   :  { %1870 = vmatmul.msk.f32.gmra.mxu0 %vm1276_vm6, %v2617_v41 }
0x1272   :  { %1871 = vmatmul.msk.f32.gmra.mxu0 %vm1276_vm6, %v2621_v18 }
0x127a   :  { %1872 = vmatmul.msk.f32.gmra.mxu0 %vm1276_vm6, %v2625_v0 }
0x1291   :  { %v1252_v40 = vpop.permute.xlu1 %1251 }
0x1292   :  { %1254 = vst.msk [vmem:[#allocation3 + $0x38] sm:$0xff] %vm59_vm0, %v1252_v40  ;;  %vm1422_vm0 = vcmask 31744  }
0x1299   :  { %v2633_v32 = vld [vmem:[#allocation3 + $0x38] sm:$0xff] }
0x129a   :  { %1873 = vmatmul.msk.f32.gmra.mxu0 %vm1276_vm6, %v2633_v32 }
0x12c7   :  { %v1318_v34 = vpop.f32.mrf.mxu0 }
0x12c8   :  { %2053 = vtanh.f32 %v1318_v34 }
0x12ce   :  { %v2054_v35 = vpop.eup %2053 }
0x12cf   :  { %v1321_v20 = vpop.f32.mrf.mxu0  ;;  %1874 = vmatmul.msk.f32.vlgmr.msrb.gmra.mxu1 %vm1356_vm7, %v2054_v35 }
0x12d0   :  { %2055 = vtanh.f32 %v1321_v20 }
0x12d6   :  { %v2056_v23 = vpop.eup %2055 }
0x12d7   :  { %v1324_v25 = vpop.f32.mrf.mxu0  ;;  %1875 = vmatmul.msk.f32.gmra.mxu1 %vm1356_vm7, %v2056_v23 }
0x12d8   :  { %2057 = vtanh.f32 %v1324_v25  ;;  %v2100_v25 = vmov 1  }
0x12d9   :  { %1900 = vset.pattern.permute.xlu1 %v2100_v25  ;;  %1899 = vset.pattern.permute.xlu0 %v2100_v25 }
0x12da   :  { %1898 = vset.pattern.permute.xlu2 %v2100_v25 }
0x12de   :  { %v2058_v36 = vpop.eup %2057 }
0x12df   :  { %v1327_v37 = vpop.f32.mrf.mxu0  ;;  %1876 = vmatmul.msk.f32.gmra.mxu1 %vm1356_vm7, %v2058_v36 }
0x12e0   :  { %2059 = vtanh.f32 %v1327_v37 }
0x12e6   :  { %v2060_v38 = vpop.eup %2059 }
0x12e7   :  { %v1330_v39 = vpop.f32.mrf.mxu0  ;;  %1877 = vmatmul.msk.f32.gmra.mxu1 %vm1356_vm7, %v2060_v38 }
0x12e8   :  { %2061 = vtanh.f32 %v1330_v39 }
0x12ee   :  { %v2062_v45 = vpop.eup %2061 }
0x12ef   :  { %v1333_v46 = vpop.f32.mrf.mxu0  ;;  %1878 = vmatmul.msk.f32.gmra.mxu1 %vm1356_vm7, %v2062_v45 }
0x12f0   :  { %2063 = vtanh.f32 %v1333_v46 }
0x12f6   :  { %v2064_v47 = vpop.eup %2063 }
0x12f7   :  { %v1336_v48 = vpop.f32.mrf.mxu0  ;;  %1879 = vmatmul.msk.f32.gmra.mxu1 %vm1356_vm7, %v2064_v47 }
0x12f8   :  { %2065 = vtanh.f32 %v1336_v48 }
0x12fe   :  { %v2066_v50 = vpop.eup %2065 }
0x12ff   :  { %1880 = vmatmul.msk.f32.gmra.mxu1 %vm1356_vm7, %v2066_v50 }
0x1317   :  { %v1339_v51 = vpop.f32.mrf.mxu0 }
0x1318   :  { %2067 = vtanh.f32 %v1339_v51 }
0x131e   :  { %v2068_v52 = vpop.eup %2067 }
0x131f   :  { %1881 = vmatmul.msk.f32.gmra.mxu1 %vm1356_vm7, %v2068_v52 }
0x134c   :  { %v1398_v53 = vpop.f32.mrf.mxu1 }
0x134d   :  { %v1399_v1 = vadd.f32 %v1923_v62, %v1398_v53 }
0x134f   :  { %v1423_v28 = vsel %vm1422_vm0, %v1399_v1, -inf }
0x1354   :  { %v1401_v54 = vpop.f32.mrf.mxu1 }
0x1355   :  { %v1402_v49 = vadd.f32 %v1923_v62, %v1401_v54 }
0x1357   :  { %v1424_v3 = vsel %vm1422_vm0, %v1402_v49, -inf }
0x135c   :  { %v1404_v30 = vpop.f32.mrf.mxu1 }
0x135d   :  { %v1405_v59 = vadd.f32 %v1923_v62, %v1404_v30 }
0x135f   :  { %v1425_v21 = vsel %vm1422_vm0, %v1405_v59, -inf }
0x1364   :  { %v1407_v56 = vpop.f32.mrf.mxu1 }
0x1365   :  { %v1408_v4 = vadd.f32 %v1923_v62, %v1407_v56 }
0x1367   :  { %v1426_v61 = vsel %vm1422_vm0, %v1408_v4, -inf }
0x136c   :  { %v1410_v57 = vpop.f32.mrf.mxu1 }
0x136d   :  { %v1411_v9 = vadd.f32 %v1923_v62, %v1410_v57 }
0x136f   :  { %v1427_v15 = vsel %vm1422_vm0, %v1411_v9, -inf }
0x1370   :  { %v1428_v14 = vmax.f32 %v1423_v28, %v1427_v15 }
0x1374   :  { %v1413_v58 = vpop.f32.mrf.mxu1 }
0x1375   :  { %v1414_v63 = vadd.f32 %v1923_v62, %v1413_v58 }
0x1377   :  { %v1429_v12 = vsel %vm1422_vm0, %v1414_v63, -inf }
0x1378   :  { %v1430_v55 = vmax.f32 %v1424_v3, %v1429_v12 }
0x137a   :  { %v1435_v10 = vmax.f32 %v1428_v14, %v1430_v55  ;;  %v2102_v14 = vmov 0  }
0x137c   :  { %v1416_v60 = vpop.f32.mrf.mxu1 }
0x137d   :  { %v1417_v11 = vadd.f32 %v1923_v62, %v1416_v60 }
0x137f   :  { %v1431_v2 = vsel %vm1422_vm0, %v1417_v11, -inf }
0x1380   :  { %v1432_v5 = vmax.f32 %v1425_v21, %v1431_v2 }
0x139c   :  { %v1419_v16 = vpop.f32.mrf.mxu1 }
0x139d   :  { %v1420_v33 = vadd.f32 %v1923_v62, %v1419_v16 }
0x139f   :  { %v1433_v22 = vsel %vm1422_vm0, %v1420_v33, -inf }
0x13a0   :  { %v1434_v7 = vmax.f32 %v1426_v61, %v1433_v22  ;;  %v2101_v22 = vmov 3  }
0x13a2   :  { %v1436_v43 = vmax.f32 %v1432_v5, %v1434_v7  ;;  %v2103_v5 = vmov 2  }
0x13a4   :  { %v1437_v8 = vmax.f32 %v1435_v10, %v1436_v43 }
0x13a6   :  { %v1438_v13 = vsub.f32 %v1399_v1, %v1437_v8  ;;  %v1439_v19 = vsub.f32 %v1402_v49, %v1437_v8  ;;  %v1440_v24 = vsub.f32 %v1405_v59, %v1437_v8  ;;  %v1441_v26 = vsub.f32 %v1408_v4, %v1437_v8 }
0x13a7   :  { %v1442_v44 = vsub.f32 %v1411_v9, %v1437_v8  ;;  %v1443_v34 = vsub.f32 %v1414_v63, %v1437_v8  ;;  %v1444_v20 = vsub.f32 %v1417_v11, %v1437_v8  ;;  %v1445_v36 = vsub.f32 %v1420_v33, %v1437_v8 }
0x13a8   :  { %v1446_v27 = vmul.f32 1.442695, %v1438_v13  ;;  %v1448_v40 = vmul.f32 1.442695, %v1439_v19  ;;  %v1450_v6 = vmul.f32 1.442695, %v1440_v24 }
0x13a9   :  { %v1452_v35 = vmul.f32 1.442695, %v1441_v26  ;;  %v1454_v23 = vmul.f32 1.442695, %v1442_v44  ;;  %v1456_v37 = vmul.f32 1.442695, %v1443_v34 }
0x13aa   :  { %2069 = vpow2.f32 %v1446_v27  ;;  %v1458_v38 = vmul.f32 1.442695, %v1444_v20  ;;  %v1460_v46 = vmul.f32 1.442695, %v1445_v36 }
0x13ab   :  { %2071 = vpow2.f32 %v1448_v40 }
0x13ac   :  { %2073 = vpow2.f32 %v1450_v6 }
0x13ad   :  { %2075 = vpow2.f32 %v1452_v35 }
0x13ae   :  { %2077 = vpow2.f32 %v1454_v23 }
0x13af   :  { %2079 = vpow2.f32 %v1456_v37 }
0x13b0   :  { %v2070_v39 = vpop.eup %2069  ;;  %2081 = vpow2.f32 %v1458_v38 }
0x13b1   :  { %v2072_v45 = vpop.eup %2071  ;;  %v1462_v47 = vsel %vm1422_vm0, %v2070_v39, 0.0  ;;  %2083 = vpow2.f32 %v1460_v46 }
0x13b2   :  { %v2074_v48 = vpop.eup %2073  ;;  %v1463_v50 = vsel %vm1422_vm0, %v2072_v45, 0.0 }
0x13b3   :  { %v2076_v51 = vpop.eup %2075  ;;  %v1464_v52 = vadd.f32 %v1463_v50, %v1462_v47  ;;  %v1465_v53 = vsel %vm1422_vm0, %v2074_v48, 0.0 }
0x13b4   :  { %v2078_v54 = vpop.eup %2077  ;;  %v1467_v56 = vsel %vm1422_vm0, %v2076_v51, 0.0 }
0x13b5   :  { %v1466_v30 = vadd.f32 %v1465_v53, %v1464_v52  ;;  %v2080_v57 = vpop.eup %2079  ;;  %v1469_v60 = vsel %vm1422_vm0, %v2078_v54, 0.0 }
0x13b6   :  { %v2082_v62 = vpop.eup %2081  ;;  %v1471_v49 = vsel %vm1422_vm0, %v2080_v57, 0.0 }
0x13b7   :  { %v1468_v58 = vadd.f32 %v1467_v56, %v1466_v30  ;;  %v2084_v9 = vpop.eup %2083  ;;  %v1473_v1 = vsel %vm1422_vm0, %v2082_v62, 0.0 }
0x13b8   :  { %v1475_v4 = vsel %vm1422_vm0, %v2084_v9, 0.0 }
0x13b9   :  { %v1470_v63 = vadd.f32 %v1469_v60, %v1468_v58 }
0x13bb   :  { %v1472_v11 = vadd.f32 %v1471_v49, %v1470_v63 }
0x13bd   :  { %v1474_v59 = vadd.f32 %v1473_v1, %v1472_v11 }
0x13bf   :  { %v1476_v12 = vadd.f32 %v1475_v4, %v1474_v59 }
0x13c1   :  { %2085 = vrcp.f32 %v1476_v12 }
0x13c7   :  { %v2086_v16 = vpop.eup %2085 }
0x13c8   :  { %v2670_v3 = vmul.f32 %v2086_v16, %v2084_v9  ;;  %v1480_v15 = vmul.f32 %v2086_v16, %v2074_v48  ;;  %v1479_v2 = vmul.f32 %v2086_v16, %v2072_v45  ;;  %v1478_v33 = vmul.f32 %v2086_v16, %v2070_v39 }
0x13c9   :  { %v1482_v55 = vmul.f32 %v2086_v16, %v2078_v54  ;;  %v1484_v28 = vmul.f32 %v2086_v16, %v2082_v62  ;;  %v1481_v21 = vmul.f32 %v2086_v16, %v2076_v51  ;;  %v1483_v61 = vmul.f32 %v2086_v16, %v2080_v57 }
0x13ca   :  { %1493 = vst.msk [vmem:[%s2894_s11 + $0x38] sm:$0xff] %vm1422_vm0, %v2670_v3  ;;  %1567 = vperm.xlu1 %1900, %v1480_v15   ;;  %1563 = vperm.xlu0 %1899, %v1479_v2  }
0x13cb   :  { %1488 = vst.msk [vmem:[%s2894_s11 + $0x10] sm:$0xff] %vm1422_vm0, %v1480_v15  ;;  %1559 = vperm.xlu2 %1898, %v1478_v33  }
0x13cc   :  { %1487 = vst.msk [vmem:[%s2894_s11 + $0x8] sm:$0xff] %vm1422_vm0, %v1479_v2 }
0x13cd   :  { %1486 = vst.msk [vmem:[%s2894_s11] sm:$0xff] %vm1422_vm0, %v1478_v33 }
0x13ce   :  { %1490 = vst.msk [vmem:[%s2894_s11 + $0x20] sm:$0xff] %vm1422_vm0, %v1482_v55 }
0x13cf   :  { %1492 = vst.msk [vmem:[%s2894_s11 + $0x30] sm:$0xff] %vm1422_vm0, %v1484_v28 }
0x13d0   :  { %1489 = vst.msk [vmem:[%s2894_s11 + $0x18] sm:$0xff] %vm1422_vm0, %v1481_v21 }
0x13d1   :  { %1491 = vst.msk [vmem:[%s2894_s11 + $0x28] sm:$0xff] %vm1422_vm0, %v1483_v61 }
0x13d2   :  { %1902 = vset.pattern.permute.xlu1 %v2101_v22  ;;  %1904 = vset.pattern.permute.xlu0 %v2101_v22 }
0x13d3   :  { %1901 = vset.pattern.permute.xlu2 %v2101_v22  ;;  %1680 = vperm.xlu1 %1902, %v1479_v2  }
0x13d4   :  { %1684 = vperm.xlu0 %1904, %v1480_v15   ;;  %1676 = vperm.xlu2 %1901, %v1478_v33  }
0x13db   :  { %1905 = vset.pattern.permute.xlu1 %v2100_v25 }
0x13dc   :  { %1907 = vset.pattern.permute.xlu0 %v2100_v25  ;;  %1903 = vset.pattern.permute.xlu2 %v2100_v25 }
0x13dd   :  { %1575 = vperm.xlu1 %1905, %v1482_v55   ;;  %1583 = vperm.xlu0 %1907, %v1484_v28  }
0x13de   :  { %1571 = vperm.xlu2 %1903, %v1481_v21  }
0x13e5   :  { %1579 = vperm.xlu1 %1905, %v1483_v61   ;;  %1911 = vset.pattern.permute.xlu0 %v2102_v14 }
0x13e6   :  { %1906 = vset.pattern.permute.xlu2 %v2101_v22  ;;  %1496 = vperm.xlu0 %1911, %v1478_v33  }
0x13e7   :  { %1688 = vperm.xlu2 %1906, %v1481_v21  }
0x13ed   :  { %1908 = vset.pattern.permute.xlu1 %v2101_v22 }
0x13ee   :  { %1696 = vperm.xlu1 %1908, %v1483_v61   ;;  %1511 = vperm.xlu0 %1911, %v1481_v21  }
0x13ef   :  { %1692 = vperm.xlu2 %1906, %v1482_v55  }
0x13f6   :  { %1700 = vperm.xlu1 %1908, %v1484_v28   ;;  %1917 = vset.pattern.permute.xlu0 %v2103_v5 }
0x13f7   :  { %1909 = vset.pattern.permute.xlu2 %v2100_v25  ;;  %1632 = vperm.xlu0 %1917, %v1481_v21  }
0x13f8   :  { %1587 = vperm.xlu2 %1909, %v2670_v3  }
0x13fe   :  { %1912 = vset.pattern.permute.xlu1 %v2102_v14 }
0x13ff   :  { %1501 = vperm.xlu1 %1912, %v1479_v2   ;;  %1920 = vset.pattern.permute.xlu0 %v2102_v14 }
0x1400   :  { %1910 = vset.pattern.permute.xlu2 %v2101_v22  ;;  %1531 = vperm.xlu0 %1920, %v2670_v3  }
0x1401   :  { %1704 = vperm.xlu2 %1910, %v2670_v3  }
0x1407   :  { %1914 = vset.pattern.permute.xlu1 %v2103_v5 }
0x1408   :  { %1620 = vperm.xlu1 %1914, %v1478_v33   ;;  %1922 = vset.pattern.permute.xlu0 %v2101_v22 }
0x1409   :  { %1913 = vset.pattern.permute.xlu2 %v2102_v14 }
0x140a   :  { %1506 = vperm.xlu2 %1913, %v1480_v15  }
0x1410   :  { %1628 = vperm.xlu1 %1914, %v1480_v15  }
0x1412   :  { %1915 = vset.pattern.permute.xlu2 %v2103_v5 }
0x1413   :  { %1624 = vperm.xlu2 %1915, %v1479_v2  }
0x1418   :  { %1918 = vset.pattern.permute.xlu1 %v2102_v14 }
0x1419   :  { %1521 = vperm.xlu1 %1918, %v1483_v61  }
0x141b   :  { %1916 = vset.pattern.permute.xlu2 %v2102_v14 }
0x141c   :  { %1516 = vperm.xlu2 %1916, %v1482_v55  }
0x1421   :  { %1526 = vperm.xlu1 %1918, %v1484_v28  }
0x1424   :  { %1919 = vset.pattern.permute.xlu2 %v2103_v5 }
0x1425   :  { %1636 = vperm.xlu2 %1919, %v1482_v55   ;;  %v1560_v7 = vpop.permute.xlu2 %1559 }
0x1426   :  { %v1590_v44 = vmul.f32 %v1560_v7, %v2597_v17 }
0x1428   :  { %v1598_v34 = vsel %vm1276_vm6, %v1590_v44, 0.0 }
0x1429   :  { %1921 = vset.pattern.permute.xlu1 %v2103_v5 }
0x142a   :  { %1644 = vperm.xlu1 %1921, %v1484_v28  }
0x142d   :  { %1640 = vperm.xlu2 %1919, %v1483_v61  }
0x142e   :  { %v1677_v10 = vpop.permute.xlu2 %1676 }
0x142f   :  { %v1707_v50 = vmul.f32 %v1677_v10, %v2597_v17 }
0x1431   :  { %v1715_v60 = vsel %vm1276_vm6, %v1707_v50, 0.0 }
0x1435   :  { %1648 = vperm.xlu2 %1919, %v2670_v3  }
0x1438   :  { %v1572_v43 = vpop.permute.xlu2 %1571 }
0x1439   :  { %v1593_v25 = vmul.f32 %v1572_v43, %v2613_v31 }
0x143b   :  { %v1603_v47 = vsel %vm1276_vm6, %v1593_v25, 0.0 }
0x143c   :  { %v1568_v8 = vpop.permute.xlu1 %1567  ;;  %v1564_v13 = vpop.permute.xlu0 %1563 }
0x143d   :  { %v1591_v26 = vmul.f32 %v1564_v13, %v2602_v29  ;;  %v1592_v35 = vmul.f32 %v1568_v8, %v2609_v42 }
0x143f   :  { %v1599_v6 = vsel %vm1276_vm6, %v1591_v26, 0.0  ;;  %v1601_v36 = vsel %vm1276_vm6, %v1592_v35, 0.0 }
0x1440   :  { %v1600_v20 = vadd.f32 %v1599_v6, %v1598_v34 }
0x1441   :  { %v1689_v19 = vpop.permute.xlu2 %1688 }
0x1442   :  { %v1602_v38 = vadd.f32 %v1601_v36, %v1600_v20  ;;  %v1710_v4 = vmul.f32 %v1689_v19, %v2613_v31  ;;  %v1768_v36 = vld [vmem:[%s2895_s8 + $0xf8] sm:$0xff] }
0x1443   :  { %1793 = vmatpush.msrb.mxu3 %v1768_v36 }
0x1444   :  { %v1604_v51 = vadd.f32 %v1603_v47, %v1602_v38  ;;  %v1720_v2 = vsel %vm1276_vm6, %v1710_v4, 0.0  ;;  %v1752_v38 = vld [vmem:[%s2895_s8 + $0x78] sm:$0xff]  ;;  %v1766_v47 = vld [vmem:[%s2895_s8 + $0xe8] sm:$0xff] }
0x1445   :  { %v1681_v24 = vpop.permute.xlu1 %1680  ;;  %1773 = vmatpush.msrb.mxu2 %v1752_v38  ;;  %v1762_v4 = vld [vmem:[%s2895_s8 + $0xc8] sm:$0xff] }
0x1446   :  { %v1685_v40 = vpop.permute.xlu0 %1684  ;;  %v1708_v45 = vmul.f32 %v1681_v24, %v2602_v29 }
0x1447   :  { %v1709_v62 = vmul.f32 %v1685_v40, %v2609_v42 }
0x1448   :  { %v1716_v30 = vsel %vm1276_vm6, %v1708_v45, 0.0 }
0x1449   :  { %v1693_v27 = vpop.permute.xlu2 %1692  ;;  %v1717_v49 = vadd.f32 %v1716_v30, %v1715_v60  ;;  %v1718_v12 = vsel %vm1276_vm6, %v1709_v62, 0.0  ;;  %v1749_v30 = vld [vmem:[%s2895_s8 + $0x60] sm:$0xff] }
0x144a   :  { %v1711_v33 = vmul.f32 %v1693_v27, %v2617_v41 }
0x144b   :  { %v1719_v3 = vadd.f32 %v1718_v12, %v1717_v49  ;;  %v1748_v49 = vld [vmem:[%s2895_s8 + $0x58] sm:$0xff] }
0x144c   :  { %v1722_v21 = vsel %vm1276_vm6, %v1711_v33, 0.0 }
0x144d   :  { %v1721_v28 = vadd.f32 %v1720_v2, %v1719_v3 }
0x144f   :  { %v1576_v23 = vpop.permute.xlu1 %1575  ;;  %v1584_v46 = vpop.permute.xlu0 %1583  ;;  %v1723_v22 = vadd.f32 %v1722_v21, %v1721_v28 }
0x1450   :  { %v1594_v37 = vmul.f32 %v1576_v23, %v2617_v41  ;;  %v1596_v53 = vmul.f32 %v1584_v46, %v2625_v0 }
0x1452   :  { %v1588_v39 = vpop.permute.xlu2 %1587  ;;  %v1605_v48 = vsel %vm1276_vm6, %v1594_v37, 0.0  ;;  %v1609_v9 = vsel %vm1276_vm6, %v1596_v53, 0.0  ;;  %v1767_v37 = vld [vmem:[%s2895_s8 + $0xf0] sm:$0xff]  ;;  %v1765_v53 = vld [vmem:[%s2895_s8 + $0xe0] sm:$0xff] }
0x1453   :  { %v1606_v56 = vadd.f32 %v1605_v48, %v1604_v51  ;;  %v1597_v57 = vmul.f32 %v1588_v39, %v2633_v32  ;;  %v1751_v48 = vld [vmem:[%s2895_s8 + $0x70] sm:$0xff]  ;;  %1794 = vmatpush.msrb.mxu3 %v1767_v37 }
0x1454   :  { %1774 = vmatpush.msrb.mxu2 %v1751_v48 }
0x1455   :  { %v1611_v1 = vsel %vm1276_vm6, %v1597_v57, 0.0  ;;  %1795 = vmatpush.msrb.mxu3 %v1766_v47 }
0x1457   :  { %v1580_v52 = vpop.permute.xlu1 %1579  ;;  %1796 = vmatpush.msrb.mxu3 %v1765_v53  ;;  %v1754_v53 = vld [vmem:[%s2895_s8 + $0x88] sm:$0xff] }
0x1458   :  { %v1595_v54 = vmul.f32 %v1580_v52, %v2621_v18  ;;  %v1497_v27 = vpop.permute.xlu0 %1496  ;;  %v1750_v52 = vld [vmem:[%s2895_s8 + $0x68] sm:$0xff] }
0x1459   :  { %v1534_v20 = vmul.f32 %v1497_v27, %v2597_v17  ;;  %1775 = vmatpush.msrb.mxu2 %v1750_v52  ;;  %v1758_v27 = vld [vmem:[%s2895_s8 + $0xa8] sm:$0xff]  ;;  %v1743_v52 = vld [vmem:[%s2895_s8 + $0x30] sm:$0xff] }
0x145a   :  { %v1607_v58 = vsel %vm1276_vm6, %v1595_v54, 0.0 }
0x145b   :  { %v1608_v63 = vadd.f32 %v1607_v58, %v1606_v56  ;;  %v1705_v59 = vpop.permute.xlu2 %1704  ;;  %v1542_v39 = vsel %vm1276_vm6, %v1534_v20, 0.0  ;;  %v1764_v58 = vld [vmem:[%s2895_s8 + $0xd8] sm:$0xff]  ;;  %1776 = vmatpush.msrb.mxu2 %v1749_v30  ;;  %v1753_v30 = vld [vmem:[%s2895_s8 + $0x80] sm:$0xff] }
0x145c   :  { %v1714_v7 = vmul.f32 %v1705_v59, %v2633_v32  ;;  %1797 = vmatpush.msrb.mxu3 %v1764_v58  ;;  %v1739_v58 = vld [vmem:[%s2895_s8 + $0x10] sm:$0xff] }
0x145d   :  { %v1610_v11 = vadd.f32 %v1609_v9, %v1608_v63  ;;  %v1763_v9 = vld [vmem:[%s2895_s8 + $0xd0] sm:$0xff]  ;;  %1777 = vmatpush.msrb.mxu2 %v1748_v49 }
0x145e   :  { %v1728_v19 = vsel %vm1276_vm6, %v1714_v7, 0.0  ;;  %1798 = vmatpush.msrb.mxu3 %v1763_v9 }
0x145f   :  { %v1612_v16 = vadd.f32 %v1611_v1, %v1610_v11 }
0x1460   :  { %v1697_v15 = vpop.permute.xlu1 %1696  ;;  %v1512_v34 = vpop.permute.xlu0 %1511  ;;  %1799 = vmatpush.msrb.mxu3 %v1762_v4 }
0x1461   :  { %1614 = vrot.lane.b32.xlu1 %v1612_v16, %s2098_s18  ;;  %v1712_v55 = vmul.f32 %v1697_v15, %v2621_v18  ;;  %v1537_v56 = vmul.f32 %v1512_v34, %v2613_v31  ;;  %v1746_v15 = vld [vmem:[%s2895_s8 + $0x48] sm:$0xff]  ;;  %v1757_v34 = vld [vmem:[%s2895_s8 + $0xa0] sm:$0xff] }
0x1463   :  { %v1724_v61 = vsel %vm1276_vm6, %v1712_v55, 0.0  ;;  %v1761_v55 = vld [vmem:[%s2895_s8 + $0xc0] sm:$0xff] }
0x1464   :  { %v1507_v14 = vpop.permute.xlu2 %1506  ;;  %v1725_v43 = vadd.f32 %v1724_v61, %v1723_v22  ;;  %1800 = vmatpush.msrb.mxu3 %v1761_v55 }
0x1465   :  { %v1536_v45 = vmul.f32 %v1507_v14, %v2609_v42 }
0x1467   :  { %v1545_v57 = vsel %vm1276_vm6, %v1536_v45, 0.0 }
0x1468   :  { %v1701_v5 = vpop.permute.xlu1 %1700 }
0x1469   :  { %v1713_v10 = vmul.f32 %v1701_v5, %v2625_v0  ;;  %v1633_v50 = vpop.permute.xlu0 %1632  ;;  %v1760_v5 = vld [vmem:[%s2895_s8 + $0xb8] sm:$0xff] }
0x146a   :  { %v1654_v28 = vmul.f32 %v1633_v50, %v2613_v31  ;;  %v1759_v31 = vld [vmem:[%s2895_s8 + $0xb0] sm:$0xff]  ;;  %1801 = vmatpush.msrb.mxu3 %v1760_v5  ;;  %v1745_v50 = vld [vmem:[%s2895_s8 + $0x40] sm:$0xff] }
0x146b   :  { %v1726_v8 = vsel %vm1276_vm6, %v1713_v10, 0.0 }
0x146c   :  { %v1727_v13 = vadd.f32 %v1726_v8, %v1725_v43  ;;  %1802 = vmatpush.msrb.mxu3 %v1759_v31 }
0x146d   :  { %v1625_v44 = vpop.permute.xlu2 %1624 }
0x146e   :  { %v1729_v24 = vadd.f32 %v1728_v19, %v1727_v13  ;;  %v1652_v60 = vmul.f32 %v1625_v44, %v2602_v29  ;;  %v1664_v13 = vsel %vm1276_vm6, %v1654_v28, 0.0  ;;  %1803 = vmatpush.msrb.mxu3 %v1758_v27 }
0x1470   :  { %1731 = vrot.lane.b32.xlu2 %v1729_v24, %s2098_s18  ;;  %v1660_v12 = vsel %vm1276_vm6, %v1652_v60, 0.0  ;;  %1804 = vmatpush.msrb.mxu3 %v1757_v34  ;;  %v1738_v60 = vld [vmem:[%s2895_s8 + $0x8] sm:$0xff] }
0x1471   :  { %v1502_v26 = vpop.permute.xlu1 %1501 }
0x1472   :  { %v1535_v35 = vmul.f32 %v1502_v26, %v2602_v29  ;;  %v1747_v29 = vld [vmem:[%s2895_s8 + $0x50] sm:$0xff]  ;;  %v1532_v21 = vpop.permute.xlu0 %1531 }
0x1473   :  { %1778 = vmatpush.msrb.mxu2 %v1747_v29  ;;  %v1541_v43 = vmul.f32 %v1532_v21, %v2633_v32 }
0x1474   :  { %v1543_v25 = vsel %vm1276_vm6, %v1535_v35, 0.0 }
0x1475   :  { %v1544_v51 = vadd.f32 %v1543_v25, %v1542_v39  ;;  %1779 = vmatpush.msrb.mxu2 %v1746_v15 }
0x1476   :  { %v1517_v6 = vpop.permute.xlu2 %1516 }
0x1477   :  { %v1546_v62 = vadd.f32 %v1545_v57, %v1544_v51  ;;  %v1538_v1 = vmul.f32 %v1517_v6, %v2617_v41  ;;  %v1555_v6 = vsel %vm1276_vm6, %v1541_v43, 0.0  ;;  %v1756_v51 = vld [vmem:[%s2895_s8 + $0x98] sm:$0xff]  ;;  %1780 = vmatpush.msrb.mxu2 %v1745_v50 }
0x1478   :  { %1805 = vmatpush.msrb.mxu3 %v1756_v51  ;;  %v1740_v57 = vld [vmem:[%s2895_s8 + $0x18] sm:$0xff] }
0x1479   :  { %v1549_v61 = vsel %vm1276_vm6, %v1538_v1, 0.0 }
0x147a   :  { %v1621_v40 = vpop.permute.xlu1 %1620 }
0x147b   :  { %v1651_v54 = vmul.f32 %v1621_v40, %v2597_v17 }
0x147d   :  { %v1659_v11 = vsel %vm1276_vm6, %v1651_v54, 0.0  ;;  %v1742_v54 = vld [vmem:[%s2895_s8 + $0x28] sm:$0xff] }
0x147e   :  { %v1661_v2 = vadd.f32 %v1660_v12, %v1659_v11  ;;  %v1924_v11 = vld [vmem:[%s2896_s9] ss:$0 sm:$0xff] }
0x147f   :  { %v1637_v46 = vpop.permute.xlu2 %1636 }
0x1480   :  { %v1655_v19 = vmul.f32 %v1637_v46, %v2617_v41 }
0x1482   :  { %v1629_v23 = vpop.permute.xlu1 %1628  ;;  %v1666_v35 = vsel %vm1276_vm6, %v1655_v19, 0.0 }
0x1483   :  { %v1653_v63 = vmul.f32 %v1629_v23, %v2609_v42  ;;  %v1547_v42 = vsel %vm1276_vm6, %v1537_v56, 0.0  ;;  %v1741_v56 = vld [vmem:[%s2895_s8 + $0x20] sm:$0xff] }
0x1484   :  { %v1548_v16 = vadd.f32 %v1547_v42, %v1546_v62  ;;  %v1737_v62 = vld [vmem:[%s2895_s8] sm:$0xff] }
0x1485   :  { %v1662_v3 = vsel %vm1276_vm6, %v1653_v63, 0.0 }
0x1486   :  { %v1663_v22 = vadd.f32 %v1662_v3, %v1661_v2  ;;  %v1550_v7 = vadd.f32 %v1549_v61, %v1548_v16 }
0x1487   :  { %v1641_v33 = vpop.permute.xlu2 %1640 }
0x1488   :  { %v1665_v26 = vadd.f32 %v1664_v13, %v1663_v22  ;;  %v1656_v41 = vmul.f32 %v1641_v33, %v2621_v18 }
0x148a   :  { %v1667_v23 = vadd.f32 %v1666_v35, %v1665_v26  ;;  %v1668_v37 = vsel %vm1276_vm6, %v1656_v41, 0.0 }
0x148b   :  { %v1522_v17 = vpop.permute.xlu1 %1521 }
0x148c   :  { %v1539_v59 = vmul.f32 %v1522_v17, %v2621_v18  ;;  %v1669_v45 = vadd.f32 %v1668_v37, %v1667_v23 }
0x148e   :  { %v1551_v14 = vsel %vm1276_vm6, %v1539_v59, 0.0 }
0x148f   :  { %v1552_v24 = vadd.f32 %v1551_v14, %v1550_v7  ;;  %v1649_v25 = vpop.permute.xlu2 %1648 }
0x1490   :  { %v1658_v38 = vmul.f32 %v1649_v25, %v2633_v32  ;;  %v1755_v32 = vld [vmem:[%s2895_s8 + $0x90] sm:$0xff] }
0x1491   :  { %1806 = vmatpush.msrb.mxu3 %v1755_v32 }
0x1492   :  { %v1672_v18 = vsel %vm1276_vm6, %v1658_v38, 0.0 }
0x1493   :  { %v1527_v10 = vpop.permute.xlu1 %1526  ;;  %1807 = vmatpush.msrb.mxu3 %v1754_v53 }
0x1494   :  { %v1540_v8 = vmul.f32 %v1527_v10, %v2625_v0 }
0x1495   :  { %1808 = vmatpush.msrb.mxu3 %v1753_v30 }
0x1496   :  { %v1553_v44 = vsel %vm1276_vm6, %v1540_v8, 0.0 }
0x1497   :  { %v1554_v40 = vadd.f32 %v1553_v44, %v1552_v24 }
0x1499   :  { %v1556_v20 = vadd.f32 %v1555_v6, %v1554_v40 }
0x149b   :  { %1557 = vst.msk [vmem:[#allocation4] sm:$0xff] %vm1276_vm6, %v1556_v20 }
0x149c   :  { %v1645_v36 = vpop.permute.xlu1 %1644 }
0x149d   :  { %v1657_v39 = vmul.f32 %v1645_v36, %v2625_v0  ;;  %v1744_v0 = vld [vmem:[%s2895_s8 + $0x38] sm:$0xff] }
0x149e   :  { %1781 = vmatpush.msrb.mxu2 %v1744_v0 }
0x149f   :  { %v1670_v46 = vsel %vm1276_vm6, %v1657_v39, 0.0 }
0x14a0   :  { %v1671_v47 = vadd.f32 %v1670_v46, %v1669_v45  ;;  %1782 = vmatpush.msrb.mxu2 %v1743_v52 }
0x14a2   :  { %v1673_v48 = vadd.f32 %v1672_v18, %v1671_v47  ;;  %1783 = vmatpush.msrb.mxu2 %v1742_v54 }
0x14a4   :  { %1674 = vst.msk [vmem:[#allocation4 + $0x8] sm:$0xff] %vm1276_vm6, %v1673_v48  ;;  %1784 = vmatpush.msrb.mxu2 %v1741_v56 }
0x14a6   :  { %1785 = vmatpush.msrb.mxu2 %v1740_v57 }
0x14a8   :  { %1786 = vmatpush.msrb.mxu2 %v1739_v58 }
0x14aa   :  { %1787 = vmatpush.msrb.mxu2 %v1738_v60 }
0x14ac   :  { %1788 = vmatpush.msrb.mxu2 %v1737_v62 }
0x14ca   :  { %v1732_v63 = vpop.permute.xlu2 %1731 }
0x14cb   :  { %1734 = vst.msk [vmem:[#allocation4 + $0x8] sm:$0xff] %vm1617_vm8, %v1732_v63 }
0x14d2   :  { %v1736_v17 = vld [vmem:[#allocation4 + $0x8] sm:$0xff] }
0x14d3   :  { %v1615_v49 = vpop.permute.xlu1 %1614  ;;  %1809 = vmatmul.f32.vlgmr.msrb.gmra.mxu3 %v1736_v17 }
0x14d4   :  { %1618 = vst.msk [vmem:[#allocation4] sm:$0xff] %vm1617_vm8, %v1615_v49 }
0x14db   :  { %v1735_v9 = vld [vmem:[#allocation4] sm:$0xff] }
0x14dc   :  { %1789 = vmatmul.f32.vlgmr.msrb.gmra.mxu2 %v1735_v9 }
0x1556   :  { %v1810_v1 = vpop.f32.mrf.mxu3 }
0x155f   :  { %v1790_v29 = vpop.f32.mrf.mxu2 }
0x1560   :  { %v1791_v42 = vadd.f32 %v1924_v11, %v1790_v29 }
0x1562   :  { %v1811_v59 = vadd.f32 %v1810_v1, %v1791_v42 }
0x1564   :  { %v1814_v4 = vsel %vm1813_vm9, %v1811_v59, -inf }
0x1565   :  { %1815 = vmax.xlane.f32.xlu0 %v1814_v4 }
0x15d8   :  { %v1816_v12 = vpop.xlane.xlu0 %1815 }
0x15d9   :  { %v1817_v16 = vsub.f32 %v1811_v59, %v1816_v12 }
0x15db   :  { %v1818_v3 = vmul.f32 1.442695, %v1817_v16 }
0x15dd   :  { %2087 = vpow2.f32 %v1818_v3 }
0x15e3   :  { %v2088_v15 = vpop.eup %2087 }
0x15e4   :  { %v1820_v2 = vsel %vm1813_vm9, %v2088_v15, 0.0 }
0x15e5   :  { %1821 = vadd.xlane.f32.xlu1 %v1820_v2 }
0x1658   :  { %v1822_v33 = vpop.xlane.xlu1 %1821 }
0x1659   :  { %2089 = vlog2.f32 %v1822_v33 }
0x165f   :  { %v2090_v55 = vpop.eup %2089 }
0x1660   :  { %v1824_v28 = vmul.f32 0.6931472, %v2090_v55 }
0x1662   :  { %v1825_v21 = vadd.f32 %v1824_v28, %v1816_v12 }
0x1664   :  { %v1826_v61 = vsub.f32 %v1811_v59, %v1825_v21 }
0x1666   :  { %1827 = vst.msk [vmem:[%s2897_s10] sm:$0xff] %vm1813_vm9, %v1826_v61 }

// kernel: tpu_custom_call.1
= control target key start
LH: loop header
LB: loop body
LE: loop exit
PB: predicated region body
PF: predicated region fallthrough
CT: control target
= control target key end

     0   :  { %vm59_vm0 = vcmask 261120   ;;  %v2096_v19 = vmov 0.0   ;;  %s2098_s18 = smov 64   ;;  %s2886_s1 = inlined_call_operand.vmem [shape: f32[32,256], index: 1, kind: input, shape index: {}]   ;;  %s2887_s0 = inlined_call_operand.vmem [shape: f32[1,64,32], index: 0, kind: input, shape index: {}]   ;;  %s2888_s4 = inlined_call_operand.vmem [shape: f32[32,128], index: 4, kind: input, shape index: {}]   ;;  %s2889_s3 = inlined_call_operand.vmem [shape: f32[32,128], index: 3, kind: input, shape index: {}]   ;;  %s2890_s2 = inlined_call_operand.vmem [shape: f32[1,256], index: 2, kind: input, shape index: {}]   ;;  %s2891_s5 = inlined_call_operand.vmem [shape: f32[64,16], index: 5, kind: input, shape index: {}]   ;;  %s2892_s6 = inlined_call_operand.vmem [shape: f32[16,4], index: 6, kind: input, shape index: {}]   ;;  %s2893_s7 = inlined_call_operand.vmem [shape: f32[1,4], index: 7, kind: input, shape index: {}]   ;;  %s2894_s11 = inlined_call_operand.vmem [shape: f32[1,64,4], index: 11, kind: output, shape index: {1}]   ;;  %s2895_s8 = inlined_call_operand.vmem [shape: f32[256,5], index: 8, kind: input, shape index: {}]   ;;  %s2896_s9 = inlined_call_operand.vmem [shape: f32[1,5], index: 9, kind: input, shape index: {}]   ;;  %s2897_s10 = inlined_call_operand.vmem [shape: f32[1,8,5], index: 10, kind: output, shape index: {0}]  }
   0x1   :  { %v51_v0 = vld [vmem:[%s2886_s1 + $0x30] sm:$0xff]  ;;  %v52_v1 = vld [vmem:[%s2886_s1 + $0x38] sm:$0xff]  ;;  %v49_v2 = vld [vmem:[%s2886_s1 + $0x20] sm:$0xff] }
   0x2   :  { %1882 = vmatpush.msra.mxu2 %v51_v0  ;;  %1886 = vmatpush.msra.mxu3 %v52_v1  ;;  %v50_v3 = vld [vmem:[%s2886_s1 + $0x28] sm:$0xff]  ;;  %v47_v4 = vld [vmem:[%s2886_s1 + $0x10] sm:$0xff]  ;;  %v48_v5 = vld [vmem:[%s2886_s1 + $0x18] sm:$0xff] }
   0x3   :  { %96 = vmatpush.msra.mxu0 %v51_v0  ;;  %137 = vmatpush.msra.mxu1 %v52_v1  ;;  %v45_v6 = vld [vmem:[%s2886_s1] sm:$0xff]  ;;  %v46_v7 = vld [vmem:[%s2886_s1 + $0x8] sm:$0xff]  ;;  %v43_v8 = vld [vmem:[%s2887_s0 + $0x30] sm:$0xff] }
   0x4   :  { %1883 = vmatpush.msra.mxu2 %v49_v2  ;;  %1887 = vmatpush.msra.mxu3 %v50_v3  ;;  %v2194_v9 = vld [vmem:[%s2888_s4 + $0x18] sm:$0xff]  ;;  %v2206_v11 = vld [vmem:[%s2888_s4 + $0x10] sm:$0xff]  ;;  %v37_v13 = vld [vmem:[%s2887_s0] sm:$0xff] }
   0x5   :  { %97 = vmatpush.msra.mxu0 %v49_v2  ;;  %138 = vmatpush.msra.mxu1 %v50_v3  ;;  %v2199_v10 = vld [vmem:[%s2889_s3 + $0x18] sm:$0xff]  ;;  %v2211_v12 = vld [vmem:[%s2889_s3 + $0x10] sm:$0xff]  ;;  %v2221_v14 = vld [vmem:[%s2888_s4 + $0x8] sm:$0xff] }
   0x6   :  { %1884 = vmatpush.msra.mxu2 %v47_v4  ;;  %1888 = vmatpush.msra.mxu3 %v48_v5  ;;  %v2226_v15 = vld [vmem:[%s2889_s3 + $0x8] sm:$0xff]  ;;  %v2233_v16 = vld [vmem:[%s2888_s4] sm:$0xff]  ;;  %v44_v18 = vld [vmem:[%s2887_s0 + $0x38] sm:$0xff] }
   0x7   :  { %98 = vmatpush.msra.mxu0 %v47_v4  ;;  %139 = vmatpush.msra.mxu1 %v48_v5  ;;  %v2238_v17 = vld [vmem:[%s2889_s3] sm:$0xff] }
   0x8   :  { %1885 = vmatpush.msra.mxu2 %v45_v6  ;;  %1889 = vmatpush.msra.mxu3 %v46_v7  ;;  %v53_v22 = vld [vmem:[%s2890_s2] sm:$0x3]  ;;  %s2097_s2 = smov 32  }
   0x9   :  { %1842 = vmatmul.msk.f32.vlgmr.msra.gmra.mxu2 %vm59_vm0, %v43_v8  ;;  %1850 = vmatmul.msk.f32.vlgmr.msra.gmra.mxu3 %vm59_vm0, %v43_v8  ;;  %v2276_v25 = vperm.slane %v53_v22, 0  ;;  %v2278_v27 = vperm.slane %v53_v22, 1 }
   0xa   :  { %265 = vmatpush.msrb.mxu3 %v2194_v9  ;;  %206 = vmatpush.msrb.mxu2 %v2199_v10 }
   0xb   :  { %99 = vmatpush.msra.mxu0 %v45_v6  ;;  %140 = vmatpush.msra.mxu1 %v46_v7 }
   0xc   :  { %266 = vmatpush.msrb.mxu3 %v2206_v11  ;;  %207 = vmatpush.msrb.mxu2 %v2211_v12 }
   0xd   :  { %1836 = vmatmul.msk.f32.vlgmr.msra.gmra.mxu0 %vm59_vm0, %v37_v13  ;;  %1844 = vmatmul.msk.f32.vlgmr.msra.gmra.mxu1 %vm59_vm0, %v37_v13 }
   0xe   :  { %267 = vmatpush.msrb.mxu3 %v2221_v14  ;;  %208 = vmatpush.msrb.mxu2 %v2226_v15 }
  0x10   :  { %268 = vmatpush.msrb.mxu3 %v2233_v16  ;;  %209 = vmatpush.msrb.mxu2 %v2238_v17 }
  0x11   :  { %1843 = vmatmul.msk.f32.gmra.mxu2 %vm59_vm0, %v44_v18  ;;  %1851 = vmatmul.msk.f32.gmra.mxu3 %vm59_vm0, %v44_v18 }
  0x12   :  { %400 = vmatpush.msra.mxu3 %v2194_v9  ;;  %337 = vmatpush.msra.mxu2 %v2199_v10 }
  0x14   :  { %401 = vmatpush.msra.mxu3 %v2206_v11  ;;  %338 = vmatpush.msra.mxu2 %v2211_v12 }
  0x16   :  { %402 = vmatpush.msra.mxu3 %v2221_v14  ;;  %339 = vmatpush.msra.mxu2 %v2226_v15 }
  0x18   :  { %403 = vmatpush.msra.mxu3 %v2233_v16  ;;  %340 = vmatpush.msra.mxu2 %v2238_v17 }
  0x19   :  { %210 = vmatmul.f32.vlgmr.msrb.gmra.mxu2 %v2096_v19  ;;  %269 = vmatmul.f32.vlgmr.msrb.gmra.mxu3 %v2096_v19 }
  0x1a   :  { %534 = vmatpush.msrb.mxu3 %v2194_v9  ;;  %471 = vmatpush.msrb.mxu2 %v2199_v10 }
  0x1c   :  { %535 = vmatpush.msrb.mxu3 %v2206_v11  ;;  %472 = vmatpush.msrb.mxu2 %v2211_v12 }
  0x1e   :  { %536 = vmatpush.msrb.mxu3 %v2221_v14  ;;  %473 = vmatpush.msrb.mxu2 %v2226_v15 }
  0x20   :  { %537 = vmatpush.msrb.mxu3 %v2233_v16  ;;  %474 = vmatpush.msrb.mxu2 %v2238_v17 }
  0x8a   :  { %v101_v26 = vpop.f32.mrf.mxu0 }
  0x8b   :  { %v102_v28 = vadd.f32 %v101_v26, %v2276_v25 }
  0x8c   :  { %v2267_v20 = vpop.f32.mrf.mxu2  ;;  %v2269_v21 = vpop.f32.mrf.mxu3 }
  0x94   :  { %v2274_v23 = vpop.f32.mrf.mxu2  ;;  %v163_v24 = vpop.f32.mrf.mxu3 }
  0x95   :  { %v164_v29 = vadd.f32 %v163_v24, %v2278_v27 }
  0x9c   :  { %v211_v30 = vpop.f32.mrf.mxu2  ;;  %v270_v31 = vpop.f32.mrf.mxu3 }
  0x9d   :  { %v214_v32 = vadd.f32 %v211_v30, %v102_v28  ;;  %v273_v33 = vadd.f32 %v270_v31, %v164_v29  ;;  %v38_v29 = vld [vmem:[%s2887_s0 + $0x8] sm:$0xff] }
  0x9e   :  { %1837 = vmatmul.msk.f32.gmra.mxu0 %vm59_vm0, %v38_v29  ;;  %1845 = vmatmul.msk.f32.gmra.mxu1 %vm59_vm0, %v38_v29 }
  0x9f   :  { %1925 = vtanh.f32 %v214_v32  ;;  %v215_v36 = vsub.f32 0.0, %v214_v32  ;;  %v274_v37 = vsub.f32 0.0, %v273_v33 }
  0xa0   :  { %1927 = vtanh.f32 %v273_v33 }
  0xa1   :  { %v216_v38 = vmul.f32 1.442695, %v215_v36  ;;  %v275_v39 = vmul.f32 1.442695, %v274_v37 }
  0xa3   :  { %1929 = vpow2.f32 %v216_v38 }
  0xa4   :  { %1931 = vpow2.f32 %v275_v39 }
  0xa5   :  { %v1926_v34 = vpop.eup %1925 }
  0xa6   :  { %v1928_v35 = vpop.eup %1927  ;;  %237 = vrot.lane.b32.xlu1 %v1926_v34, %s2097_s2  ;;  %v161_v34 = vadd.f32 %v2269_v21, %v2278_v27 }
  0xa7   :  { %296 = vrot.lane.b32.xlu0 %v1928_v35, %s2097_s2 }
  0xa9   :  { %v1930_v40 = vpop.eup %1929 }
  0xaa   :  { %v1932_v41 = vpop.eup %1931  ;;  %v218_v42 = vadd.f32 1.0, %v1930_v40 }
  0xab   :  { %v277_v43 = vadd.f32 1.0, %v1932_v41 }
  0xac   :  { %1933 = vrcp.f32 %v218_v42  ;;  %vm224_vm1 = vweird.f32 %v218_v42  ;;  %v230_v52 = vand.u32 2147483648, %v218_v42  ;;  %v228_v54 = vand.u32 2147483647, %v218_v42 }
  0xad   :  { %1935 = vrcp.f32 %v277_v43  ;;  %v289_v56 = vand.u32 2147483648, %v277_v43  ;;  %vm283_vm5 = vweird.f32 %v277_v43  ;;  %v287_v57 = vand.u32 2147483647, %v277_v43 }
  0xae   :  { %v231_v58 = vor.u32 1.1754944e-38, %v230_v52  ;;  %vm229_vm7 = vcmp.eq.f32.partialorder %v228_v54, 8.507059e+37 }
  0xaf   :  { %v290_v61 = vor.u32 1.1754944e-38, %v289_v56  ;;  %vm288_vm8 = vcmp.eq.f32.partialorder %v287_v57, 8.507059e+37 }
  0xb2   :  { %v1934_v44 = vpop.eup %1933 }
  0xb3   :  { %v1936_v45 = vpop.eup %1935  ;;  %v220_v46 = vmul.f32 %v1934_v44, %v218_v42  ;;  %vm225_vm2 = vweird.f32 %v1934_v44 }
  0xb4   :  { %v279_v47 = vmul.f32 %v1936_v45, %v277_v43  ;;  %vm284_vm3 = vweird.f32 %v1936_v45  ;;  %vm226_vm4 = vmor %vm224_vm1, %vm225_vm2 }
  0xb5   :  { %v221_v48 = vsub.f32 1.0, %v220_v46  ;;  %vm285_vm6 = vmor %vm283_vm5, %vm284_vm3 }
  0xb6   :  { %v280_v49 = vsub.f32 1.0, %v279_v47 }
  0xb7   :  { %v222_v50 = vmul.f32 %v1934_v44, %v221_v48 }
  0xb8   :  { %v281_v51 = vmul.f32 %v1936_v45, %v280_v49 }
  0xb9   :  { %v223_v53 = vadd.f32 %v1934_v44, %v222_v50 }
  0xba   :  { %v282_v55 = vadd.f32 %v1936_v45, %v281_v51 }
  0xbb   :  { %v227_v59 = vsel %vm226_vm4, %v1934_v44, %v223_v53 }
  0xbc   :  { %v286_v60 = vsel %vm285_vm6, %v1936_v45, %v282_v55  ;;  %v232_v63 = vsel %vm229_vm7, %v231_v58, %v227_v59 }
  0xbd   :  { %v291_v1 = vsel %vm288_vm8, %v290_v61, %v286_v60  ;;  %v235_v4 = vmul.f32 0.0, %v232_v63 }
  0xbe   :  { %v294_v8 = vmul.f32 0.0, %v291_v1 }
 0x118   :  { %v238_v62 = vpop.permute.xlu1 %237 }
 0x119   :  { %v297_v0 = vpop.permute.xlu0 %296  ;;  %v240_v2 = vmul.f32 %v238_v62, %v232_v63 }
 0x11a   :  { %v299_v3 = vmul.f32 %v297_v0, %v291_v1 }
 0x11b   :  { %242 = vrot.lane.b32.xlu2 %v240_v2, %s2097_s2  ;;  %v104_v32 = vpop.f32.mrf.mxu0 }
 0x11c   :  { %301 = vrot.lane.b32.xlu0 %v299_v3, %s2097_s2  ;;  %v105_v33 = vadd.f32 %v104_v32, %v2276_v25 }
 0x175   :  { %v243_v5 = vpop.permute.xlu2 %242 }
 0x176   :  { %v2286_v6 = vadd.f32 %v243_v5, %v235_v4 }
 0x178   :  { %1937 = vtanh.f32 %v2286_v6 }
 0x17e   :  { %v1938_v7 = vpop.eup %1937 }
 0x17f   :  { %248 = vrot.lane.b32.xlu0 %v1938_v7, %s2097_s2 }
 0x18e   :  { %v302_v13 = vpop.permute.xlu0 %301 }
 0x18f   :  { %v2290_v18 = vadd.f32 %v302_v13, %v294_v8 }
 0x191   :  { %1939 = vtanh.f32 %v2290_v18 }
 0x197   :  { %v1940_v19 = vpop.eup %1939 }
 0x198   :  { %307 = vrot.lane.b32.xlu1 %v1940_v19, %s2097_s2 }
 0x1f1   :  { %v249_v22 = vpop.permute.xlu0 %248 }
 0x1f2   :  { %v251_v24 = vmul.f32 %v249_v22, %v232_v63 }
 0x1f4   :  { %312 = vrot.lane.b32.xlu1 %v251_v24, %s2098_s18 }
 0x20a   :  { %v308_v26 = vpop.permute.xlu1 %307 }
 0x20b   :  { %v2295_v28 = vmul.f32 %v308_v26, %v291_v1 }
 0x20d   :  { %384 = vrot.lane.b32.xlu2 %v2295_v28, %s2098_s18 }
 0x266   :  { %v313_v30 = vpop.permute.xlu1 %312 }
 0x267   :  { %v385_v31 = vpop.permute.xlu2 %384  ;;  %315 = vst.msk [vmem:[#allocation3] sm:$0xff] %vm59_vm0, %v313_v30  ;;  %1852 = vmatmul.msk.f32.vlgmr.msra.gmra.mxu2 %vm59_vm0, %v313_v30 }
 0x268   :  { %1853 = vmatmul.msk.f32.vlgmr.msra.gmra.mxu3 %vm59_vm0, %v385_v31  ;;  %605 = vmatpush.msra.mxu2 %v2199_v10 }
 0x269   :  { %668 = vmatpush.msra.mxu3 %v2194_v9 }
 0x26a   :  { %606 = vmatpush.msra.mxu2 %v2211_v12 }
 0x26b   :  { %669 = vmatpush.msra.mxu3 %v2206_v11 }
 0x26c   :  { %607 = vmatpush.msra.mxu2 %v2226_v15 }
 0x26d   :  { %670 = vmatpush.msra.mxu3 %v2221_v14 }
 0x26e   :  { %608 = vmatpush.msra.mxu2 %v2238_v17 }
 0x26f   :  { %671 = vmatpush.msra.mxu3 %v2233_v16 }
 0x2ea   :  { %v342_v35 = vpop.f32.mrf.mxu2 }
 0x2eb   :  { %v345_v36 = vadd.f32 %v342_v35, %v105_v33  ;;  %v405_v37 = vpop.f32.mrf.mxu3 }
 0x2ec   :  { %v408_v38 = vadd.f32 %v405_v37, %v161_v34  ;;  %v41_v34 = vld [vmem:[%s2887_s0 + $0x20] sm:$0xff]  ;;  %v42_v37 = vld [vmem:[%s2887_s0 + $0x28] sm:$0xff] }
 0x2ed   :  { %1941 = vtanh.f32 %v345_v36  ;;  %v346_v45 = vsub.f32 0.0, %v345_v36 }
 0x2ee   :  { %1943 = vtanh.f32 %v408_v38  ;;  %v409_v41 = vsub.f32 0.0, %v408_v38 }
 0x2ef   :  { %v347_v46 = vmul.f32 1.442695, %v346_v45 }
 0x2f0   :  { %v410_v42 = vmul.f32 1.442695, %v409_v41 }
 0x2f2   :  { %1945 = vpow2.f32 %v410_v42 }
 0x2f3   :  { %v1942_v39 = vpop.eup %1941 }
 0x2f4   :  { %v1944_v40 = vpop.eup %1943  ;;  %368 = vrot.lane.b32.xlu1 %v1942_v39, %s2097_s2 }
 0x2f5   :  { %431 = vrot.lane.b32.xlu2 %v1944_v40, %s2097_s2  ;;  %v2368_v40 = vpop.f32.mrf.mxu1 }
 0x2f8   :  { %v1946_v43 = vpop.eup %1945 }
 0x2f9   :  { %v412_v44 = vadd.f32 1.0, %v1946_v43 }
 0x2fb   :  { %1947 = vrcp.f32 %v412_v44  ;;  %v424_v53 = vand.u32 2147483648, %v412_v44  ;;  %vm418_vm10 = vweird.f32 %v412_v44  ;;  %v422_v54 = vand.u32 2147483647, %v412_v44 }
 0x2fc   :  { %1949 = vpow2.f32 %v347_v46 }
 0x2fd   :  { %v425_v56 = vor.u32 1.1754944e-38, %v424_v53  ;;  %vm423_vm12 = vcmp.eq.f32.partialorder %v422_v54, 8.507059e+37  ;;  %v2370_v41 = vpop.f32.mrf.mxu1 }
 0x301   :  { %v1948_v21 = vpop.eup %1947 }
 0x302   :  { %v414_v47 = vmul.f32 %v1948_v21, %v412_v44  ;;  %v1950_v49 = vpop.eup %1949  ;;  %vm419_vm9 = vweird.f32 %v1948_v21 }
 0x303   :  { %v349_v51 = vadd.f32 1.0, %v1950_v49  ;;  %vm420_vm11 = vmor %vm418_vm10, %vm419_vm9 }
 0x304   :  { %v415_v48 = vsub.f32 1.0, %v414_v47 }
 0x305   :  { %1951 = vrcp.f32 %v349_v51  ;;  %v361_v1 = vand.u32 2147483648, %v349_v51  ;;  %vm355_vm14 = vweird.f32 %v349_v51  ;;  %v359_v2 = vand.u32 2147483647, %v349_v51 }
 0x306   :  { %v416_v50 = vmul.f32 %v1948_v21, %v415_v48 }
 0x307   :  { %v362_v4 = vor.u32 1.1754944e-38, %v361_v1  ;;  %vm360_vm1 = vcmp.eq.f32.partialorder %v359_v2, 8.507059e+37 }
 0x308   :  { %v417_v52 = vadd.f32 %v1948_v21, %v416_v50 }
 0x30a   :  { %v421_v55 = vsel %vm420_vm11, %v1948_v21, %v417_v52 }
 0x30b   :  { %v426_v58 = vsel %vm423_vm12, %v425_v56, %v421_v55  ;;  %v1952_v59 = vpop.eup %1951 }
 0x30c   :  { %v351_v61 = vmul.f32 %v1952_v59, %v349_v51  ;;  %vm356_vm13 = vweird.f32 %v1952_v59  ;;  %v429_v13 = vmul.f32 %v426_v58, %v2290_v18  ;;  %v39_v18 = vld [vmem:[%s2887_s0 + $0x10] sm:$0xff] }
 0x30d   :  { %vm357_vm15 = vmor %vm355_vm14, %vm356_vm13  ;;  %1846 = vmatmul.msk.f32.gmra.mxu1 %vm59_vm0, %v39_v18  ;;  %1838 = vmatmul.msk.f32.gmra.mxu0 %vm59_vm0, %v39_v18 }
 0x30e   :  { %v352_v62 = vsub.f32 1.0, %v351_v61 }
 0x310   :  { %v353_v63 = vmul.f32 %v1952_v59, %v352_v62 }
 0x312   :  { %v354_v0 = vadd.f32 %v1952_v59, %v353_v63 }
 0x314   :  { %v358_v3 = vsel %vm357_vm15, %v1952_v59, %v354_v0 }
 0x315   :  { %v363_v7 = vsel %vm360_vm1, %v362_v4, %v358_v3 }
 0x316   :  { %v366_v26 = vmul.f32 %v363_v7, %v2286_v6  ;;  %v40_v6 = vld [vmem:[%s2887_s0 + $0x18] sm:$0xff] }
 0x317   :  { %1847 = vmatmul.msk.f32.gmra.mxu1 %vm59_vm0, %v40_v6  ;;  %1839 = vmatmul.msk.f32.gmra.mxu0 %vm59_vm0, %v40_v6 }
 0x31f   :  { %1848 = vmatmul.msk.f32.gmra.mxu1 %vm59_vm0, %v41_v34  ;;  %1840 = vmatmul.msk.f32.gmra.mxu0 %vm59_vm0, %v41_v34 }
 0x327   :  { %1849 = vmatmul.msk.f32.gmra.mxu1 %vm59_vm0, %v42_v37  ;;  %1841 = vmatmul.msk.f32.gmra.mxu0 %vm59_vm0, %v42_v37 }
 0x34f   :  { %v432_v57 = vpop.permute.xlu2 %431 }
 0x350   :  { %v434_v60 = vmul.f32 %v432_v57, %v426_v58 }
 0x352   :  { %436 = vrot.lane.b32.xlu0 %v434_v60, %s2097_s2 }
 0x366   :  { %v369_v5 = vpop.permute.xlu1 %368 }
 0x367   :  { %v371_v8 = vmul.f32 %v369_v5, %v363_v7 }
 0x369   :  { %373 = vrot.lane.b32.xlu0 %v371_v8, %s2097_s2 }
 0x38a   :  { %v2372_v42 = vpop.f32.mrf.mxu1  ;;  %v107_v49 = vpop.f32.mrf.mxu0 }
 0x38b   :  { %v108_v50 = vadd.f32 %v107_v49, %v2276_v25 }
 0x394   :  { %v2374_v43 = vpop.f32.mrf.mxu1 }
 0x39c   :  { %v2376_v44 = vpop.f32.mrf.mxu1 }
 0x3a4   :  { %v157_v45 = vpop.f32.mrf.mxu1 }
 0x3a5   :  { %v158_v21 = vadd.f32 %v157_v45, %v2278_v27 }
 0x3c4   :  { %v437_v19 = vpop.permute.xlu0 %436 }
 0x3c5   :  { %v2323_v22 = vadd.f32 %v437_v19, %v429_v13 }
 0x3c7   :  { %1953 = vtanh.f32 %v2323_v22 }
 0x3cd   :  { %v1954_v24 = vpop.eup %1953 }
 0x3ce   :  { %442 = vrot.lane.b32.xlu2 %v1954_v24, %s2097_s2 }
 0x3db   :  { %v374_v29 = vpop.permute.xlu0 %373 }
 0x3dc   :  { %v2328_v30 = vadd.f32 %v374_v29, %v366_v26 }
 0x3de   :  { %1955 = vtanh.f32 %v2328_v30 }
 0x3e4   :  { %v1956_v31 = vpop.eup %1955 }
 0x3e5   :  { %379 = vrot.lane.b32.xlu2 %v1956_v31, %s2097_s2 }
 0x428   :  { %v443_v32 = vpop.permute.xlu2 %442 }
 0x429   :  { %v2340_v33 = vmul.f32 %v443_v32, %v426_v58 }
 0x42b   :  { %518 = vrot.lane.b32.xlu1 %v2340_v33, %s2098_s18 }
 0x43f   :  { %v380_v35 = vpop.permute.xlu2 %379 }
 0x440   :  { %v382_v36 = vmul.f32 %v380_v35, %v363_v7 }
 0x442   :  { %447 = vrot.lane.b32.xlu0 %v382_v36, %s2098_s18 }
 0x49d   :  { %v519_v38 = vpop.permute.xlu1 %518 }
 0x49e   :  { %1855 = vmatmul.msk.f32.vlgmr.msrb.gmra.mxu3 %vm59_vm0, %v519_v38 }
 0x49f   :  { %802 = vmatpush.msrb.mxu3 %v2194_v9 }
 0x4a1   :  { %803 = vmatpush.msrb.mxu3 %v2206_v11 }
 0x4a3   :  { %804 = vmatpush.msrb.mxu3 %v2221_v14 }
 0x4a5   :  { %805 = vmatpush.msrb.mxu3 %v2233_v16 }
 0x4b4   :  { %v448_v39 = vpop.permute.xlu0 %447 }
 0x4b5   :  { %450 = vst.msk [vmem:[#allocation3 + $0x8] sm:$0xff] %vm59_vm0, %v448_v39  ;;  %1854 = vmatmul.msk.f32.vlgmr.msrb.gmra.mxu2 %vm59_vm0, %v448_v39 }
 0x4b6   :  { %739 = vmatpush.msrb.mxu2 %v2199_v10 }
 0x4b8   :  { %740 = vmatpush.msrb.mxu2 %v2211_v12 }
 0x4ba   :  { %741 = vmatpush.msrb.mxu2 %v2226_v15 }
 0x4bc   :  { %742 = vmatpush.msrb.mxu2 %v2238_v17 }
 0x521   :  { %v539_v46 = vpop.f32.mrf.mxu3 }
 0x522   :  { %v542_v47 = vadd.f32 %v539_v46, %v158_v21 }
 0x524   :  { %1957 = vtanh.f32 %v542_v47  ;;  %v543_v54 = vsub.f32 0.0, %v542_v47 }
 0x526   :  { %v544_v55 = vmul.f32 1.442695, %v543_v54 }
 0x52a   :  { %v1958_v48 = vpop.eup %1957 }
 0x52b   :  { %565 = vrot.lane.b32.xlu1 %v1958_v48, %s2097_s2 }
 0x538   :  { %v476_v51 = vpop.f32.mrf.mxu2 }
 0x539   :  { %v479_v52 = vadd.f32 %v476_v51, %v108_v50 }
 0x53b   :  { %1959 = vtanh.f32 %v479_v52  ;;  %v480_v58 = vsub.f32 0.0, %v479_v52 }
 0x53c   :  { %1961 = vpow2.f32 %v544_v55  ;;  %v110_v55 = vpop.f32.mrf.mxu0 }
 0x53d   :  { %v481_v60 = vmul.f32 1.442695, %v480_v58 }
 0x541   :  { %v1960_v53 = vpop.eup %1959 }
 0x542   :  { %502 = vrot.lane.b32.xlu0 %v1960_v53, %s2097_s2  ;;  %v1962_v56 = vpop.eup %1961 }
 0x543   :  { %v546_v57 = vadd.f32 1.0, %v1962_v56  ;;  %v111_v56 = vadd.f32 %v110_v55, %v2276_v25 }
 0x545   :  { %1963 = vrcp.f32 %v546_v57  ;;  %v558_v3 = vand.u32 2147483648, %v546_v57  ;;  %vm552_vm3 = vweird.f32 %v546_v57  ;;  %v556_v4 = vand.u32 2147483647, %v546_v57 }
 0x546   :  { %1965 = vpow2.f32 %v481_v60 }
 0x547   :  { %v559_v7 = vor.u32 1.1754944e-38, %v558_v3  ;;  %vm557_vm5 = vcmp.eq.f32.partialorder %v556_v4, 8.507059e+37 }
 0x54b   :  { %v1964_v59 = vpop.eup %1963 }
 0x54c   :  { %v548_v61 = vmul.f32 %v1964_v59, %v546_v57  ;;  %v1966_v63 = vpop.eup %1965  ;;  %vm553_vm2 = vweird.f32 %v1964_v59  ;;  %v155_v57 = vadd.f32 %v2376_v44, %v2278_v27 }
 0x54d   :  { %v483_v1 = vadd.f32 1.0, %v1966_v63  ;;  %vm554_vm4 = vmor %vm552_vm3, %vm553_vm2 }
 0x54e   :  { %v549_v62 = vsub.f32 1.0, %v548_v61 }
 0x54f   :  { %1967 = vrcp.f32 %v483_v1  ;;  %v495_v32 = vand.u32 2147483648, %v483_v1  ;;  %vm489_vm7 = vweird.f32 %v483_v1  ;;  %v493_v6 = vand.u32 2147483647, %v483_v1 }
 0x550   :  { %v550_v0 = vmul.f32 %v1964_v59, %v549_v62 }
 0x551   :  { %v496_v35 = vor.u32 1.1754944e-38, %v495_v32  ;;  %vm494_vm9 = vcmp.eq.f32.partialorder %v493_v6, 8.507059e+37 }
 0x552   :  { %v551_v2 = vadd.f32 %v1964_v59, %v550_v0 }
 0x554   :  { %v555_v5 = vsel %vm554_vm4, %v1964_v59, %v551_v2 }
 0x555   :  { %v560_v13 = vsel %vm557_vm5, %v559_v7, %v555_v5  ;;  %v1968_v19 = vpop.eup %1967 }
 0x556   :  { %v485_v26 = vmul.f32 %v1968_v19, %v483_v1  ;;  %vm490_vm6 = vweird.f32 %v1968_v19  ;;  %v563_v39 = vmul.f32 %v560_v13, %v2323_v22 }
 0x557   :  { %vm491_vm8 = vmor %vm489_vm7, %vm490_vm6 }
 0x558   :  { %v486_v29 = vsub.f32 1.0, %v485_v26 }
 0x55a   :  { %v487_v31 = vmul.f32 %v1968_v19, %v486_v29 }
 0x55c   :  { %v488_v18 = vadd.f32 %v1968_v19, %v487_v31 }
 0x55e   :  { %v492_v34 = vsel %vm491_vm8, %v1968_v19, %v488_v18 }
 0x55f   :  { %v497_v37 = vsel %vm494_vm9, %v496_v35, %v492_v34 }
 0x560   :  { %v500_v47 = vmul.f32 %v497_v37, %v2328_v30 }
 0x59d   :  { %v566_v8 = vpop.permute.xlu1 %565 }
 0x59e   :  { %v568_v24 = vmul.f32 %v566_v8, %v560_v13 }
 0x5a0   :  { %570 = vrot.lane.b32.xlu2 %v568_v24, %s2097_s2 }
 0x5b4   :  { %v503_v36 = vpop.permute.xlu0 %502 }
 0x5b5   :  { %v505_v38 = vmul.f32 %v503_v36, %v497_v37 }
 0x5b7   :  { %507 = vrot.lane.b32.xlu2 %v505_v38, %s2097_s2 }
 0x5fa   :  { %v571_v45 = vpop.permute.xlu2 %570 }
 0x5fb   :  { %v2385_v21 = vadd.f32 %v571_v45, %v563_v39 }
 0x5fd   :  { %1969 = vtanh.f32 %v2385_v21 }
 0x603   :  { %v1970_v46 = vpop.eup %1969 }
 0x604   :  { %576 = vrot.lane.b32.xlu1 %v1970_v46, %s2097_s2 }
 0x611   :  { %v508_v48 = vpop.permute.xlu2 %507 }
 0x612   :  { %v2390_v49 = vadd.f32 %v508_v48, %v500_v47 }
 0x614   :  { %1971 = vtanh.f32 %v2390_v49 }
 0x61a   :  { %v1972_v50 = vpop.eup %1971 }
 0x61b   :  { %513 = vrot.lane.b32.xlu1 %v1972_v50, %s2097_s2 }
 0x676   :  { %v577_v51 = vpop.permute.xlu1 %576 }
 0x677   :  { %v2394_v22 = vmul.f32 %v577_v51, %v560_v13 }
 0x679   :  { %652 = vrot.lane.b32.xlu0 %v2394_v22, %s2098_s18 }
 0x68d   :  { %v514_v52 = vpop.permute.xlu1 %513 }
 0x68e   :  { %v516_v53 = vmul.f32 %v514_v52, %v497_v37 }
 0x690   :  { %581 = vrot.lane.b32.xlu2 %v516_v53, %s2098_s18 }
 0x6ea   :  { %v582_v54 = vpop.permute.xlu2 %581 }
 0x6eb   :  { %v653_v30 = vpop.permute.xlu0 %652  ;;  %584 = vst.msk [vmem:[#allocation3 + $0x10] sm:$0xff] %vm59_vm0, %v582_v54  ;;  %1856 = vmatmul.msk.f32.vlgmr.msra.gmra.mxu2 %vm59_vm0, %v582_v54 }
 0x6ec   :  { %1857 = vmatmul.msk.f32.vlgmr.msra.gmra.mxu3 %vm59_vm0, %v653_v30  ;;  %873 = vmatpush.msra.mxu2 %v2199_v10 }
 0x6ed   :  { %936 = vmatpush.msra.mxu3 %v2194_v9 }
 0x6ee   :  { %874 = vmatpush.msra.mxu2 %v2211_v12 }
 0x6ef   :  { %937 = vmatpush.msra.mxu3 %v2206_v11 }
 0x6f0   :  { %875 = vmatpush.msra.mxu2 %v2226_v15 }
 0x6f1   :  { %938 = vmatpush.msra.mxu3 %v2221_v14 }
 0x6f2   :  { %876 = vmatpush.msra.mxu2 %v2238_v17 }
 0x6f3   :  { %939 = vmatpush.msra.mxu3 %v2233_v16 }
 0x76e   :  { %v610_v58 = vpop.f32.mrf.mxu2 }
 0x76f   :  { %v613_v59 = vadd.f32 %v610_v58, %v111_v56  ;;  %v673_v60 = vpop.f32.mrf.mxu3 }
 0x770   :  { %v676_v61 = vadd.f32 %v673_v60, %v155_v57 }
 0x771   :  { %1973 = vtanh.f32 %v613_v59  ;;  %v614_v2 = vsub.f32 0.0, %v613_v59 }
 0x772   :  { %1975 = vtanh.f32 %v676_v61  ;;  %v677_v0 = vsub.f32 0.0, %v676_v61 }
 0x773   :  { %v615_v3 = vmul.f32 1.442695, %v614_v2 }
 0x774   :  { %v678_v1 = vmul.f32 1.442695, %v677_v0 }
 0x776   :  { %1977 = vpow2.f32 %v678_v1 }
 0x777   :  { %v1974_v62 = vpop.eup %1973  ;;  %1979 = vpow2.f32 %v615_v3  ;;  %v113_v3 = vpop.f32.mrf.mxu0 }
 0x778   :  { %v1976_v63 = vpop.eup %1975  ;;  %636 = vrot.lane.b32.xlu2 %v1974_v62, %s2097_s2 }
 0x779   :  { %699 = vrot.lane.b32.xlu0 %v1976_v63, %s2097_s2 }
 0x77c   :  { %v1978_v4 = vpop.eup %1977 }
 0x77d   :  { %v680_v44 = vadd.f32 1.0, %v1978_v4  ;;  %v1980_v5 = vpop.eup %1979  ;;  %v114_v4 = vadd.f32 %v113_v3, %v2276_v25 }
 0x77e   :  { %v617_v7 = vadd.f32 1.0, %v1980_v5 }
 0x77f   :  { %1981 = vrcp.f32 %v680_v44  ;;  %v692_v32 = vand.u32 2147483648, %v680_v44  ;;  %vm686_vm11 = vweird.f32 %v680_v44  ;;  %v690_v6 = vand.u32 2147483647, %v680_v44 }
 0x780   :  { %1983 = vrcp.f32 %v617_v7  ;;  %v629_v46 = vand.u32 2147483648, %v617_v7  ;;  %vm623_vm15 = vweird.f32 %v617_v7  ;;  %v627_v47 = vand.u32 2147483647, %v617_v7 }
 0x781   :  { %v693_v36 = vor.u32 1.1754944e-38, %v692_v32  ;;  %vm691_vm13 = vcmp.eq.f32.partialorder %v690_v6, 8.507059e+37 }
 0x782   :  { %v630_v51 = vor.u32 1.1754944e-38, %v629_v46  ;;  %vm628_vm2 = vcmp.eq.f32.partialorder %v627_v47, 8.507059e+37 }
 0x785   :  { %v1982_v8 = vpop.eup %1981 }
 0x786   :  { %v682_v13 = vmul.f32 %v1982_v8, %v680_v44  ;;  %v1984_v24 = vpop.eup %1983  ;;  %vm687_vm10 = vweird.f32 %v1982_v8 }
 0x787   :  { %v619_v26 = vmul.f32 %v1984_v24, %v617_v7  ;;  %vm688_vm12 = vmor %vm686_vm11, %vm687_vm10  ;;  %vm624_vm14 = vweird.f32 %v1984_v24 }
 0x788   :  { %v683_v19 = vsub.f32 1.0, %v682_v13  ;;  %vm625_vm1 = vmor %vm623_vm15, %vm624_vm14 }
 0x789   :  { %v620_v31 = vsub.f32 1.0, %v619_v26 }
 0x78a   :  { %v684_v29 = vmul.f32 %v1982_v8, %v683_v19 }
 0x78b   :  { %v621_v34 = vmul.f32 %v1984_v24, %v620_v31 }
 0x78c   :  { %v685_v18 = vadd.f32 %v1982_v8, %v684_v29 }
 0x78d   :  { %v622_v39 = vadd.f32 %v1984_v24, %v621_v34 }
 0x78e   :  { %v689_v35 = vsel %vm688_vm12, %v1982_v8, %v685_v18 }
 0x78f   :  { %v694_v38 = vsel %vm691_vm13, %v693_v36, %v689_v35  ;;  %v626_v48 = vsel %vm625_vm1, %v1984_v24, %v622_v39 }
 0x790   :  { %v631_v52 = vsel %vm628_vm2, %v630_v51, %v626_v48  ;;  %v697_v54 = vmul.f32 %v694_v38, %v2385_v21 }
 0x791   :  { %v634_v56 = vmul.f32 %v631_v52, %v2390_v49 }
 0x7d2   :  { %v637_v50 = vpop.permute.xlu2 %636 }
 0x7d3   :  { %v639_v53 = vmul.f32 %v637_v50, %v631_v52 }
 0x7eb   :  { %v700_v37 = vpop.permute.xlu0 %699 }
 0x7ec   :  { %v702_v45 = vmul.f32 %v700_v37, %v694_v38 }
 0x7ee   :  { %704 = vrot.lane.b32.xlu1 %v702_v45, %s2097_s2 }
 0x7f6   :  { %641 = vrot.lane.b32.xlu1 %v639_v53, %s2097_s2 }
 0x860   :  { %v705_v30 = vpop.permute.xlu1 %704 }
 0x861   :  { %v2418_v55 = vadd.f32 %v705_v30, %v697_v54 }
 0x863   :  { %1985 = vtanh.f32 %v2418_v55 }
 0x868   :  { %v642_v57 = vpop.permute.xlu1 %641 }
 0x869   :  { %v1986_v58 = vpop.eup %1985  ;;  %v2422_v59 = vadd.f32 %v642_v57, %v634_v56 }
 0x86a   :  { %710 = vrot.lane.b32.xlu0 %v1986_v58, %s2097_s2 }
 0x86b   :  { %1987 = vtanh.f32 %v2422_v59 }
 0x871   :  { %v1988_v60 = vpop.eup %1987 }
 0x872   :  { %647 = vrot.lane.b32.xlu0 %v1988_v60, %s2097_s2 }
 0x8dc   :  { %v711_v61 = vpop.permute.xlu0 %710 }
 0x8dd   :  { %v2427_v21 = vmul.f32 %v711_v61, %v694_v38 }
 0x8df   :  { %786 = vrot.lane.b32.xlu2 %v2427_v21, %s2098_s18 }
 0x8e4   :  { %v648_v62 = vpop.permute.xlu0 %647 }
 0x8e5   :  { %v650_v63 = vmul.f32 %v648_v62, %v631_v52 }
 0x8e7   :  { %715 = vrot.lane.b32.xlu1 %v650_v63, %s2098_s18 }
 0x939   :  { %v787_v49 = vpop.permute.xlu2 %786 }
 0x93a   :  { %1859 = vmatmul.msk.f32.vlgmr.msrb.gmra.mxu3 %vm59_vm0, %v787_v49 }
 0x93b   :  { %1070 = vmatpush.msrb.mxu3 %v2194_v9  ;;  %v152_v9 = vadd.f32 %v2374_v43, %v2278_v27 }
 0x93d   :  { %1071 = vmatpush.msrb.mxu3 %v2206_v11 }
 0x93f   :  { %1072 = vmatpush.msrb.mxu3 %v2221_v14 }
 0x941   :  { %1073 = vmatpush.msrb.mxu3 %v2233_v16 }
 0x959   :  { %v716_v0 = vpop.permute.xlu1 %715 }
 0x95a   :  { %718 = vst.msk [vmem:[#allocation3 + $0x18] sm:$0xff] %vm59_vm0, %v716_v0  ;;  %1858 = vmatmul.msk.f32.vlgmr.msrb.gmra.mxu2 %vm59_vm0, %v716_v0 }
 0x95b   :  { %1007 = vmatpush.msrb.mxu2 %v2199_v10 }
 0x95d   :  { %1008 = vmatpush.msrb.mxu2 %v2211_v12 }
 0x95f   :  { %1009 = vmatpush.msrb.mxu2 %v2226_v15 }
 0x961   :  { %1010 = vmatpush.msrb.mxu2 %v2238_v17 }
 0x9bd   :  { %v807_v11 = vpop.f32.mrf.mxu3 }
 0x9be   :  { %v810_v1 = vadd.f32 %v807_v11, %v152_v9 }
 0x9c0   :  { %1989 = vtanh.f32 %v810_v1  ;;  %v811_v15 = vsub.f32 0.0, %v810_v1 }
 0x9c2   :  { %v812_v5 = vmul.f32 1.442695, %v811_v15 }
 0x9c6   :  { %v1990_v2 = vpop.eup %1989 }
 0x9c7   :  { %833 = vrot.lane.b32.xlu2 %v1990_v2, %s2097_s2 }
 0x9dd   :  { %v744_v44 = vpop.f32.mrf.mxu2 }
 0x9de   :  { %v747_v10 = vadd.f32 %v744_v44, %v114_v4  ;;  %v2092_v4 = vld [vmem:[%s2888_s4 + $0x10] sm:$0xff] }
 0x9e0   :  { %1991 = vtanh.f32 %v747_v10  ;;  %v748_v36 = vsub.f32 0.0, %v747_v10  ;;  %v2093_v10 = vld [vmem:[%s2889_s3 + $0x18] sm:$0xff] }
 0x9e1   :  { %1993 = vpow2.f32 %v812_v5 }
 0x9e2   :  { %v749_v37 = vmul.f32 1.442695, %v748_v36 }
 0x9e6   :  { %v1992_v12 = vpop.eup %1991 }
 0x9e7   :  { %770 = vrot.lane.b32.xlu1 %v1992_v12, %s2097_s2  ;;  %v1994_v7 = vpop.eup %1993  ;;  %v2094_v12 = vld [vmem:[%s2889_s3 + $0x10] sm:$0xff] }
 0x9e8   :  { %v814_v43 = vadd.f32 1.0, %v1994_v7 }
 0x9ea   :  { %1995 = vrcp.f32 %v814_v43  ;;  %v826_v29 = vand.u32 2147483648, %v814_v43  ;;  %vm820_vm4 = vweird.f32 %v814_v43  ;;  %v824_v31 = vand.u32 2147483647, %v814_v43 }
 0x9eb   :  { %1997 = vpow2.f32 %v749_v37 }
 0x9ec   :  { %v827_v32 = vor.u32 1.1754944e-38, %v826_v29  ;;  %vm825_vm6 = vcmp.eq.f32.partialorder %v824_v31, 8.507059e+37 }
 0x9f0   :  { %v1996_v8 = vpop.eup %1995 }
 0x9f1   :  { %v816_v13 = vmul.f32 %v1996_v8, %v814_v43  ;;  %vm821_vm3 = vweird.f32 %v1996_v8  ;;  %v1998_v38 = vpop.eup %1997  ;;  %v116_v43 = vpop.f32.mrf.mxu0 }
 0x9f2   :  { %vm822_vm5 = vmor %vm820_vm4, %vm821_vm3  ;;  %v751_v39 = vadd.f32 1.0, %v1998_v38 }
 0x9f3   :  { %v817_v19 = vsub.f32 1.0, %v816_v13 }
 0x9f4   :  { %1999 = vrcp.f32 %v751_v39  ;;  %v763_v51 = vand.u32 2147483648, %v751_v39  ;;  %vm757_vm8 = vweird.f32 %v751_v39  ;;  %v761_v52 = vand.u32 2147483647, %v751_v39 }
 0x9f5   :  { %v818_v24 = vmul.f32 %v1996_v8, %v817_v19 }
 0x9f6   :  { %v764_v54 = vor.u32 1.1754944e-38, %v763_v51  ;;  %vm762_vm10 = vcmp.eq.f32.partialorder %v761_v52, 8.507059e+37 }
 0x9f7   :  { %v819_v26 = vadd.f32 %v1996_v8, %v818_v24 }
 0x9f9   :  { %v823_v18 = vsel %vm822_vm5, %v1996_v8, %v819_v26  ;;  %v117_v8 = vadd.f32 %v116_v43, %v2276_v25 }
 0x9fa   :  { %v828_v34 = vsel %vm825_vm6, %v827_v32, %v823_v18  ;;  %v2000_v45 = vpop.eup %1999 }
 0x9fb   :  { %v753_v46 = vmul.f32 %v2000_v45, %v751_v39  ;;  %vm758_vm7 = vweird.f32 %v2000_v45  ;;  %v831_v58 = vmul.f32 %v828_v34, %v2418_v55 }
 0x9fc   :  { %vm759_vm9 = vmor %vm757_vm8, %vm758_vm7 }
 0x9fd   :  { %v754_v47 = vsub.f32 1.0, %v753_v46 }
 0x9ff   :  { %v755_v48 = vmul.f32 %v2000_v45, %v754_v47 }
 0xa01   :  { %v756_v50 = vadd.f32 %v2000_v45, %v755_v48 }
 0xa03   :  { %v760_v53 = vsel %vm759_vm9, %v2000_v45, %v756_v50 }
 0xa04   :  { %v765_v56 = vsel %vm762_vm10, %v764_v54, %v760_v53 }
 0xa05   :  { %v768_v63 = vmul.f32 %v765_v56, %v2422_v59  ;;  %v2091_v59 = vld [vmem:[%s2888_s4 + $0x18] sm:$0xff] }
 0xa21   :  { %v834_v6 = vpop.permute.xlu2 %833 }
 0xa22   :  { %v836_v35 = vmul.f32 %v834_v6, %v828_v34 }
 0xa24   :  { %838 = vrot.lane.b32.xlu0 %v836_v35, %s2097_s2 }
 0xa59   :  { %v771_v30 = vpop.permute.xlu1 %770 }
 0xa5a   :  { %v773_v57 = vmul.f32 %v771_v30, %v765_v56 }
 0xa5c   :  { %775 = vrot.lane.b32.xlu0 %v773_v57, %s2097_s2 }
 0xa96   :  { %v839_v60 = vpop.permute.xlu0 %838 }
 0xa97   :  { %v2451_v61 = vadd.f32 %v839_v60, %v831_v58 }
 0xa99   :  { %2001 = vtanh.f32 %v2451_v61 }
 0xa9f   :  { %v2002_v62 = vpop.eup %2001 }
 0xaa0   :  { %844 = vrot.lane.b32.xlu2 %v2002_v62, %s2097_s2 }
 0xace   :  { %v776_v49 = vpop.permute.xlu0 %775 }
 0xacf   :  { %v2456_v0 = vadd.f32 %v776_v49, %v768_v63 }
 0xad1   :  { %2003 = vtanh.f32 %v2456_v0 }
 0xad7   :  { %v2004_v9 = vpop.eup %2003 }
 0xad8   :  { %781 = vrot.lane.b32.xlu2 %v2004_v9, %s2097_s2 }
 0xafa   :  { %v845_v11 = vpop.permute.xlu2 %844 }
 0xafb   :  { %v2460_v55 = vmul.f32 %v845_v11, %v828_v34 }
 0xafd   :  { %920 = vrot.lane.b32.xlu1 %v2460_v55, %s2098_s18 }
 0xb32   :  { %v782_v1 = vpop.permute.xlu2 %781 }
 0xb33   :  { %v784_v2 = vmul.f32 %v782_v1, %v765_v56 }
 0xb35   :  { %849 = vrot.lane.b32.xlu0 %v784_v2, %s2098_s18 }
 0xb6f   :  { %v921_v3 = vpop.permute.xlu1 %920 }
 0xb70   :  { %1861 = vmatmul.msk.f32.vlgmr.msra.gmra.mxu3 %vm59_vm0, %v921_v3 }
 0xb71   :  { %1204 = vmatpush.msra.mxu3 %v2091_v59 }
 0xb73   :  { %1205 = vmatpush.msra.mxu3 %v2092_v4 }
 0xb75   :  { %1206 = vmatpush.msra.mxu3 %v2221_v14  ;;  %v2095_v14 = vld [vmem:[%s2889_s3 + $0x8] sm:$0xff]  ;;  %s2099_s3 = smov 96  }
 0xb77   :  { %1207 = vmatpush.msra.mxu3 %v2233_v16  ;;  %v149_v16 = vadd.f32 %v2372_v42, %v2278_v27 }
 0xba7   :  { %v2474_v44 = vpop.permute.xlu0 %849 }
 0xba8   :  { %1860 = vmatmul.msk.f32.vlgmr.msra.gmra.mxu2 %vm59_vm0, %v2474_v44 }
 0xba9   :  { %1141 = vmatpush.msra.mxu2 %v2093_v10 }
 0xbab   :  { %1142 = vmatpush.msra.mxu2 %v2094_v12 }
 0xbad   :  { %1143 = vmatpush.msra.mxu2 %v2095_v14 }
 0xbaf   :  { %1144 = vmatpush.msra.mxu2 %v2238_v17 }
 0xbf3   :  { %v941_v15 = vpop.f32.mrf.mxu3 }
 0xbf4   :  { %v944_v5 = vadd.f32 %v941_v15, %v149_v16 }
 0xbf6   :  { %2005 = vtanh.f32 %v944_v5  ;;  %v945_v26 = vsub.f32 0.0, %v944_v5 }
 0xbf8   :  { %v946_v17 = vmul.f32 1.442695, %v945_v26 }
 0xbfc   :  { %v2006_v7 = vpop.eup %2005 }
 0xbfd   :  { %967 = vrot.lane.b32.xlu1 %v2006_v7, %s2097_s2  ;;  %v146_v7 = vadd.f32 %v2370_v41, %v2278_v27 }
 0xc2b   :  { %v878_v13 = vpop.f32.mrf.mxu2 }
 0xc2c   :  { %v881_v19 = vadd.f32 %v878_v13, %v117_v8 }
 0xc2e   :  { %2007 = vtanh.f32 %v881_v19  ;;  %v882_v47 = vsub.f32 0.0, %v881_v19  ;;  %v120_v19 = vadd.f32 %v2267_v20, %v2276_v25 }
 0xc2f   :  { %2009 = vpow2.f32 %v946_v17 }
 0xc30   :  { %v883_v48 = vmul.f32 1.442695, %v882_v47 }
 0xc34   :  { %v2008_v24 = vpop.eup %2007 }
 0xc35   :  { %904 = vrot.lane.b32.xlu0 %v2008_v24, %s2097_s2  ;;  %v2010_v29 = vpop.eup %2009 }
 0xc36   :  { %v948_v42 = vadd.f32 1.0, %v2010_v29 }
 0xc38   :  { %2011 = vrcp.f32 %v948_v42  ;;  %v960_v35 = vand.u32 2147483648, %v948_v42  ;;  %vm954_vm12 = vweird.f32 %v948_v42  ;;  %v958_v36 = vand.u32 2147483647, %v948_v42 }
 0xc39   :  { %2013 = vpow2.f32 %v883_v48 }
 0xc3a   :  { %v961_v38 = vor.u32 1.1754944e-38, %v960_v35  ;;  %vm959_vm14 = vcmp.eq.f32.partialorder %v958_v36, 8.507059e+37 }
 0xc3e   :  { %v2012_v31 = vpop.eup %2011 }
 0xc3f   :  { %v950_v18 = vmul.f32 %v2012_v31, %v948_v42  ;;  %vm955_vm11 = vweird.f32 %v2012_v31  ;;  %v2014_v50 = vpop.eup %2013 }
 0xc40   :  { %vm956_vm13 = vmor %vm954_vm12, %vm955_vm11  ;;  %v885_v51 = vadd.f32 1.0, %v2014_v50 }
 0xc41   :  { %v951_v32 = vsub.f32 1.0, %v950_v18 }
 0xc42   :  { %2015 = vrcp.f32 %v885_v51  ;;  %v897_v57 = vand.u32 2147483648, %v885_v51  ;;  %vm891_vm1 = vweird.f32 %v885_v51  ;;  %v895_v58 = vand.u32 2147483647, %v885_v51 }
 0xc43   :  { %v952_v6 = vmul.f32 %v2012_v31, %v951_v32 }
 0xc44   :  { %v898_v62 = vor.u32 1.1754944e-38, %v897_v57  ;;  %vm896_vm3 = vcmp.eq.f32.partialorder %v895_v58, 8.507059e+37 }
 0xc45   :  { %v953_v34 = vadd.f32 %v2012_v31, %v952_v6 }
 0xc47   :  { %v957_v37 = vsel %vm956_vm13, %v2012_v31, %v953_v34 }
 0xc48   :  { %v962_v45 = vsel %vm959_vm14, %v961_v38, %v957_v37  ;;  %v2016_v52 = vpop.eup %2015 }
 0xc49   :  { %v887_v53 = vmul.f32 %v2016_v52, %v885_v51  ;;  %vm892_vm15 = vweird.f32 %v2016_v52  ;;  %v965_v11 = vmul.f32 %v962_v45, %v2451_v61 }
 0xc4a   :  { %vm893_vm2 = vmor %vm891_vm1, %vm892_vm15 }
 0xc4b   :  { %v888_v54 = vsub.f32 1.0, %v887_v53 }
 0xc4d   :  { %v889_v30 = vmul.f32 %v2016_v52, %v888_v54 }
 0xc4f   :  { %v890_v56 = vadd.f32 %v2016_v52, %v889_v30 }
 0xc51   :  { %v894_v60 = vsel %vm893_vm2, %v2016_v52, %v890_v56 }
 0xc52   :  { %v899_v49 = vsel %vm896_vm3, %v898_v62, %v894_v60 }
 0xc53   :  { %v902_v59 = vmul.f32 %v899_v49, %v2456_v0 }
 0xc6f   :  { %v968_v39 = vpop.permute.xlu1 %967 }
 0xc70   :  { %v970_v46 = vmul.f32 %v968_v39, %v962_v45 }
 0xc72   :  { %972 = vrot.lane.b32.xlu2 %v970_v46, %s2097_s2 }
 0xca7   :  { %v905_v63 = vpop.permute.xlu0 %904 }
 0xca8   :  { %v907_v9 = vmul.f32 %v905_v63, %v899_v49 }
 0xcaa   :  { %909 = vrot.lane.b32.xlu2 %v907_v9, %s2097_s2 }
 0xccc   :  { %v973_v1 = vpop.permute.xlu2 %972 }
 0xccd   :  { %v2496_v2 = vadd.f32 %v973_v1, %v965_v11 }
 0xccf   :  { %2017 = vtanh.f32 %v2496_v2 }
 0xcd5   :  { %v2018_v3 = vpop.eup %2017 }
 0xcd6   :  { %978 = vrot.lane.b32.xlu1 %v2018_v3, %s2097_s2 }
 0xd04   :  { %v910_v4 = vpop.permute.xlu2 %909 }
 0xd05   :  { %v2501_v10 = vadd.f32 %v910_v4, %v902_v59 }
 0xd07   :  { %2019 = vtanh.f32 %v2501_v10 }
 0xd0d   :  { %v2020_v12 = vpop.eup %2019 }
 0xd0e   :  { %915 = vrot.lane.b32.xlu1 %v2020_v12, %s2097_s2 }
 0xd48   :  { %v979_v14 = vpop.permute.xlu1 %978 }
 0xd49   :  { %v2505_v61 = vmul.f32 %v979_v14, %v962_v45 }
 0xd4b   :  { %1054 = vrot.lane.b32.xlu0 %v2505_v61, %s2098_s18 }
 0xd80   :  { %v916_v16 = vpop.permute.xlu1 %915 }
 0xd81   :  { %v918_v15 = vmul.f32 %v916_v16, %v899_v49 }
 0xd83   :  { %983 = vrot.lane.b32.xlu2 %v918_v15, %s2098_s18 }
 0xdbd   :  { %v1055_v5 = vpop.permute.xlu0 %1054 }
 0xdbe   :  { %1863 = vmatmul.msk.f32.vlgmr.msrb.gmra.mxu3 %vm59_vm0, %v1055_v5 }
 0xddd   :  { %v2511_v0 = vpop.permute.xlu2 %983 }
 0xdde   :  { %1862 = vmatmul.msk.f32.vlgmr.msrb.gmra.mxu2 %vm59_vm0, %v2511_v0 }
 0xe41   :  { %v1075_v43 = vpop.f32.mrf.mxu3 }
 0xe42   :  { %v1078_v8 = vadd.f32 %v1075_v43, %v146_v7 }
 0xe44   :  { %2021 = vtanh.f32 %v1078_v8  ;;  %v1079_v29 = vsub.f32 0.0, %v1078_v8  ;;  %v143_v8 = vadd.f32 %v2368_v40, %v2278_v27 }
 0xe46   :  { %v1080_v42 = vmul.f32 1.442695, %v1079_v29 }
 0xe4a   :  { %v2022_v13 = vpop.eup %2021 }
 0xe4b   :  { %1101 = vrot.lane.b32.xlu0 %v2022_v13, %s2097_s2 }
 0xe61   :  { %v1012_v24 = vpop.f32.mrf.mxu2 }
 0xe62   :  { %v1015_v26 = vadd.f32 %v1012_v24, %v120_v19 }
 0xe64   :  { %2023 = vtanh.f32 %v1015_v26  ;;  %v1016_v31 = vsub.f32 0.0, %v1015_v26  ;;  %v123_v26 = vadd.f32 %v2274_v23, %v2276_v25 }
 0xe65   :  { %2025 = vpow2.f32 %v1080_v42 }
 0xe66   :  { %v1017_v41 = vmul.f32 1.442695, %v1016_v31 }
 0xe68   :  { %2027 = vpow2.f32 %v1017_v41 }
 0xe6a   :  { %v2024_v17 = vpop.eup %2023 }
 0xe6b   :  { %1038 = vrot.lane.b32.xlu2 %v2024_v17, %s2097_s2  ;;  %v2026_v18 = vpop.eup %2025 }
 0xe6c   :  { %v1082_v32 = vadd.f32 1.0, %v2026_v18 }
 0xe6e   :  { %2029 = vrcp.f32 %v1082_v32  ;;  %v2028_v6 = vpop.eup %2027  ;;  %v1094_v47 = vand.u32 2147483648, %v1082_v32  ;;  %vm1088_vm5 = vweird.f32 %v1082_v32  ;;  %v1092_v48 = vand.u32 2147483647, %v1082_v32 }
 0xe6f   :  { %v1019_v34 = vadd.f32 1.0, %v2028_v6 }
 0xe70   :  { %v1095_v52 = vor.u32 1.1754944e-38, %v1094_v47  ;;  %vm1093_vm7 = vcmp.eq.f32.partialorder %v1092_v48, 8.507059e+37 }
 0xe71   :  { %2031 = vrcp.f32 %v1019_v34  ;;  %v1031_v57 = vand.u32 2147483648, %v1019_v34  ;;  %vm1025_vm9 = vweird.f32 %v1019_v34  ;;  %v1029_v58 = vand.u32 2147483647, %v1019_v34 }
 0xe73   :  { %v1032_v62 = vor.u32 1.1754944e-38, %v1031_v57  ;;  %vm1030_vm11 = vcmp.eq.f32.partialorder %v1029_v58, 8.507059e+37 }
 0xe74   :  { %v2030_v35 = vpop.eup %2029 }
 0xe75   :  { %v1084_v20 = vmul.f32 %v2030_v35, %v1082_v32  ;;  %vm1089_vm4 = vweird.f32 %v2030_v35 }
 0xe76   :  { %vm1090_vm6 = vmor %vm1088_vm5, %vm1089_vm4  ;;  %vm320_vm5 = vcmask 523520  }
 0xe77   :  { %v1085_v36 = vsub.f32 1.0, %v1084_v20  ;;  %v2032_v37 = vpop.eup %2031 }
 0xe78   :  { %v1021_v39 = vmul.f32 %v2032_v37, %v1019_v34  ;;  %vm1026_vm8 = vweird.f32 %v2032_v37 }
 0xe79   :  { %v1086_v38 = vmul.f32 %v2030_v35, %v1085_v36  ;;  %vm1027_vm10 = vmor %vm1025_vm9, %vm1026_vm8  ;;  %vm1617_vm8 = vcmask 1048064   ;;  %vm1813_vm9 = vcmask 39936  }
 0xe7a   :  { %v1022_v46 = vsub.f32 1.0, %v1021_v39 }
 0xe7b   :  { %v1087_v45 = vadd.f32 %v2030_v35, %v1086_v38 }
 0xe7c   :  { %v1023_v51 = vmul.f32 %v2032_v37, %v1022_v46 }
 0xe7d   :  { %v1091_v50 = vsel %vm1090_vm6, %v2030_v35, %v1087_v45  ;;  %vm1276_vm6 = vcmask 523264  }
 0xe7e   :  { %v1096_v54 = vsel %vm1093_vm7, %v1095_v52, %v1091_v50  ;;  %v1024_v56 = vadd.f32 %v2032_v37, %v1023_v51  ;;  %vm1356_vm7 = vcmask 130048  }
 0xe7f   :  { %v1099_v11 = vmul.f32 %v1096_v54, %v2496_v2 }
 0xe80   :  { %v1028_v60 = vsel %vm1027_vm10, %v2032_v37, %v1024_v56 }
 0xe81   :  { %v1033_v49 = vsel %vm1030_vm11, %v1032_v62, %v1028_v60 }
 0xe82   :  { %v1036_v59 = vmul.f32 %v1033_v49, %v2501_v10 }
 0xebd   :  { %v1102_v53 = vpop.permute.xlu0 %1101 }
 0xebe   :  { %v1104_v30 = vmul.f32 %v1102_v53, %v1096_v54 }
 0xec0   :  { %1106 = vrot.lane.b32.xlu1 %v1104_v30, %s2097_s2 }
 0xec5   :  { %v1039_v63 = vpop.permute.xlu2 %1038 }
 0xec6   :  { %v1041_v9 = vmul.f32 %v1039_v63, %v1033_v49 }
 0xec8   :  { %1043 = vrot.lane.b32.xlu1 %v1041_v9, %s2097_s2 }
 0xf32   :  { %v1107_v1 = vpop.permute.xlu1 %1106 }
 0xf33   :  { %v2524_v3 = vadd.f32 %v1107_v1, %v1099_v11 }
 0xf35   :  { %2033 = vtanh.f32 %v2524_v3 }
 0xf3a   :  { %v1044_v4 = vpop.permute.xlu1 %1043 }
 0xf3b   :  { %v2034_v12 = vpop.eup %2033  ;;  %v2528_v14 = vadd.f32 %v1044_v4, %v1036_v59 }
 0xf3c   :  { %1112 = vrot.lane.b32.xlu0 %v2034_v12, %s2097_s2 }
 0xf3d   :  { %2035 = vtanh.f32 %v2528_v14 }
 0xf43   :  { %v2036_v16 = vpop.eup %2035 }
 0xf44   :  { %1049 = vrot.lane.b32.xlu0 %v2036_v16, %s2097_s2 }
 0xfae   :  { %v1113_v15 = vpop.permute.xlu0 %1112 }
 0xfaf   :  { %v2533_v2 = vmul.f32 %v1113_v15, %v1096_v54 }
 0xfb1   :  { %1188 = vrot.lane.b32.xlu2 %v2533_v2, %s2098_s18 }
 0xfb6   :  { %v1050_v5 = vpop.permute.xlu0 %1049 }
 0xfb7   :  { %v1052_v7 = vmul.f32 %v1050_v5, %v1033_v49 }
 0xfb9   :  { %1117 = vrot.lane.b32.xlu1 %v1052_v7, %s2098_s18  ;;  %v1271_v7 = vld [vmem:[%s2891_s5 + $0x18] sm:$0xff] }
0x100b   :  { %v1189_v10 = vpop.permute.xlu2 %1188 }
0x100c   :  { %1865 = vmatmul.msk.f32.vlgmr.msra.gmra.mxu3 %vm59_vm0, %v1189_v10  ;;  %v1270_v10 = vld [vmem:[%s2891_s5 + $0x10] sm:$0xff] }
0x102b   :  { %v2539_v43 = vpop.permute.xlu1 %1117 }
0x102c   :  { %1864 = vmatmul.msk.f32.vlgmr.msra.gmra.mxu2 %vm59_vm0, %v2539_v43 }
0x108f   :  { %v1209_v13 = vpop.f32.mrf.mxu3 }
0x1090   :  { %v1212_v19 = vadd.f32 %v1209_v13, %v143_v8  ;;  %v1269_v8 = vld [vmem:[%s2891_s5 + $0x8] sm:$0xff]  ;;  %v1268_v13 = vld [vmem:[%s2891_s5] sm:$0xff] }
0x1092   :  { %2037 = vtanh.f32 %v1212_v19  ;;  %v1213_v31 = vsub.f32 0.0, %v1212_v19 }
0x1094   :  { %v1214_v41 = vmul.f32 1.442695, %v1213_v31 }
0x1098   :  { %v2038_v24 = vpop.eup %2037 }
0x1099   :  { %1235 = vrot.lane.b32.xlu2 %v2038_v24, %s2097_s2 }
0x10af   :  { %v1146_v17 = vpop.f32.mrf.mxu2 }
0x10b0   :  { %v1149_v29 = vadd.f32 %v1146_v17, %v123_v26 }
0x10b2   :  { %2039 = vtanh.f32 %v1149_v29  ;;  %v1150_v45 = vsub.f32 0.0, %v1149_v29 }
0x10b3   :  { %2041 = vpow2.f32 %v1214_v41 }
0x10b4   :  { %v1151_v46 = vmul.f32 1.442695, %v1150_v45 }
0x10b8   :  { %v2040_v42 = vpop.eup %2039 }
0x10b9   :  { %1172 = vrot.lane.b32.xlu1 %v2040_v42, %s2097_s2  ;;  %v2042_v18 = vpop.eup %2041 }
0x10ba   :  { %v1216_v27 = vadd.f32 1.0, %v2042_v18 }
0x10bc   :  { %2043 = vrcp.f32 %v1216_v27  ;;  %v1228_v20 = vand.u32 2147483648, %v1216_v27  ;;  %vm1222_vm13 = vweird.f32 %v1216_v27  ;;  %v1226_v23 = vand.u32 2147483647, %v1216_v27 }
0x10bd   :  { %2045 = vpow2.f32 %v1151_v46 }
0x10be   :  { %v1229_v36 = vor.u32 1.1754944e-38, %v1228_v20  ;;  %vm1227_vm15 = vcmp.eq.f32.partialorder %v1226_v23, 8.507059e+37 }
0x10c2   :  { %v2044_v40 = vpop.eup %2043 }
0x10c3   :  { %v1218_v32 = vmul.f32 %v2044_v40, %v1216_v27  ;;  %vm1223_vm12 = vweird.f32 %v2044_v40  ;;  %v2046_v47 = vpop.eup %2045  ;;  %v1351_v27 = vld [vmem:[%s2892_s6 + $0x8] sm:$0xff] }
0x10c4   :  { %vm1224_vm14 = vmor %vm1222_vm13, %vm1223_vm12  ;;  %v1153_v48 = vadd.f32 1.0, %v2046_v47  ;;  %1395 = vmatpush.msrb.mxu1 %v1351_v27 }
0x10c5   :  { %v1219_v6 = vsub.f32 1.0, %v1218_v32 }
0x10c6   :  { %2047 = vrcp.f32 %v1153_v48  ;;  %v1165_v30 = vand.u32 2147483648, %v1153_v48  ;;  %vm1159_vm2 = vweird.f32 %v1153_v48  ;;  %v1163_v56 = vand.u32 2147483647, %v1153_v48 }
0x10c7   :  { %v1220_v34 = vmul.f32 %v2044_v40, %v1219_v6  ;;  %v1350_v6 = vld [vmem:[%s2892_s6] sm:$0xff] }
0x10c8   :  { %v1166_v58 = vor.u32 1.1754944e-38, %v1165_v30  ;;  %vm1164_vm4 = vcmp.eq.f32.partialorder %v1163_v56, 8.507059e+37  ;;  %1396 = vmatpush.msrb.mxu1 %v1350_v6 }
0x10c9   :  { %v1221_v35 = vadd.f32 %v2044_v40, %v1220_v34 }
0x10cb   :  { %v1225_v25 = vsel %vm1224_vm14, %v2044_v40, %v1221_v35 }
0x10cc   :  { %v1230_v38 = vsel %vm1227_vm15, %v1229_v36, %v1225_v25  ;;  %v2048_v50 = vpop.eup %2047 }
0x10cd   :  { %v1155_v51 = vmul.f32 %v2048_v50, %v1153_v48  ;;  %vm1160_vm1 = vweird.f32 %v2048_v50  ;;  %v1233_v49 = vmul.f32 %v1230_v38, %v2524_v3 }
0x10ce   :  { %vm1161_vm3 = vmor %vm1159_vm2, %vm1160_vm1 }
0x10cf   :  { %v1156_v52 = vsub.f32 1.0, %v1155_v51 }
0x10d1   :  { %v1157_v53 = vmul.f32 %v2048_v50, %v1156_v52 }
0x10d3   :  { %v1158_v54 = vadd.f32 %v2048_v50, %v1157_v53 }
0x10d5   :  { %v1162_v57 = vsel %vm1161_vm3, %v2048_v50, %v1158_v54 }
0x10d6   :  { %v1167_v62 = vsel %vm1164_vm4, %v1166_v58, %v1162_v57 }
0x10d7   :  { %v1170_v59 = vmul.f32 %v1167_v62, %v2528_v14 }
0x10f3   :  { %v1236_v37 = vpop.permute.xlu2 %1235 }
0x10f4   :  { %v1238_v39 = vmul.f32 %v1236_v37, %v1230_v38 }
0x10f6   :  { %1240 = vrot.lane.b32.xlu0 %v1238_v39, %s2097_s2 }
0x112b   :  { %v1173_v60 = vpop.permute.xlu1 %1172 }
0x112c   :  { %v1175_v63 = vmul.f32 %v1173_v60, %v1167_v62 }
0x112e   :  { %1177 = vrot.lane.b32.xlu0 %v1175_v63, %s2097_s2 }
0x1168   :  { %v1241_v9 = vpop.permute.xlu0 %1240 }
0x1169   :  { %v1243_v11 = vadd.f32 %v1241_v9, %v1233_v49 }
0x116b   :  { %2049 = vtanh.f32 %v1243_v11 }
0x1171   :  { %v2050_v1 = vpop.eup %2049 }
0x1172   :  { %1246 = vrot.lane.b32.xlu2 %v2050_v1, %s2097_s2 }
0x117a   :  { %1122 = vrot.lane.b32.xlu2 %v2533_v2, %s2099_s3 }
0x1182   :  { %854 = vrot.lane.b32.xlu2 %v2460_v55, %s2099_s3 }
0x118a   :  { %452 = vrot.lane.b32.xlu2 %v2340_v33, %s2099_s3 }
0x11a0   :  { %v1178_v4 = vpop.permute.xlu0 %1177 }
0x11a1   :  { %v1180_v12 = vadd.f32 %v1178_v4, %v1170_v59 }
0x11a3   :  { %2051 = vtanh.f32 %v1180_v12 }
0x11a9   :  { %v2052_v16 = vpop.eup %2051 }
0x11aa   :  { %1183 = vrot.lane.b32.xlu0 %v2052_v16, %s2097_s2 }
0x11b2   :  { %720 = vrot.lane.b32.xlu0 %v2427_v21, %s2099_s3  ;;  %v1274_v21 = vld [vmem:[%s2891_s5 + $0x30] sm:$0xff] }
0x11ba   :  { %317 = vrot.lane.b32.xlu0 %v2295_v28, %s2099_s3  ;;  %v1275_v28 = vld [vmem:[%s2891_s5 + $0x38] sm:$0xff] }
0x11bb   :  { %1309 = vmatpush.msrb.mxu0 %v1275_v28 }
0x11bd   :  { %1310 = vmatpush.msrb.mxu0 %v1274_v21 }
0x11cc   :  { %v1247_v3 = vpop.permute.xlu2 %1246 }
0x11cd   :  { %v1249_v15 = vmul.f32 %v1247_v3, %v1230_v38 }
0x11cf   :  { %1256 = vrot.lane.b32.xlu1 %v1249_v15, %s2099_s3 }
0x11d4   :  { %v1123_v2 = vpop.permute.xlu2 %1122 }
0x11d5   :  { %1125 = vst.msk [vmem:[#allocation3 + $0x8] sm:$0xff] %vm320_vm5, %v1123_v2 }
0x11d7   :  { %988 = vrot.lane.b32.xlu1 %v2505_v61, %s2099_s3  ;;  %v1273_v61 = vld [vmem:[%s2891_s5 + $0x28] sm:$0xff] }
0x11d8   :  { %1311 = vmatpush.msrb.mxu0 %v1273_v61 }
0x11dc   :  { %v855_v33 = vpop.permute.xlu2 %854  ;;  %v2602_v29 = vld [vmem:[#allocation3 + $0x8] sm:$0xff] }
0x11dd   :  { %857 = vst.msk [vmem:[#allocation3 + $0x18] sm:$0xff] %vm320_vm5, %v855_v33 }
0x11df   :  { %586 = vrot.lane.b32.xlu1 %v2394_v22, %s2099_s3  ;;  %v1272_v22 = vld [vmem:[%s2891_s5 + $0x20] sm:$0xff] }
0x11e0   :  { %1312 = vmatpush.msrb.mxu0 %v1272_v22 }
0x11e2   :  { %1313 = vmatpush.msrb.mxu0 %v1271_v7 }
0x11e4   :  { %v453_v55 = vpop.permute.xlu2 %452  ;;  %1314 = vmatpush.msrb.mxu0 %v1270_v10  ;;  %v2613_v31 = vld [vmem:[#allocation3 + $0x18] sm:$0xff] }
0x11e5   :  { %455 = vst.msk [vmem:[#allocation3 + $0x30] sm:$0xff] %vm320_vm5, %v453_v55 }
0x11e6   :  { %1120 = vst.msk [vmem:[#allocation3 + $0x30] sm:$0xff] %vm59_vm0, %v2539_v43  ;;  %1315 = vmatpush.msrb.mxu0 %v1269_v8 }
0x11e8   :  { %1316 = vmatpush.msrb.mxu0 %v1268_v13 }
0x121c   :  { %v1184_v14 = vpop.permute.xlu0 %1183 }
0x121d   :  { %v1186_v5 = vmul.f32 %v1184_v14, %v1167_v62  ;;  %v1923_v62 = vld [vmem:[%s2893_s7] ss:$0 sm:$0xff] }
0x121f   :  { %1251 = vrot.lane.b32.xlu1 %v1186_v5, %s2098_s18 }
0x1224   :  { %v721_v43 = vpop.permute.xlu0 %720 }
0x1225   :  { %723 = vst.msk [vmem:[#allocation3 + $0x20] sm:$0xff] %vm320_vm5, %v721_v43 }
0x1226   :  { %852 = vst.msk [vmem:[#allocation3 + $0x20] sm:$0xff] %vm59_vm0, %v2474_v44 }
0x122c   :  { %v318_v19 = vpop.permute.xlu0 %317 }
0x122d   :  { %321 = vst.msk [vmem:[#allocation3 + $0x38] sm:$0xff] %vm320_vm5, %v318_v19  ;;  %v2617_v41 = vld [vmem:[#allocation3 + $0x20] sm:$0xff] }
0x1241   :  { %v1257_v24 = vpop.permute.xlu1 %1256 }
0x1242   :  { %1259 = vst.msk [vmem:[#allocation3] sm:$0xff] %vm320_vm5, %v1257_v24 }
0x1249   :  { %v989_v26 = vpop.permute.xlu1 %988  ;;  %v2597_v17 = vld [vmem:[#allocation3] sm:$0xff] }
0x124a   :  { %991 = vst.msk [vmem:[#allocation3 + $0x10] sm:$0xff] %vm320_vm5, %v989_v26  ;;  %1866 = vmatmul.msk.f32.vlgmr.msrb.gmra.mxu0 %vm1276_vm6, %v2597_v17 }
0x1251   :  { %v587_v44 = vpop.permute.xlu1 %586  ;;  %v2609_v42 = vld [vmem:[#allocation3 + $0x10] sm:$0xff] }
0x1252   :  { %589 = vst.msk [vmem:[#allocation3 + $0x28] sm:$0xff] %vm320_vm5, %v587_v44  ;;  %1867 = vmatmul.msk.f32.gmra.mxu0 %vm1276_vm6, %v2602_v29 }
0x1253   :  { %986 = vst.msk [vmem:[#allocation3 + $0x28] sm:$0xff] %vm59_vm0, %v2511_v0  ;;  %v2625_v0 = vld [vmem:[#allocation3 + $0x30] sm:$0xff] }
0x125a   :  { %1868 = vmatmul.msk.f32.gmra.mxu0 %vm1276_vm6, %v2609_v42  ;;  %v2621_v18 = vld [vmem:[#allocation3 + $0x28] sm:$0xff] }
0x1262   :  { %1869 = vmatmul.msk.f32.gmra.mxu0 %vm1276_vm6, %v2613_v31 }
0x126a   :  { %1870 = vmatmul.msk.f32.gmra.mxu0 %vm1276_vm6, %v2617_v41 }
0x1272   :  { %1871 = vmatmul.msk.f32.gmra.mxu0 %vm1276_vm6, %v2621_v18 }
0x127a   :  { %1872 = vmatmul.msk.f32.gmra.mxu0 %vm1276_vm6, %v2625_v0 }
0x1291   :  { %v1252_v40 = vpop.permute.xlu1 %1251 }
0x1292   :  { %1254 = vst.msk [vmem:[#allocation3 + $0x38] sm:$0xff] %vm59_vm0, %v1252_v40  ;;  %vm1422_vm0 = vcmask 31744  }
0x1299   :  { %v2633_v32 = vld [vmem:[#allocation3 + $0x38] sm:$0xff] }
0x129a   :  { %1873 = vmatmul.msk.f32.gmra.mxu0 %vm1276_vm6, %v2633_v32 }
0x12c7   :  { %v1318_v34 = vpop.f32.mrf.mxu0 }
0x12c8   :  { %2053 = vtanh.f32 %v1318_v34 }
0x12ce   :  { %v2054_v35 = vpop.eup %2053 }
0x12cf   :  { %v1321_v20 = vpop.f32.mrf.mxu0  ;;  %1874 = vmatmul.msk.f32.vlgmr.msrb.gmra.mxu1 %vm1356_vm7, %v2054_v35 }
0x12d0   :  { %2055 = vtanh.f32 %v1321_v20 }
0x12d6   :  { %v2056_v23 = vpop.eup %2055 }
0x12d7   :  { %v1324_v25 = vpop.f32.mrf.mxu0  ;;  %1875 = vmatmul.msk.f32.gmra.mxu1 %vm1356_vm7, %v2056_v23 }
0x12d8   :  { %2057 = vtanh.f32 %v1324_v25  ;;  %v2100_v25 = vmov 1  }
0x12d9   :  { %1900 = vset.pattern.permute.xlu1 %v2100_v25  ;;  %1899 = vset.pattern.permute.xlu0 %v2100_v25 }
0x12da   :  { %1898 = vset.pattern.permute.xlu2 %v2100_v25 }
0x12de   :  { %v2058_v36 = vpop.eup %2057 }
0x12df   :  { %v1327_v37 = vpop.f32.mrf.mxu0  ;;  %1876 = vmatmul.msk.f32.gmra.mxu1 %vm1356_vm7, %v2058_v36 }
0x12e0   :  { %2059 = vtanh.f32 %v1327_v37 }
0x12e6   :  { %v2060_v38 = vpop.eup %2059 }
0x12e7   :  { %v1330_v39 = vpop.f32.mrf.mxu0  ;;  %1877 = vmatmul.msk.f32.gmra.mxu1 %vm1356_vm7, %v2060_v38 }
0x12e8   :  { %2061 = vtanh.f32 %v1330_v39 }
0x12ee   :  { %v2062_v45 = vpop.eup %2061 }
0x12ef   :  { %v1333_v46 = vpop.f32.mrf.mxu0  ;;  %1878 = vmatmul.msk.f32.gmra.mxu1 %vm1356_vm7, %v2062_v45 }
0x12f0   :  { %2063 = vtanh.f32 %v1333_v46 }
0x12f6   :  { %v2064_v47 = vpop.eup %2063 }
0x12f7   :  { %v1336_v48 = vpop.f32.mrf.mxu0  ;;  %1879 = vmatmul.msk.f32.gmra.mxu1 %vm1356_vm7, %v2064_v47 }
0x12f8   :  { %2065 = vtanh.f32 %v1336_v48 }
0x12fe   :  { %v2066_v50 = vpop.eup %2065 }
0x12ff   :  { %1880 = vmatmul.msk.f32.gmra.mxu1 %vm1356_vm7, %v2066_v50 }
0x1317   :  { %v1339_v51 = vpop.f32.mrf.mxu0 }
0x1318   :  { %2067 = vtanh.f32 %v1339_v51 }
0x131e   :  { %v2068_v52 = vpop.eup %2067 }
0x131f   :  { %1881 = vmatmul.msk.f32.gmra.mxu1 %vm1356_vm7, %v2068_v52 }
0x134c   :  { %v1398_v53 = vpop.f32.mrf.mxu1 }
0x134d   :  { %v1399_v1 = vadd.f32 %v1923_v62, %v1398_v53 }
0x134f   :  { %v1423_v28 = vsel %vm1422_vm0, %v1399_v1, -inf }
0x1354   :  { %v1401_v54 = vpop.f32.mrf.mxu1 }
0x1355   :  { %v1402_v49 = vadd.f32 %v1923_v62, %v1401_v54 }
0x1357   :  { %v1424_v3 = vsel %vm1422_vm0, %v1402_v49, -inf }
0x135c   :  { %v1404_v30 = vpop.f32.mrf.mxu1 }
0x135d   :  { %v1405_v59 = vadd.f32 %v1923_v62, %v1404_v30 }
0x135f   :  { %v1425_v21 = vsel %vm1422_vm0, %v1405_v59, -inf }
0x1364   :  { %v1407_v56 = vpop.f32.mrf.mxu1 }
0x1365   :  { %v1408_v4 = vadd.f32 %v1923_v62, %v1407_v56 }
0x1367   :  { %v1426_v61 = vsel %vm1422_vm0, %v1408_v4, -inf }
0x136c   :  { %v1410_v57 = vpop.f32.mrf.mxu1 }
0x136d   :  { %v1411_v9 = vadd.f32 %v1923_v62, %v1410_v57 }
0x136f   :  { %v1427_v15 = vsel %vm1422_vm0, %v1411_v9, -inf }
0x1370   :  { %v1428_v14 = vmax.f32 %v1423_v28, %v1427_v15 }
0x1374   :  { %v1413_v58 = vpop.f32.mrf.mxu1 }
0x1375   :  { %v1414_v63 = vadd.f32 %v1923_v62, %v1413_v58 }
0x1377   :  { %v1429_v12 = vsel %vm1422_vm0, %v1414_v63, -inf }
0x1378   :  { %v1430_v55 = vmax.f32 %v1424_v3, %v1429_v12 }
0x137a   :  { %v1435_v10 = vmax.f32 %v1428_v14, %v1430_v55  ;;  %v2102_v14 = vmov 0  }
0x137c   :  { %v1416_v60 = vpop.f32.mrf.mxu1 }
0x137d   :  { %v1417_v11 = vadd.f32 %v1923_v62, %v1416_v60 }
0x137f   :  { %v1431_v2 = vsel %vm1422_vm0, %v1417_v11, -inf }
0x1380   :  { %v1432_v5 = vmax.f32 %v1425_v21, %v1431_v2 }
0x139c   :  { %v1419_v16 = vpop.f32.mrf.mxu1 }
0x139d   :  { %v1420_v33 = vadd.f32 %v1923_v62, %v1419_v16 }
0x139f   :  { %v1433_v22 = vsel %vm1422_vm0, %v1420_v33, -inf }
0x13a0   :  { %v1434_v7 = vmax.f32 %v1426_v61, %v1433_v22  ;;  %v2101_v22 = vmov 3  }
0x13a2   :  { %v1436_v43 = vmax.f32 %v1432_v5, %v1434_v7  ;;  %v2103_v5 = vmov 2  }
0x13a4   :  { %v1437_v8 = vmax.f32 %v1435_v10, %v1436_v43 }
0x13a6   :  { %v1438_v13 = vsub.f32 %v1399_v1, %v1437_v8  ;;  %v1439_v19 = vsub.f32 %v1402_v49, %v1437_v8  ;;  %v1440_v24 = vsub.f32 %v1405_v59, %v1437_v8  ;;  %v1441_v26 = vsub.f32 %v1408_v4, %v1437_v8 }
0x13a7   :  { %v1442_v44 = vsub.f32 %v1411_v9, %v1437_v8  ;;  %v1443_v34 = vsub.f32 %v1414_v63, %v1437_v8  ;;  %v1444_v20 = vsub.f32 %v1417_v11, %v1437_v8  ;;  %v1445_v36 = vsub.f32 %v1420_v33, %v1437_v8 }
0x13a8   :  { %v1446_v27 = vmul.f32 1.442695, %v1438_v13  ;;  %v1448_v40 = vmul.f32 1.442695, %v1439_v19  ;;  %v1450_v6 = vmul.f32 1.442695, %v1440_v24 }
0x13a9   :  { %v1452_v35 = vmul.f32 1.442695, %v1441_v26  ;;  %v1454_v23 = vmul.f32 1.442695, %v1442_v44  ;;  %v1456_v37 = vmul.f32 1.442695, %v1443_v34 }
0x13aa   :  { %2069 = vpow2.f32 %v1446_v27  ;;  %v1458_v38 = vmul.f32 1.442695, %v1444_v20  ;;  %v1460_v46 = vmul.f32 1.442695, %v1445_v36 }
0x13ab   :  { %2071 = vpow2.f32 %v1448_v40 }
0x13ac   :  { %2073 = vpow2.f32 %v1450_v6 }
0x13ad   :  { %2075 = vpow2.f32 %v1452_v35 }
0x13ae   :  { %2077 = vpow2.f32 %v1454_v23 }
0x13af   :  { %2079 = vpow2.f32 %v1456_v37 }
0x13b0   :  { %v2070_v39 = vpop.eup %2069  ;;  %2081 = vpow2.f32 %v1458_v38 }
0x13b1   :  { %v2072_v45 = vpop.eup %2071  ;;  %v1462_v47 = vsel %vm1422_vm0, %v2070_v39, 0.0  ;;  %2083 = vpow2.f32 %v1460_v46 }
0x13b2   :  { %v2074_v48 = vpop.eup %2073  ;;  %v1463_v50 = vsel %vm1422_vm0, %v2072_v45, 0.0 }
0x13b3   :  { %v2076_v51 = vpop.eup %2075  ;;  %v1464_v52 = vadd.f32 %v1463_v50, %v1462_v47  ;;  %v1465_v53 = vsel %vm1422_vm0, %v2074_v48, 0.0 }
0x13b4   :  { %v2078_v54 = vpop.eup %2077  ;;  %v1467_v56 = vsel %vm1422_vm0, %v2076_v51, 0.0 }
0x13b5   :  { %v1466_v30 = vadd.f32 %v1465_v53, %v1464_v52  ;;  %v2080_v57 = vpop.eup %2079  ;;  %v1469_v60 = vsel %vm1422_vm0, %v2078_v54, 0.0 }
0x13b6   :  { %v2082_v62 = vpop.eup %2081  ;;  %v1471_v49 = vsel %vm1422_vm0, %v2080_v57, 0.0 }
0x13b7   :  { %v1468_v58 = vadd.f32 %v1467_v56, %v1466_v30  ;;  %v2084_v9 = vpop.eup %2083  ;;  %v1473_v1 = vsel %vm1422_vm0, %v2082_v62, 0.0 }
0x13b8   :  { %v1475_v4 = vsel %vm1422_vm0, %v2084_v9, 0.0 }
0x13b9   :  { %v1470_v63 = vadd.f32 %v1469_v60, %v1468_v58 }
0x13bb   :  { %v1472_v11 = vadd.f32 %v1471_v49, %v1470_v63 }
0x13bd   :  { %v1474_v59 = vadd.f32 %v1473_v1, %v1472_v11 }
0x13bf   :  { %v1476_v12 = vadd.f32 %v1475_v4, %v1474_v59 }
0x13c1   :  { %2085 = vrcp.f32 %v1476_v12 }
0x13c7   :  { %v2086_v16 = vpop.eup %2085 }
0x13c8   :  { %v2670_v3 = vmul.f32 %v2086_v16, %v2084_v9  ;;  %v1480_v15 = vmul.f32 %v2086_v16, %v2074_v48  ;;  %v1479_v2 = vmul.f32 %v2086_v16, %v2072_v45  ;;  %v1478_v33 = vmul.f32 %v2086_v16, %v2070_v39 }
0x13c9   :  { %v1482_v55 = vmul.f32 %v2086_v16, %v2078_v54  ;;  %v1484_v28 = vmul.f32 %v2086_v16, %v2082_v62  ;;  %v1481_v21 = vmul.f32 %v2086_v16, %v2076_v51  ;;  %v1483_v61 = vmul.f32 %v2086_v16, %v2080_v57 }
0x13ca   :  { %1493 = vst.msk [vmem:[%s2894_s11 + $0x38] sm:$0xff] %vm1422_vm0, %v2670_v3  ;;  %1567 = vperm.xlu1 %1900, %v1480_v15   ;;  %1563 = vperm.xlu0 %1899, %v1479_v2  }
0x13cb   :  { %1488 = vst.msk [vmem:[%s2894_s11 + $0x10] sm:$0xff] %vm1422_vm0, %v1480_v15  ;;  %1559 = vperm.xlu2 %1898, %v1478_v33  }
0x13cc   :  { %1487 = vst.msk [vmem:[%s2894_s11 + $0x8] sm:$0xff] %vm1422_vm0, %v1479_v2 }
0x13cd   :  { %1486 = vst.msk [vmem:[%s2894_s11] sm:$0xff] %vm1422_vm0, %v1478_v33 }
0x13ce   :  { %1490 = vst.msk [vmem:[%s2894_s11 + $0x20] sm:$0xff] %vm1422_vm0, %v1482_v55 }
0x13cf   :  { %1492 = vst.msk [vmem:[%s2894_s11 + $0x30] sm:$0xff] %vm1422_vm0, %v1484_v28 }
0x13d0   :  { %1489 = vst.msk [vmem:[%s2894_s11 + $0x18] sm:$0xff] %vm1422_vm0, %v1481_v21 }
0x13d1   :  { %1491 = vst.msk [vmem:[%s2894_s11 + $0x28] sm:$0xff] %vm1422_vm0, %v1483_v61 }
0x13d2   :  { %1902 = vset.pattern.permute.xlu1 %v2101_v22  ;;  %1904 = vset.pattern.permute.xlu0 %v2101_v22 }
0x13d3   :  { %1901 = vset.pattern.permute.xlu2 %v2101_v22  ;;  %1680 = vperm.xlu1 %1902, %v1479_v2  }
0x13d4   :  { %1684 = vperm.xlu0 %1904, %v1480_v15   ;;  %1676 = vperm.xlu2 %1901, %v1478_v33  }
0x13db   :  { %1905 = vset.pattern.permute.xlu1 %v2100_v25 }
0x13dc   :  { %1907 = vset.pattern.permute.xlu0 %v2100_v25  ;;  %1903 = vset.pattern.permute.xlu2 %v2100_v25 }
0x13dd   :  { %1575 = vperm.xlu1 %1905, %v1482_v55   ;;  %1583 = vperm.xlu0 %1907, %v1484_v28  }
0x13de   :  { %1571 = vperm.xlu2 %1903, %v1481_v21  }
0x13e5   :  { %1579 = vperm.xlu1 %1905, %v1483_v61   ;;  %1911 = vset.pattern.permute.xlu0 %v2102_v14 }
0x13e6   :  { %1906 = vset.pattern.permute.xlu2 %v2101_v22  ;;  %1496 = vperm.xlu0 %1911, %v1478_v33  }
0x13e7   :  { %1688 = vperm.xlu2 %1906, %v1481_v21  }
0x13ed   :  { %1908 = vset.pattern.permute.xlu1 %v2101_v22 }
0x13ee   :  { %1696 = vperm.xlu1 %1908, %v1483_v61   ;;  %1511 = vperm.xlu0 %1911, %v1481_v21  }
0x13ef   :  { %1692 = vperm.xlu2 %1906, %v1482_v55  }
0x13f6   :  { %1700 = vperm.xlu1 %1908, %v1484_v28   ;;  %1917 = vset.pattern.permute.xlu0 %v2103_v5 }
0x13f7   :  { %1909 = vset.pattern.permute.xlu2 %v2100_v25  ;;  %1632 = vperm.xlu0 %1917, %v1481_v21  }
0x13f8   :  { %1587 = vperm.xlu2 %1909, %v2670_v3  }
0x13fe   :  { %1912 = vset.pattern.permute.xlu1 %v2102_v14 }
0x13ff   :  { %1501 = vperm.xlu1 %1912, %v1479_v2   ;;  %1920 = vset.pattern.permute.xlu0 %v2102_v14 }
0x1400   :  { %1910 = vset.pattern.permute.xlu2 %v2101_v22  ;;  %1531 = vperm.xlu0 %1920, %v2670_v3  }
0x1401   :  { %1704 = vperm.xlu2 %1910, %v2670_v3  }
0x1407   :  { %1914 = vset.pattern.permute.xlu1 %v2103_v5 }
0x1408   :  { %1620 = vperm.xlu1 %1914, %v1478_v33   ;;  %1922 = vset.pattern.permute.xlu0 %v2101_v22 }
0x1409   :  { %1913 = vset.pattern.permute.xlu2 %v2102_v14 }
0x140a   :  { %1506 = vperm.xlu2 %1913, %v1480_v15  }
0x1410   :  { %1628 = vperm.xlu1 %1914, %v1480_v15  }
0x1412   :  { %1915 = vset.pattern.permute.xlu2 %v2103_v5 }
0x1413   :  { %1624 = vperm.xlu2 %1915, %v1479_v2  }
0x1418   :  { %1918 = vset.pattern.permute.xlu1 %v2102_v14 }
0x1419   :  { %1521 = vperm.xlu1 %1918, %v1483_v61  }
0x141b   :  { %1916 = vset.pattern.permute.xlu2 %v2102_v14 }
0x141c   :  { %1516 = vperm.xlu2 %1916, %v1482_v55  }
0x1421   :  { %1526 = vperm.xlu1 %1918, %v1484_v28  }
0x1424   :  { %1919 = vset.pattern.permute.xlu2 %v2103_v5 }
0x1425   :  { %1636 = vperm.xlu2 %1919, %v1482_v55   ;;  %v1560_v7 = vpop.permute.xlu2 %1559 }
0x1426   :  { %v1590_v44 = vmul.f32 %v1560_v7, %v2597_v17 }
0x1428   :  { %v1598_v34 = vsel %vm1276_vm6, %v1590_v44, 0.0 }
0x1429   :  { %1921 = vset.pattern.permute.xlu1 %v2103_v5 }
0x142a   :  { %1644 = vperm.xlu1 %1921, %v1484_v28  }
0x142d   :  { %1640 = vperm.xlu2 %1919, %v1483_v61  }
0x142e   :  { %v1677_v10 = vpop.permute.xlu2 %1676 }
0x142f   :  { %v1707_v50 = vmul.f32 %v1677_v10, %v2597_v17 }
0x1431   :  { %v1715_v60 = vsel %vm1276_vm6, %v1707_v50, 0.0 }
0x1435   :  { %1648 = vperm.xlu2 %1919, %v2670_v3  }
0x1438   :  { %v1572_v43 = vpop.permute.xlu2 %1571 }
0x1439   :  { %v1593_v25 = vmul.f32 %v1572_v43, %v2613_v31 }
0x143b   :  { %v1603_v47 = vsel %vm1276_vm6, %v1593_v25, 0.0 }
0x143c   :  { %v1568_v8 = vpop.permute.xlu1 %1567  ;;  %v1564_v13 = vpop.permute.xlu0 %1563 }
0x143d   :  { %v1591_v26 = vmul.f32 %v1564_v13, %v2602_v29  ;;  %v1592_v35 = vmul.f32 %v1568_v8, %v2609_v42 }
0x143f   :  { %v1599_v6 = vsel %vm1276_vm6, %v1591_v26, 0.0  ;;  %v1601_v36 = vsel %vm1276_vm6, %v1592_v35, 0.0 }
0x1440   :  { %v1600_v20 = vadd.f32 %v1599_v6, %v1598_v34 }
0x1441   :  { %v1689_v19 = vpop.permute.xlu2 %1688 }
0x1442   :  { %v1602_v38 = vadd.f32 %v1601_v36, %v1600_v20  ;;  %v1710_v4 = vmul.f32 %v1689_v19, %v2613_v31  ;;  %v1768_v36 = vld [vmem:[%s2895_s8 + $0xf8] sm:$0xff] }
0x1443   :  { %1793 = vmatpush.msrb.mxu3 %v1768_v36 }
0x1444   :  { %v1604_v51 = vadd.f32 %v1603_v47, %v1602_v38  ;;  %v1720_v2 = vsel %vm1276_vm6, %v1710_v4, 0.0  ;;  %v1752_v38 = vld [vmem:[%s2895_s8 + $0x78] sm:$0xff]  ;;  %v1766_v47 = vld [vmem:[%s2895_s8 + $0xe8] sm:$0xff] }
0x1445   :  { %v1681_v24 = vpop.permute.xlu1 %1680  ;;  %1773 = vmatpush.msrb.mxu2 %v1752_v38  ;;  %v1762_v4 = vld [vmem:[%s2895_s8 + $0xc8] sm:$0xff] }
0x1446   :  { %v1685_v40 = vpop.permute.xlu0 %1684  ;;  %v1708_v45 = vmul.f32 %v1681_v24, %v2602_v29 }
0x1447   :  { %v1709_v62 = vmul.f32 %v1685_v40, %v2609_v42 }
0x1448   :  { %v1716_v30 = vsel %vm1276_vm6, %v1708_v45, 0.0 }
0x1449   :  { %v1693_v27 = vpop.permute.xlu2 %1692  ;;  %v1717_v49 = vadd.f32 %v1716_v30, %v1715_v60  ;;  %v1718_v12 = vsel %vm1276_vm6, %v1709_v62, 0.0  ;;  %v1749_v30 = vld [vmem:[%s2895_s8 + $0x60] sm:$0xff] }
0x144a   :  { %v1711_v33 = vmul.f32 %v1693_v27, %v2617_v41 }
0x144b   :  { %v1719_v3 = vadd.f32 %v1718_v12, %v1717_v49  ;;  %v1748_v49 = vld [vmem:[%s2895_s8 + $0x58] sm:$0xff] }
0x144c   :  { %v1722_v21 = vsel %vm1276_vm6, %v1711_v33, 0.0 }
0x144d   :  { %v1721_v28 = vadd.f32 %v1720_v2, %v1719_v3 }
0x144f   :  { %v1576_v23 = vpop.permute.xlu1 %1575  ;;  %v1584_v46 = vpop.permute.xlu0 %1583  ;;  %v1723_v22 = vadd.f32 %v1722_v21, %v1721_v28 }
0x1450   :  { %v1594_v37 = vmul.f32 %v1576_v23, %v2617_v41  ;;  %v1596_v53 = vmul.f32 %v1584_v46, %v2625_v0 }
0x1452   :  { %v1588_v39 = vpop.permute.xlu2 %1587  ;;  %v1605_v48 = vsel %vm1276_vm6, %v1594_v37, 0.0  ;;  %v1609_v9 = vsel %vm1276_vm6, %v1596_v53, 0.0  ;;  %v1767_v37 = vld [vmem:[%s2895_s8 + $0xf0] sm:$0xff]  ;;  %v1765_v53 = vld [vmem:[%s2895_s8 + $0xe0] sm:$0xff] }
0x1453   :  { %v1606_v56 = vadd.f32 %v1605_v48, %v1604_v51  ;;  %v1597_v57 = vmul.f32 %v1588_v39, %v2633_v32  ;;  %v1751_v48 = vld [vmem:[%s2895_s8 + $0x70] sm:$0xff]  ;;  %1794 = vmatpush.msrb.mxu3 %v1767_v37 }
0x1454   :  { %1774 = vmatpush.msrb.mxu2 %v1751_v48 }
0x1455   :  { %v1611_v1 = vsel %vm1276_vm6, %v1597_v57, 0.0  ;;  %1795 = vmatpush.msrb.mxu3 %v1766_v47 }
0x1457   :  { %v1580_v52 = vpop.permute.xlu1 %1579  ;;  %1796 = vmatpush.msrb.mxu3 %v1765_v53  ;;  %v1754_v53 = vld [vmem:[%s2895_s8 + $0x88] sm:$0xff] }
0x1458   :  { %v1595_v54 = vmul.f32 %v1580_v52, %v2621_v18  ;;  %v1497_v27 = vpop.permute.xlu0 %1496  ;;  %v1750_v52 = vld [vmem:[%s2895_s8 + $0x68] sm:$0xff] }
0x1459   :  { %v1534_v20 = vmul.f32 %v1497_v27, %v2597_v17  ;;  %1775 = vmatpush.msrb.mxu2 %v1750_v52  ;;  %v1758_v27 = vld [vmem:[%s2895_s8 + $0xa8] sm:$0xff]  ;;  %v1743_v52 = vld [vmem:[%s2895_s8 + $0x30] sm:$0xff] }
0x145a   :  { %v1607_v58 = vsel %vm1276_vm6, %v1595_v54, 0.0 }
0x145b   :  { %v1608_v63 = vadd.f32 %v1607_v58, %v1606_v56  ;;  %v1705_v59 = vpop.permute.xlu2 %1704  ;;  %v1542_v39 = vsel %vm1276_vm6, %v1534_v20, 0.0  ;;  %v1764_v58 = vld [vmem:[%s2895_s8 + $0xd8] sm:$0xff]  ;;  %1776 = vmatpush.msrb.mxu2 %v1749_v30  ;;  %v1753_v30 = vld [vmem:[%s2895_s8 + $0x80] sm:$0xff] }
0x145c   :  { %v1714_v7 = vmul.f32 %v1705_v59, %v2633_v32  ;;  %1797 = vmatpush.msrb.mxu3 %v1764_v58  ;;  %v1739_v58 = vld [vmem:[%s2895_s8 + $0x10] sm:$0xff] }
0x145d   :  { %v1610_v11 = vadd.f32 %v1609_v9, %v1608_v63  ;;  %v1763_v9 = vld [vmem:[%s2895_s8 + $0xd0] sm:$0xff]  ;;  %1777 = vmatpush.msrb.mxu2 %v1748_v49 }
0x145e   :  { %v1728_v19 = vsel %vm1276_vm6, %v1714_v7, 0.0  ;;  %1798 = vmatpush.msrb.mxu3 %v1763_v9 }
0x145f   :  { %v1612_v16 = vadd.f32 %v1611_v1, %v1610_v11 }
0x1460   :  { %v1697_v15 = vpop.permute.xlu1 %1696  ;;  %v1512_v34 = vpop.permute.xlu0 %1511  ;;  %1799 = vmatpush.msrb.mxu3 %v1762_v4 }
0x1461   :  { %1614 = vrot.lane.b32.xlu1 %v1612_v16, %s2098_s18  ;;  %v1712_v55 = vmul.f32 %v1697_v15, %v2621_v18  ;;  %v1537_v56 = vmul.f32 %v1512_v34, %v2613_v31  ;;  %v1746_v15 = vld [vmem:[%s2895_s8 + $0x48] sm:$0xff]  ;;  %v1757_v34 = vld [vmem:[%s2895_s8 + $0xa0] sm:$0xff] }
0x1463   :  { %v1724_v61 = vsel %vm1276_vm6, %v1712_v55, 0.0  ;;  %v1761_v55 = vld [vmem:[%s2895_s8 + $0xc0] sm:$0xff] }
0x1464   :  { %v1507_v14 = vpop.permute.xlu2 %1506  ;;  %v1725_v43 = vadd.f32 %v1724_v61, %v1723_v22  ;;  %1800 = vmatpush.msrb.mxu3 %v1761_v55 }
0x1465   :  { %v1536_v45 = vmul.f32 %v1507_v14, %v2609_v42 }
0x1467   :  { %v1545_v57 = vsel %vm1276_vm6, %v1536_v45, 0.0 }
0x1468   :  { %v1701_v5 = vpop.permute.xlu1 %1700 }
0x1469   :  { %v1713_v10 = vmul.f32 %v1701_v5, %v2625_v0  ;;  %v1633_v50 = vpop.permute.xlu0 %1632  ;;  %v1760_v5 = vld [vmem:[%s2895_s8 + $0xb8] sm:$0xff] }
0x146a   :  { %v1654_v28 = vmul.f32 %v1633_v50, %v2613_v31  ;;  %v1759_v31 = vld [vmem:[%s2895_s8 + $0xb0] sm:$0xff]  ;;  %1801 = vmatpush.msrb.mxu3 %v1760_v5  ;;  %v1745_v50 = vld [vmem:[%s2895_s8 + $0x40] sm:$0xff] }
0x146b   :  { %v1726_v8 = vsel %vm1276_vm6, %v1713_v10, 0.0 }
0x146c   :  { %v1727_v13 = vadd.f32 %v1726_v8, %v1725_v43  ;;  %1802 = vmatpush.msrb.mxu3 %v1759_v31 }
0x146d   :  { %v1625_v44 = vpop.permute.xlu2 %1624 }
0x146e   :  { %v1729_v24 = vadd.f32 %v1728_v19, %v1727_v13  ;;  %v1652_v60 = vmul.f32 %v1625_v44, %v2602_v29  ;;  %v1664_v13 = vsel %vm1276_vm6, %v1654_v28, 0.0  ;;  %1803 = vmatpush.msrb.mxu3 %v1758_v27 }
0x1470   :  { %1731 = vrot.lane.b32.xlu2 %v1729_v24, %s2098_s18  ;;  %v1660_v12 = vsel %vm1276_vm6, %v1652_v60, 0.0  ;;  %1804 = vmatpush.msrb.mxu3 %v1757_v34  ;;  %v1738_v60 = vld [vmem:[%s2895_s8 + $0x8] sm:$0xff] }
0x1471   :  { %v1502_v26 = vpop.permute.xlu1 %1501 }
0x1472   :  { %v1535_v35 = vmul.f32 %v1502_v26, %v2602_v29  ;;  %v1747_v29 = vld [vmem:[%s2895_s8 + $0x50] sm:$0xff]  ;;  %v1532_v21 = vpop.permute.xlu0 %1531 }
0x1473   :  { %1778 = vmatpush.msrb.mxu2 %v1747_v29  ;;  %v1541_v43 = vmul.f32 %v1532_v21, %v2633_v32 }
0x1474   :  { %v1543_v25 = vsel %vm1276_vm6, %v1535_v35, 0.0 }
0x1475   :  { %v1544_v51 = vadd.f32 %v1543_v25, %v1542_v39  ;;  %1779 = vmatpush.msrb.mxu2 %v1746_v15 }
0x1476   :  { %v1517_v6 = vpop.permute.xlu2 %1516 }
0x1477   :  { %v1546_v62 = vadd.f32 %v1545_v57, %v1544_v51  ;;  %v1538_v1 = vmul.f32 %v1517_v6, %v2617_v41  ;;  %v1555_v6 = vsel %vm1276_vm6, %v1541_v43, 0.0  ;;  %v1756_v51 = vld [vmem:[%s2895_s8 + $0x98] sm:$0xff]  ;;  %1780 = vmatpush.msrb.mxu2 %v1745_v50 }
0x1478   :  { %1805 = vmatpush.msrb.mxu3 %v1756_v51  ;;  %v1740_v57 = vld [vmem:[%s2895_s8 + $0x18] sm:$0xff] }
0x1479   :  { %v1549_v61 = vsel %vm1276_vm6, %v1538_v1, 0.0 }
0x147a   :  { %v1621_v40 = vpop.permute.xlu1 %1620 }
0x147b   :  { %v1651_v54 = vmul.f32 %v1621_v40, %v2597_v17 }
0x147d   :  { %v1659_v11 = vsel %vm1276_vm6, %v1651_v54, 0.0  ;;  %v1742_v54 = vld [vmem:[%s2895_s8 + $0x28] sm:$0xff] }
0x147e   :  { %v1661_v2 = vadd.f32 %v1660_v12, %v1659_v11  ;;  %v1924_v11 = vld [vmem:[%s2896_s9] ss:$0 sm:$0xff] }
0x147f   :  { %v1637_v46 = vpop.permute.xlu2 %1636 }
0x1480   :  { %v1655_v19 = vmul.f32 %v1637_v46, %v2617_v41 }
0x1482   :  { %v1629_v23 = vpop.permute.xlu1 %1628  ;;  %v1666_v35 = vsel %vm1276_vm6, %v1655_v19, 0.0 }
0x1483   :  { %v1653_v63 = vmul.f32 %v1629_v23, %v2609_v42  ;;  %v1547_v42 = vsel %vm1276_vm6, %v1537_v56, 0.0  ;;  %v1741_v56 = vld [vmem:[%s2895_s8 + $0x20] sm:$0xff] }
0x1484   :  { %v1548_v16 = vadd.f32 %v1547_v42, %v1546_v62  ;;  %v1737_v62 = vld [vmem:[%s2895_s8] sm:$0xff] }
0x1485   :  { %v1662_v3 = vsel %vm1276_vm6, %v1653_v63, 0.0 }
0x1486   :  { %v1663_v22 = vadd.f32 %v1662_v3, %v1661_v2  ;;  %v1550_v7 = vadd.f32 %v1549_v61, %v1548_v16 }
0x1487   :  { %v1641_v33 = vpop.permute.xlu2 %1640 }
0x1488   :  { %v1665_v26 = vadd.f32 %v1664_v13, %v1663_v22  ;;  %v1656_v41 = vmul.f32 %v1641_v33, %v2621_v18 }
0x148a   :  { %v1667_v23 = vadd.f32 %v1666_v35, %v1665_v26  ;;  %v1668_v37 = vsel %vm1276_vm6, %v1656_v41, 0.0 }
0x148b   :  { %v1522_v17 = vpop.permute.xlu1 %1521 }
0x148c   :  { %v1539_v59 = vmul.f32 %v1522_v17, %v2621_v18  ;;  %v1669_v45 = vadd.f32 %v1668_v37, %v1667_v23 }
0x148e   :  { %v1551_v14 = vsel %vm1276_vm6, %v1539_v59, 0.0 }
0x148f   :  { %v1552_v24 = vadd.f32 %v1551_v14, %v1550_v7  ;;  %v1649_v25 = vpop.permute.xlu2 %1648 }
0x1490   :  { %v1658_v38 = vmul.f32 %v1649_v25, %v2633_v32  ;;  %v1755_v32 = vld [vmem:[%s2895_s8 + $0x90] sm:$0xff] }
0x1491   :  { %1806 = vmatpush.msrb.mxu3 %v1755_v32 }
0x1492   :  { %v1672_v18 = vsel %vm1276_vm6, %v1658_v38, 0.0 }
0x1493   :  { %v1527_v10 = vpop.permute.xlu1 %1526  ;;  %1807 = vmatpush.msrb.mxu3 %v1754_v53 }
0x1494   :  { %v1540_v8 = vmul.f32 %v1527_v10, %v2625_v0 }
0x1495   :  { %1808 = vmatpush.msrb.mxu3 %v1753_v30 }
0x1496   :  { %v1553_v44 = vsel %vm1276_vm6, %v1540_v8, 0.0 }
0x1497   :  { %v1554_v40 = vadd.f32 %v1553_v44, %v1552_v24 }
0x1499   :  { %v1556_v20 = vadd.f32 %v1555_v6, %v1554_v40 }
0x149b   :  { %1557 = vst.msk [vmem:[#allocation4] sm:$0xff] %vm1276_vm6, %v1556_v20 }
0x149c   :  { %v1645_v36 = vpop.permute.xlu1 %1644 }
0x149d   :  { %v1657_v39 = vmul.f32 %v1645_v36, %v2625_v0  ;;  %v1744_v0 = vld [vmem:[%s2895_s8 + $0x38] sm:$0xff] }
0x149e   :  { %1781 = vmatpush.msrb.mxu2 %v1744_v0 }
0x149f   :  { %v1670_v46 = vsel %vm1276_vm6, %v1657_v39, 0.0 }
0x14a0   :  { %v1671_v47 = vadd.f32 %v1670_v46, %v1669_v45  ;;  %1782 = vmatpush.msrb.mxu2 %v1743_v52 }
0x14a2   :  { %v1673_v48 = vadd.f32 %v1672_v18, %v1671_v47  ;;  %1783 = vmatpush.msrb.mxu2 %v1742_v54 }
0x14a4   :  { %1674 = vst.msk [vmem:[#allocation4 + $0x8] sm:$0xff] %vm1276_vm6, %v1673_v48  ;;  %1784 = vmatpush.msrb.mxu2 %v1741_v56 }
0x14a6   :  { %1785 = vmatpush.msrb.mxu2 %v1740_v57 }
0x14a8   :  { %1786 = vmatpush.msrb.mxu2 %v1739_v58 }
0x14aa   :  { %1787 = vmatpush.msrb.mxu2 %v1738_v60 }
0x14ac   :  { %1788 = vmatpush.msrb.mxu2 %v1737_v62 }
0x14ca   :  { %v1732_v63 = vpop.permute.xlu2 %1731 }
0x14cb   :  { %1734 = vst.msk [vmem:[#allocation4 + $0x8] sm:$0xff] %vm1617_vm8, %v1732_v63 }
0x14d2   :  { %v1736_v17 = vld [vmem:[#allocation4 + $0x8] sm:$0xff] }
0x14d3   :  { %v1615_v49 = vpop.permute.xlu1 %1614  ;;  %1809 = vmatmul.f32.vlgmr.msrb.gmra.mxu3 %v1736_v17 }
0x14d4   :  { %1618 = vst.msk [vmem:[#allocation4] sm:$0xff] %vm1617_vm8, %v1615_v49 }
0x14db   :  { %v1735_v9 = vld [vmem:[#allocation4] sm:$0xff] }
0x14dc   :  { %1789 = vmatmul.f32.vlgmr.msrb.gmra.mxu2 %v1735_v9 }
0x1556   :  { %v1810_v1 = vpop.f32.mrf.mxu3 }
0x155f   :  { %v1790_v29 = vpop.f32.mrf.mxu2 }
0x1560   :  { %v1791_v42 = vadd.f32 %v1924_v11, %v1790_v29 }
0x1562   :  { %v1811_v59 = vadd.f32 %v1810_v1, %v1791_v42 }
0x1564   :  { %v1814_v4 = vsel %vm1813_vm9, %v1811_v59, -inf }
0x1565   :  { %1815 = vmax.xlane.f32.xlu0 %v1814_v4 }
0x15d8   :  { %v1816_v12 = vpop.xlane.xlu0 %1815 }
0x15d9   :  { %v1817_v16 = vsub.f32 %v1811_v59, %v1816_v12 }
0x15db   :  { %v1818_v3 = vmul.f32 1.442695, %v1817_v16 }
0x15dd   :  { %2087 = vpow2.f32 %v1818_v3 }
0x15e3   :  { %v2088_v15 = vpop.eup %2087 }
0x15e4   :  { %v1820_v2 = vsel %vm1813_vm9, %v2088_v15, 0.0 }
0x15e5   :  { %1821 = vadd.xlane.f32.xlu1 %v1820_v2 }
0x1658   :  { %v1822_v33 = vpop.xlane.xlu1 %1821 }
0x1659   :  { %2089 = vlog2.f32 %v1822_v33 }
0x165f   :  { %v2090_v55 = vpop.eup %2089 }
0x1660   :  { %v1824_v28 = vmul.f32 0.6931472, %v2090_v55 }
0x1662   :  { %v1825_v21 = vadd.f32 %v1824_v28, %v1816_v12 }
0x1664   :  { %v1826_v61 = vsub.f32 %v1811_v59, %v1825_v21 }
0x1666   :  { %1827 = vst.msk [vmem:[%s2897_s10] sm:$0xff] %vm1813_vm9, %v1826_v61 }

</bundles_post_ra>
